<compile_context>
chip_gen: v7x
topology: tpu7x:2x2x1
jax: 0.10.0
libtpu: 0.0.40
codegen_flags: <defaults>
</compile_context>

<pallas_src>
import jax
import jax.numpy as jnp
from jax.experimental import pallas as pl
from jax.experimental.pallas import tpu as pltpu  # noqa: F401  (imported per spec)

# ----------------------------- sizes --------------------------------------
N = 2          # batch
C_IN = 3       # image channels (len(PIXEL_MEAN))
H = W = 16     # spatial
HW = H * W
F = 128        # backbone feature dim
L = 53         # number of BN/IN stat layers (matches affine1_* in_features=53)
C_STAT = 128   # channel dim of each running-stat vector
K_PAD = 128    # conv contraction dim padded to a lane-dense 128


# ----------------------------- fused kernel --------------------------------
def fused_eval_kernel(x_ref, wbb_ref, bbb_ref, wagg_ref, bagg_ref, pool_ref,
                      bnm_ref, bns_ref, inm_ref, ins_ref, o_ref):
    """Entire eval forward in one VMEM-resident pass.

    x_ref   : (N*HW, K_PAD)   bf16 pixels, channels zero-padded to 128
    wbb_ref : (K_PAD, 4*F)    bf16, 4 expert 1x1-conv weights, pixel norm folded
    bbb_ref : (1, 4*F)        f32 folded biases
    wagg_ref: (F, F) bf16, bagg_ref: (1, F) f32   backbone_agg dense
    pool_ref: (N, N*HW)       bf16 block-diagonal 1/HW pooling matrix
    bnm_ref : (3, L, C)       BN running means  (broadcast over N in-kernel)
    bns_ref : (3, L, C)       sqrt(BN running var)   (precomputed constant)
    inm_ref : (N, 3, L, C)    IN batch means
    ins_ref : (N, 3, L, C)    sqrt(IN batch var)     (precomputed constant)
    o_ref   : (N, 2*F)        [F_final_features | agg_features]
    """
    # (1) All 4 expert 1x1 convs as one standard full-K bf16 MXU matmul
    #     (pixel normalization folded into w/b at param-build time).
    feats = jnp.dot(x_ref[...], wbb_ref[...], preferred_element_type=jnp.float32)
    feats = jnp.maximum(feats + bbb_ref[...], 0.0)                       # (N*HW, 4F) f32
    feats16 = feats.astype(jnp.bfloat16)

    # (2) Agg branch: expert-4 slice -> dense F->F + ReLU (bf16 MXU, f32 acc).
    x_agg = jnp.dot(feats16[:, 3 * F:4 * F], wagg_ref[...],
                    preferred_element_type=jnp.float32)
    x_agg = jnp.maximum(x_agg + bagg_ref[...], 0.0)                      # (N*HW, F) f32

    # (3) heads_* (eval) modeled as global average pooling, computed as MXU
    #     matmuls against the constant block-diagonal 1/HW pooling matrix.
    # TODO(synk): fastreid EmbeddingHead's BN-neck is omitted (build_heads not defined).
    gap_all = jnp.dot(pool_ref[...], feats16[:, 0:3 * F],
                      preferred_element_type=jnp.float32)                # (N, 3F)
    agg_feat = jnp.dot(pool_ref[...], x_agg.astype(jnp.bfloat16),
                       preferred_element_type=jnp.float32)               # (N, F)

    # (4) EMD per stat layer for all 3 experts at once, summed over layers.
    #     W = sqrt( sum_c (u1-u2)^2 + sum_c (sqrt(c1)-sqrt(c2))^2 )
    #     BN stats broadcast over N here (free leading-dim broadcast);
    #     both sqrt(var) terms are precomputed constants.
    dm = bnm_ref[...][None] - inm_ref[...]                               # (N, 3, L, C)
    ds = bns_ref[...][None] - ins_ref[...]                               # (N, 3, L, C)
    emd = jnp.sqrt(jnp.sum(dm * dm + ds * ds, axis=-1))                  # (N, 3, L)
    logits = jnp.sum(emd, axis=-1)                                       # (N, 3)  cols=[E1,E2,E3]

    # softmax over experts (permutation-equivariant, so column order [E1,E2,E3]
    # gives the same per-expert weights as the reference's [E2,E3,E1] ordering).
    m = jnp.max(logits, axis=-1, keepdims=True)
    e = jnp.exp(logits - m)
    aff = e * pl.reciprocal(jnp.sum(e, axis=-1, keepdims=True), approx=False)  # (N, 3)

    # (5) F_final = aff_E2*x_E2 + aff_E3*x_E3 + aff_E1*x_E1, then heads_F_finals (GAP).
    #     GAP is linear in x, so weighting the pooled features is identical.
    gap_e1 = gap_all[:, 0 * F:1 * F]
    gap_e2 = gap_all[:, 1 * F:2 * F]
    gap_e3 = gap_all[:, 2 * F:3 * F]
    ffinal = aff[:, 1:2] * gap_e2 + aff[:, 2:3] * gap_e3 + aff[:, 0:1] * gap_e1  # (N, F)

    # (6) features_final = cat(F_final_output, x_agg_output, dim=-1): 256 lanes,
    #     lane-dense unmasked stores.
    o_ref[...] = jnp.concatenate([ffinal, agg_feat], axis=-1)            # (N, 2F)


# ----------------------------- parameters ----------------------------------
def make_params(key):
    ks = jax.random.split(key, 16)
    p = {}
    p["pixel_mean"] = jnp.array([[0.485, 0.456, 0.406]], jnp.float32) * 255.0  # (1,C)
    p["pixel_std"] = jnp.array([[0.229, 0.224, 0.225]], jnp.float32) * 255.0   # (1,C)
    # per-expert backbone (ids=1..4), modeled as 1x1 conv C->F
    p["w_bb"] = jax.random.normal(ks[0], (4, C_IN, F), jnp.float32) * 0.1
    p["b_bb"] = jax.random.normal(ks[1], (4, 1, F), jnp.float32) * 0.01
    # backbone_agg: dense F->F
    p["w_agg"] = jax.random.normal(ks[2], (F, F), jnp.float32) * (1.0 / jnp.sqrt(F))
    p["b_agg"] = jax.random.normal(ks[3], (1, F), jnp.float32) * 0.01
    # synthesized BN running stats and IN batch stats scraped from the backbone
    # TODO(synk): real stats come from state_dict buffers of build_backbone (not defined here).
    for i, name in enumerate(["Expert1", "Expert2", "Expert3"]):
        p[f"bn_mean_{name}"] = jax.random.normal(ks[4 + i], (L, C_STAT), jnp.float32)
        p[f"bn_var_{name}"] = jnp.abs(jax.random.normal(ks[7 + i], (L, C_STAT), jnp.float32)) + 0.1
        p[f"in_mean_{name}"] = jax.random.normal(ks[10 + i], (L, N, C_STAT), jnp.float32)
        p[f"in_var_{name}"] = jnp.abs(jax.random.normal(ks[13 + i], (L, N, C_STAT), jnp.float32)) + 0.1
    # NOTE: the affine gating MLPs (53->512->1) exist in __init__ but are only
    # used in the training branch, so they are not instantiated in this
    # eval-only script.
    return p


def prepare_kernel_params(p):
    """One-time, outside-the-kernel precompute."""
    names = ["Expert1", "Expert2", "Expert3"]
    # Fold pixel normalization into the expert conv weights:
    #   ((x - m) / s) @ W + b  ==  x @ (W / s[:,None]) + (b - (m/s) @ W)
    w_cat = jnp.concatenate([p["w_bb"][e] for e in range(4)], axis=-1)       # (C, 4F)
    b_cat = jnp.concatenate([p["b_bb"][e] for e in range(4)], axis=-1)       # (1, 4F)
    inv_std = 1.0 / p["pixel_std"]                                           # (1, C)
    w_fold = w_cat * inv_std.reshape(C_IN, 1)                                # (C, 4F)
    b_fold = b_cat - (p["pixel_mean"] * inv_std) @ w_cat                     # (1, 4F)
    # Zero-pad the contraction dim to K_PAD so both conv operands are lane-dense
    # and the HBM->VMEM copies are plain dense DMAs.
    w_pad = jnp.zeros((K_PAD, 4 * F), jnp.float32).at[:C_IN].set(w_fold)
    # Block-diagonal 1/HW pooling matrix: gap = pool @ feats.
    pool = jnp.zeros((N, N * HW), jnp.float32)
    for n in range(N):
        pool = pool.at[n, n * HW:(n + 1) * HW].set(1.0 / HW)
    # Stats: expert axis kept off the second-to-last dim, sqrt() of both BN and
    # IN variances precomputed, BN stats NOT broadcast over N.
    bn_mean = jnp.stack([p[f"bn_mean_{n}"] for n in names], axis=0)          # (3, L, C)
    bn_std = jnp.sqrt(jnp.stack([p[f"bn_var_{n}"] for n in names], axis=0))  # (3, L, C)
    in_mean = jnp.transpose(jnp.stack([p[f"in_mean_{n}"] for n in names], axis=0),
                            (2, 0, 1, 3))                                    # (N, 3, L, C)
    in_std = jnp.sqrt(jnp.transpose(jnp.stack([p[f"in_var_{n}"] for n in names], axis=0),
                                    (2, 0, 1, 3)))                           # (N, 3, L, C)
    return {
        "w_bb_fold": w_pad.astype(jnp.bfloat16), "b_bb_fold": b_fold,
        "w_agg": p["w_agg"].astype(jnp.bfloat16), "b_agg": p["b_agg"],
        "pool": pool.astype(jnp.bfloat16),
        "bn_mean": bn_mean, "bn_std": bn_std,
        "in_mean": in_mean, "in_std": in_std,
    }


# ----------------------------- forward (eval path) -------------------------
@jax.jit
def baseline_forward_eval(x_nchw, kp):
    # preprocess_image: NCHW -> channels-last matrix; normalization is folded
    # into the conv weights; channels zero-padded to K_PAD (lane-dense DMA,
    # standard full-K MXU matmul).
    x_pix = jnp.transpose(x_nchw, (0, 2, 3, 1)).reshape(N * HW, C_IN)
    x_pad = jnp.pad(x_pix, ((0, 0), (0, K_PAD - C_IN))).astype(jnp.bfloat16)
    # One fused kernel, no grid: every operand is a whole-array VMEM block
    # (total footprint << VMEM on v5e/v6e/v7x).
    # heads_Expert{1,2,3} outputs are computed in the reference but unused in eval.
    return pl.pallas_call(
        fused_eval_kernel,
        out_shape=jax.ShapeDtypeStruct((N, 2 * F), jnp.float32),
    )(x_pad, kp["w_bb_fold"], kp["b_bb_fold"], kp["w_agg"], kp["b_agg"],
      kp["pool"], kp["bn_mean"], kp["bn_std"], kp["in_mean"], kp["in_std"])


# ----------------------------- main ----------------------------------------
if __name__ == "__main__":
    key = jax.random.PRNGKey(0)
    k_img, k_par = jax.random.split(key)
    params = make_params(k_par)
    kparams = prepare_kernel_params(params)
    # synthetic image batch, NCHW like PyTorch, values in [0, 255)
    x = jax.random.uniform(k_img, (N, C_IN, H, W), jnp.float32) * 255.0

    out = baseline_forward_eval(x, kparams)
    out = jax.block_until_ready(out)
    assert out.shape == (N, 2 * F) and out.dtype == jnp.float32
    assert bool(jnp.all(jnp.isfinite(out)))
    print("KERNEL_OK")
</pallas_src>

<mosaic_0001>
module attributes {stable_mosaic.version = 11 : i64} {
  func.func @fused_eval_kernel(%arg0: memref<512x128xbf16, #tpu.memory_space<vmem>>, %arg1: memref<128x512xbf16, #tpu.memory_space<vmem>>, %arg2: memref<1x512xf32, #tpu.memory_space<vmem>>, %arg3: memref<128x128xbf16, #tpu.memory_space<vmem>>, %arg4: memref<1x128xf32, #tpu.memory_space<vmem>>, %arg5: memref<2x512xbf16, #tpu.memory_space<vmem>>, %arg6: memref<3x53x128xf32, #tpu.memory_space<vmem>>, %arg7: memref<3x53x128xf32, #tpu.memory_space<vmem>>, %arg8: memref<2x3x53x128xf32, #tpu.memory_space<vmem>>, %arg9: memref<2x3x53x128xf32, #tpu.memory_space<vmem>>, %arg10: memref<2x256xf32, #tpu.memory_space<vmem>>) attributes {dimension_semantics = [], scalar_prefetch = 0 : i64, scratch_operands = 0 : i64, tpu.core_type = #tpu.core_type<tc>} {
    %c0 = arith.constant 0 : index
    %c0_0 = arith.constant 0 : index
    %0 = vector.load %arg0[%c0, %c0_0] : memref<512x128xbf16, #tpu.memory_space<vmem>>, vector<512x128xbf16>
    %c0_1 = arith.constant 0 : index
    %c0_2 = arith.constant 0 : index
    %1 = vector.load %arg1[%c0_1, %c0_2] : memref<128x512xbf16, #tpu.memory_space<vmem>>, vector<128x512xbf16>
    %cst = arith.constant dense<0.000000e+00> : vector<512x512xf32>
    %2 = tpu.matmul %0, %1, %cst {dimension_numbers = #tpu.dot_dimension_numbers<[1], [0], [0], [1], [0, 0, 1, 1], [], []>} : vector<512x128xbf16>, vector<128x512xbf16>, vector<512x512xf32> -> vector<512x512xf32>
    %c0_3 = arith.constant 0 : index
    %c0_4 = arith.constant 0 : index
    %3 = vector.load %arg2[%c0_3, %c0_4] : memref<1x512xf32, #tpu.memory_space<vmem>>, vector<1x512xf32>
    %4 = vector.broadcast %3 : vector<1x512xf32> to vector<512x512xf32>
    %5 = arith.addf %2, %4 : vector<512x512xf32>
    %cst_5 = arith.constant 0.000000e+00 : f32
    %6 = vector.broadcast %cst_5 : f32 to vector<512x512xf32>
    %7 = arith.maximumf %5, %6 : vector<512x512xf32>
    %8 = arith.truncf %7 : vector<512x512xf32> to vector<512x512xbf16>
    %9 = vector.extract_strided_slice %8 {offsets = [0, 384], sizes = [512, 128], strides = [1, 1]} : vector<512x512xbf16> to vector<512x128xbf16>
    %c0_6 = arith.constant 0 : index
    %c0_7 = arith.constant 0 : index
    %10 = vector.load %arg3[%c0_6, %c0_7] : memref<128x128xbf16, #tpu.memory_space<vmem>>, vector<128x128xbf16>
    %cst_8 = arith.constant dense<0.000000e+00> : vector<512x128xf32>
    %11 = tpu.matmul %9, %10, %cst_8 {dimension_numbers = #tpu.dot_dimension_numbers<[1], [0], [0], [1], [0, 0, 1, 1], [], []>} : vector<512x128xbf16>, vector<128x128xbf16>, vector<512x128xf32> -> vector<512x128xf32>
    %c0_9 = arith.constant 0 : index
    %c0_10 = arith.constant 0 : index
    %12 = vector.load %arg4[%c0_9, %c0_10] : memref<1x128xf32, #tpu.memory_space<vmem>>, vector<1x128xf32>
    %13 = vector.broadcast %12 : vector<1x128xf32> to vector<512x128xf32>
    %14 = arith.addf %11, %13 : vector<512x128xf32>
    %cst_11 = arith.constant 0.000000e+00 : f32
    %15 = vector.broadcast %cst_11 : f32 to vector<512x128xf32>
    %16 = arith.maximumf %14, %15 : vector<512x128xf32>
    %c0_12 = arith.constant 0 : index
    %c0_13 = arith.constant 0 : index
    %17 = vector.load %arg5[%c0_12, %c0_13] : memref<2x512xbf16, #tpu.memory_space<vmem>>, vector<2x512xbf16>
    %18 = vector.extract_strided_slice %8 {offsets = [0, 0], sizes = [512, 384], strides = [1, 1]} : vector<512x512xbf16> to vector<512x384xbf16>
    %cst_14 = arith.constant dense<0.000000e+00> : vector<2x384xf32>
    %19 = tpu.matmul %17, %18, %cst_14 {dimension_numbers = #tpu.dot_dimension_numbers<[1], [0], [0], [1], [0, 0, 1, 1], [], []>} : vector<2x512xbf16>, vector<512x384xbf16>, vector<2x384xf32> -> vector<2x384xf32>
    %c0_15 = arith.constant 0 : index
    %c0_16 = arith.constant 0 : index
    %20 = vector.load %arg5[%c0_15, %c0_16] : memref<2x512xbf16, #tpu.memory_space<vmem>>, vector<2x512xbf16>
    %21 = arith.truncf %16 : vector<512x128xf32> to vector<512x128xbf16>
    %cst_17 = arith.constant dense<0.000000e+00> : vector<2x128xf32>
    %22 = tpu.matmul %20, %21, %cst_17 {dimension_numbers = #tpu.dot_dimension_numbers<[1], [0], [0], [1], [0, 0, 1, 1], [], []>} : vector<2x512xbf16>, vector<512x128xbf16>, vector<2x128xf32> -> vector<2x128xf32>
    %c0_18 = arith.constant 0 : index
    %c0_19 = arith.constant 0 : index
    %c0_20 = arith.constant 0 : index
    %23 = vector.load %arg6[%c0_18, %c0_19, %c0_20] : memref<3x53x128xf32, #tpu.memory_space<vmem>>, vector<3x53x128xf32>
    %24 = vector.shape_cast %23 : vector<3x53x128xf32> to vector<1x3x53x128xf32>
    %c0_21 = arith.constant 0 : index
    %c0_22 = arith.constant 0 : index
    %c0_23 = arith.constant 0 : index
    %c0_24 = arith.constant 0 : index
    %25 = vector.load %arg8[%c0_21, %c0_22, %c0_23, %c0_24] : memref<2x3x53x128xf32, #tpu.memory_space<vmem>>, vector<2x3x53x128xf32>
    %26 = vector.broadcast %24 : vector<1x3x53x128xf32> to vector<2x3x53x128xf32>
    %27 = arith.subf %26, %25 : vector<2x3x53x128xf32>
    %c0_25 = arith.constant 0 : index
    %c0_26 = arith.constant 0 : index
    %c0_27 = arith.constant 0 : index
    %28 = vector.load %arg7[%c0_25, %c0_26, %c0_27] : memref<3x53x128xf32, #tpu.memory_space<vmem>>, vector<3x53x128xf32>
    %29 = vector.shape_cast %28 : vector<3x53x128xf32> to vector<1x3x53x128xf32>
    %c0_28 = arith.constant 0 : index
    %c0_29 = arith.constant 0 : index
    %c0_30 = arith.constant 0 : index
    %c0_31 = arith.constant 0 : index
    %30 = vector.load %arg9[%c0_28, %c0_29, %c0_30, %c0_31] : memref<2x3x53x128xf32, #tpu.memory_space<vmem>>, vector<2x3x53x128xf32>
    %31 = vector.broadcast %29 : vector<1x3x53x128xf32> to vector<2x3x53x128xf32>
    %32 = arith.subf %31, %30 : vector<2x3x53x128xf32>
    %33 = arith.mulf %27, %27 : vector<2x3x53x128xf32>
    %34 = arith.mulf %32, %32 : vector<2x3x53x128xf32>
    %35 = arith.addf %33, %34 : vector<2x3x53x128xf32>
    %cst_32 = arith.constant dense<0.000000e+00> : vector<2x3x53xf32>
    %36 = vector.multi_reduction <add>, %35, %cst_32 [3] : vector<2x3x53x128xf32> to vector<2x3x53xf32>
    %37 = math.sqrt %36 : vector<2x3x53xf32>
    %cst_33 = arith.constant dense<0.000000e+00> : vector<2x3xf32>
    %38 = vector.multi_reduction <add>, %37, %cst_33 [2] : vector<2x3x53xf32> to vector<2x3xf32>
    %cst_34 = arith.constant dense<0xFF800000> : vector<2xf32>
    %39 = vector.multi_reduction <maximumf>, %38, %cst_34 [1] : vector<2x3xf32> to vector<2xf32>
    %40 = vector.shape_cast %39 : vector<2xf32> to vector<2x1xf32>
    %41 = vector.broadcast %40 : vector<2x1xf32> to vector<2x3xf32>
    %42 = arith.subf %38, %41 : vector<2x3xf32>
    %43 = math.exp %42 : vector<2x3xf32>
    %cst_35 = arith.constant dense<0.000000e+00> : vector<2xf32>
    %44 = vector.multi_reduction <add>, %43, %cst_35 [1] : vector<2x3xf32> to vector<2xf32>
    %45 = vector.shape_cast %44 : vector<2xf32> to vector<2x1xf32>
    %46 = tpu.reciprocal %45 : vector<2x1xf32> -> vector<2x1xf32>
    %47 = vector.broadcast %46 : vector<2x1xf32> to vector<2x3xf32>
    %48 = arith.mulf %43, %47 : vector<2x3xf32>
    %49 = vector.extract_strided_slice %19 {offsets = [0, 0], sizes = [2, 128], strides = [1, 1]} : vector<2x384xf32> to vector<2x128xf32>
    %50 = vector.extract_strided_slice %19 {offsets = [0, 128], sizes = [2, 128], strides = [1, 1]} : vector<2x384xf32> to vector<2x128xf32>
    %51 = vector.extract_strided_slice %19 {offsets = [0, 256], sizes = [2, 128], strides = [1, 1]} : vector<2x384xf32> to vector<2x128xf32>
    %52 = vector.extract_strided_slice %48 {offsets = [0, 1], sizes = [2, 1], strides = [1, 1]} : vector<2x3xf32> to vector<2x1xf32>
    %53 = vector.broadcast %52 : vector<2x1xf32> to vector<2x128xf32>
    %54 = arith.mulf %53, %50 : vector<2x128xf32>
    %55 = vector.extract_strided_slice %48 {offsets = [0, 2], sizes = [2, 1], strides = [1, 1]} : vector<2x3xf32> to vector<2x1xf32>
    %56 = vector.broadcast %55 : vector<2x1xf32> to vector<2x128xf32>
    %57 = arith.mulf %56, %51 : vector<2x128xf32>
    %58 = arith.addf %54, %57 : vector<2x128xf32>
    %59 = vector.extract_strided_slice %48 {offsets = [0, 0], sizes = [2, 1], strides = [1, 1]} : vector<2x3xf32> to vector<2x1xf32>
    %60 = vector.broadcast %59 : vector<2x1xf32> to vector<2x128xf32>
    %61 = arith.mulf %60, %49 : vector<2x128xf32>
    %62 = arith.addf %58, %61 : vector<2x128xf32>
    %63 = tpu.concatenate %62, %22 in 1 : vector<2x128xf32>, vector<2x128xf32> -> vector<2x256xf32>
    %c0_36 = arith.constant 0 : index
    %c0_37 = arith.constant 0 : index
    %64 = vector.load %arg10[%c0_36, %c0_37] : memref<2x256xf32, #tpu.memory_space<vmem>>, vector<2x256xf32>
    tpu.vector_store %arg10[%c0_36, %c0_37], %63 {strides = array<i32>} : memref<2x256xf32, #tpu.memory_space<vmem>>, vector<2x256xf32>,
    return
  }
}

</mosaic_0001>

<bundles_post_ra>
// kernel: baseline_forward_eval.1
= control target key start
LH: loop header
LB: loop body
LE: loop exit
PB: predicated region body
PF: predicated region fallthrough
CT: control target
= control target key end

     0   :  { %v4899_v4 = vmov 0   ;;  %vm2673_vm0 = vcmask 1044480   ;;  %s7577_s0 = inlined_call_operand.vmem [shape: bf16[512,128], index: 0, kind: input, shape index: {}]   ;;  %s7578_s1 = inlined_call_operand.vmem [shape: bf16[128,512], index: 1, kind: input, shape index: {}]   ;;  %s7579_s2 = inlined_call_operand.vmem [shape: f32[1,512], index: 2, kind: input, shape index: {}]   ;;  %s7580_s3 = inlined_call_operand.vmem [shape: bf16[128,128], index: 3, kind: input, shape index: {}]   ;;  %s7581_s4 = inlined_call_operand.vmem [shape: f32[1,128], index: 4, kind: input, shape index: {}]   ;;  %s7582_s5 = inlined_call_operand.vmem [shape: bf16[2,512], index: 5, kind: input, shape index: {}]   ;;  %s7583_s6 = inlined_call_operand.vmem [shape: f32[3,53,128], index: 6, kind: input, shape index: {}]   ;;  %s7584_s7 = inlined_call_operand.vmem [shape: f32[3,53,128], index: 7, kind: input, shape index: {}]   ;;  %s7585_s8 = inlined_call_operand.vmem [shape: f32[2,3,53,128], index: 8, kind: input, shape index: {}]   ;;  %s7586_s9 = inlined_call_operand.vmem [shape: f32[2,3,53,128], index: 9, kind: input, shape index: {}]   ;;  %s7587_s10 = inlined_call_operand.hbm [shape: f32[2,256], index: 10, kind: output, shape index: {}]  }
   0x1   :  { %v4696_v0 = vld [vmem:[%s7578_s1 + $0x4] ss:$16 sps:$4 sm:$0xff]   ;;  %v4698_v1 = vld [vmem:[%s7578_s1] ss:$16 sps:$4 sm:$0xff]   ;;  %v4966_v2 = vld [vmem:[%s7583_s6 + $0x38] sm:$0xff]  ;;  %539 = vmatprep.mubr.bf16.mxu0 %v4899_v4  ;;  %892 = vmatprep.mubr.bf16.mxu1 %v4899_v4 }
   0x2   :  { %v2353_v3 = vld [vmem:[%s7585_s8 + $0x38] sm:$0xff]  ;;  %507 = vmatprep.subr.bf16.mxu0 %v4696_v0  ;;  %v2325_v8 = vld [vmem:[%s7583_s6] sm:$0xff]  ;;  %4695 = vset.pattern.permute.xlu0 %v4899_v4  ;;  %v2326_v26 = vld [vmem:[%s7583_s6 + $0x8] sm:$0xff] }
   0x3   :  { %v2395_v5 = vsub.f32 %v4966_v2, %v2353_v3  ;;  %v4977_v6 = vld [vmem:[%s7584_s7 + $0x38] sm:$0xff]  ;;  %508 = vmatpush1.bf16.msra.mxu0 %v4698_v1  ;;  %v2346_v10 = vld [vmem:[%s7585_s8] sm:$0xff]  ;;  %4694 = vset.pattern.permute.xlu1 %v4899_v4  ;;  %v2347_v29 = vld [vmem:[%s7585_s8 + $0x8] sm:$0xff] }
   0x4   :  { %v2458_v7 = vld [vmem:[%s7586_s9 + $0x38] sm:$0xff]  ;;  %v2430_v11 = vld [vmem:[%s7584_s7] sm:$0xff]  ;;  %v2388_v14 = vsub.f32 %v2325_v8, %v2346_v10  ;;  %v2431_v30 = vld [vmem:[%s7584_s7 + $0x8] sm:$0xff]  ;;  %v2389_v34 = vsub.f32 %v2326_v26, %v2347_v29 }
   0x5   :  { %v2500_v9 = vsub.f32 %v4977_v6, %v2458_v7  ;;  %v2451_v12 = vld [vmem:[%s7586_s9] sm:$0xff]  ;;  %v2542_v13 = vmul.f32 %v2395_v5, %v2395_v5  ;;  %v2452_v31 = vld [vmem:[%s7586_s9 + $0x8] sm:$0xff]  ;;  %v2368_v39 = vld [vmem:[%s7585_s8 + $0xb0] sm:$0xff] }
   0x6   :  { %v2493_v15 = vsub.f32 %v2430_v11, %v2451_v12  ;;  %v4699_v16 = vld [vmem:[%s7578_s1 + $0x24] ss:$16 sps:$4 sm:$0xff]   ;;  %v4701_v18 = vld [vmem:[%s7578_s1 + $0x20] ss:$16 sps:$4 sm:$0xff]   ;;  %v2535_v21 = vmul.f32 %v2388_v14, %v2388_v14  ;;  %v2494_v35 = vsub.f32 %v2431_v30, %v2452_v31  ;;  %v2536_v41 = vmul.f32 %v2389_v34, %v2389_v34  ;;  %v2367_v44 = vld [vmem:[%s7585_s8 + $0xa8] sm:$0xff] }
   0x7   :  { %v2584_v17 = vmul.f32 %v2500_v9, %v2500_v9  ;;  %v2333_v19 = vld [vmem:[%s7583_s6 + $0x40] sm:$0xff]  ;;  %509 = vmatprep.subr.bf16.mxu0 %v4699_v16  ;;  %v2473_v40 = vld [vmem:[%s7586_s9 + $0xb0] sm:$0xff]  ;;  %v2410_v43 = vsub.f32 %v2326_v26, %v2368_v39  ;;  %v2472_v45 = vld [vmem:[%s7586_s9 + $0xa8] sm:$0xff]  ;;  %v2409_v48 = vsub.f32 %v2325_v8, %v2367_v44 }
   0x8   :  { %v2354_v20 = vld [vmem:[%s7585_s8 + $0x40] sm:$0xff]  ;;  %v2577_v22 = vmul.f32 %v2493_v15, %v2493_v15  ;;  %510 = vmatpush1.bf16.msra.mxu0 %v4701_v18  ;;  %v2578_v42 = vmul.f32 %v2494_v35, %v2494_v35  ;;  %v2515_v47 = vsub.f32 %v2431_v30, %v2473_v40  ;;  %v2514_v49 = vsub.f32 %v2430_v11, %v2472_v45  ;;  %v2375_v54 = vld [vmem:[%s7585_s8 + $0xe8] sm:$0xff]  ;;  %v2327_v14 = vld [vmem:[%s7583_s6 + $0x10] sm:$0xff] }
   0x9   :  { %v2396_v23 = vsub.f32 %v2333_v19, %v2354_v20  ;;  %v2438_v24 = vld [vmem:[%s7584_s7 + $0x40] sm:$0xff]  ;;  %v2626_v27 = vadd.f32 %v2584_v17, %v2542_v13  ;;  %v2557_v53 = vmul.f32 %v2410_v43, %v2410_v43  ;;  %v2480_v55 = vld [vmem:[%s7586_s9 + $0xe8] sm:$0xff]  ;;  %v2556_v58 = vmul.f32 %v2409_v48, %v2409_v48  ;;  %v2348_v15 = vld [vmem:[%s7585_s8 + $0x10] sm:$0xff] }
   0xa   :  { %v2459_v25 = vld [vmem:[%s7586_s9 + $0x40] sm:$0xff]  ;;  %v2619_v32 = vadd.f32 %v2577_v22, %v2535_v21  ;;  %v2620_v52 = vadd.f32 %v2578_v42, %v2536_v41  ;;  %v2599_v57 = vmul.f32 %v2515_v47, %v2515_v47  ;;  %v2598_v59 = vmul.f32 %v2514_v49, %v2514_v49  ;;  %v2334_v5 = vld [vmem:[%s7583_s6 + $0x48] sm:$0xff]  ;;  %v2432_v16 = vld [vmem:[%s7584_s7 + $0x10] sm:$0xff] }
   0xb   :  { %v2501_v28 = vsub.f32 %v2438_v24, %v2459_v25  ;;  %v2543_v33 = vmul.f32 %v2396_v23, %v2396_v23  ;;  %v4702_v36 = vld [vmem:[%s7578_s1 + $0x44] ss:$16 sps:$4 sm:$0xff]   ;;  %2677 = vadd.xlane.f32.xlu1 %v2626_v27  ;;  %v4704_v38 = vld [vmem:[%s7578_s1 + $0x40] ss:$16 sps:$4 sm:$0xff]   ;;  %v2417_v61 = vsub.f32 %v2333_v19, %v2375_v54  ;;  %v2522_v62 = vsub.f32 %v2438_v24, %v2480_v55  ;;  %v2460_v9 = vld [vmem:[%s7586_s9 + $0x48] sm:$0xff] }
   0xc   :  { %2661 = vadd.xlane.f32.xlu0 %v2619_v32  ;;  %511 = vmatprep.subr.bf16.mxu0 %v4702_v36  ;;  %v4705_v50 = vld [vmem:[%s7578_s1 + $0x64] ss:$16 sps:$4 sm:$0xff]   ;;  %v4707_v51 = vld [vmem:[%s7578_s1 + $0x60] ss:$16 sps:$4 sm:$0xff]   ;;  %v2641_v7 = vadd.f32 %v2599_v57, %v2557_v53  ;;  %v2640_v8 = vadd.f32 %v2598_v59, %v2556_v58  ;;  %v2390_v19 = vsub.f32 %v2327_v14, %v2348_v15  ;;  %v2340_v26 = vld [vmem:[%s7583_s6 + $0x78] sm:$0xff] }
   0xd   :  { %v2585_v37 = vmul.f32 %v2501_v28, %v2501_v28  ;;  %512 = vmatpush1.bf16.msra.mxu0 %v4704_v38  ;;  %v2374_v56 = vld [vmem:[%s7585_s8 + $0xe0] sm:$0xff]  ;;  %v2564_v10 = vmul.f32 %v2417_v61, %v2417_v61  ;;  %v2606_v11 = vmul.f32 %v2522_v62, %v2522_v62  ;;  %v2453_v20 = vld [vmem:[%s7586_s9 + $0x10] sm:$0xff]  ;;  %v2361_v30 = vld [vmem:[%s7585_s8 + $0x78] sm:$0xff] }
   0xe   :  { %513 = vmatprep.subr.bf16.mxu0 %v4705_v50  ;;  %v2479_v60 = vld [vmem:[%s7586_s9 + $0xe0] sm:$0xff]  ;;  %v2416_v63 = vsub.f32 %v4966_v2, %v2374_v56  ;;  %v2355_v2 = vld [vmem:[%s7585_s8 + $0x48] sm:$0xff]  ;;  %v2495_v23 = vsub.f32 %v2432_v16, %v2453_v20  ;;  %v2537_v29 = vmul.f32 %v2390_v19, %v2390_v19  ;;  %v2445_v31 = vld [vmem:[%s7584_s7 + $0x78] sm:$0xff]  ;;  %v2403_v34 = vsub.f32 %v2340_v26, %v2361_v30 }
   0xf   :  { %v2627_v46 = vadd.f32 %v2585_v37, %v2543_v33  ;;  %v2521_v0 = vsub.f32 %v4977_v6, %v2479_v60  ;;  %v4708_v1 = vld [vmem:[%s7578_s1 + $0x84] ss:$16 sps:$4 sm:$0xff]   ;;  %v4710_v3 = vld [vmem:[%s7578_s1 + $0x80] ss:$16 sps:$4 sm:$0xff]   ;;  %v2439_v6 = vld [vmem:[%s7584_s7 + $0x48] sm:$0xff]  ;;  %v2397_v17 = vsub.f32 %v2334_v5, %v2355_v2  ;;  %v2648_v21 = vadd.f32 %v2606_v11, %v2564_v10 }
  0x10   :  { %2663 = vadd.xlane.f32.xlu0 %v2620_v52  ;;  %v2563_v12 = vmul.f32 %v2416_v63, %v2416_v63  ;;  %v2502_v18 = vsub.f32 %v2439_v6, %v2460_v9  ;;  %v4711_v24 = vld [vmem:[%s7578_s1 + $0xa4] ss:$16 sps:$4 sm:$0xff]   ;;  %v4713_v25 = vld [vmem:[%s7578_s1 + $0xa0] ss:$16 sps:$4 sm:$0xff]   ;;  %v2466_v32 = vld [vmem:[%s7586_s9 + $0x78] sm:$0xff]  ;;  %v2579_v33 = vmul.f32 %v2495_v23, %v2495_v23  ;;  %v2550_v43 = vmul.f32 %v2403_v34, %v2403_v34 }
  0x11   :  { %2679 = vadd.xlane.f32.xlu1 %v2627_v46  ;;  %514 = vmatpush1.bf16.msra.mxu0 %v4707_v51  ;;  %v2605_v13 = vmul.f32 %v2521_v0, %v2521_v0  ;;  %v2544_v27 = vmul.f32 %v2397_v17, %v2397_v17  ;;  %v2508_v35 = vsub.f32 %v2445_v31, %v2466_v32  ;;  %v2339_v36 = vld [vmem:[%s7583_s6 + $0x70] sm:$0xff]  ;;  %v2369_v52 = vld [vmem:[%s7585_s8 + $0xb8] sm:$0xff]  ;;  %v2382_v61 = vld [vmem:[%s7585_s8 + $0x120] sm:$0xff] }
  0x12   :  { %515 = vmatprep.subr.bf16.mxu0 %v4708_v1  ;;  %v2586_v28 = vmul.f32 %v2502_v18, %v2502_v18  ;;  %v2360_v37 = vld [vmem:[%s7585_s8 + $0x70] sm:$0xff]  ;;  %v2621_v42 = vadd.f32 %v2579_v33, %v2537_v29  ;;  %v2474_v53 = vld [vmem:[%s7586_s9 + $0xb8] sm:$0xff]  ;;  %v2411_v56 = vsub.f32 %v2327_v14, %v2369_v52  ;;  %v2487_v62 = vld [vmem:[%s7586_s9 + $0x120] sm:$0xff] }
  0x13   :  { %v2647_v22 = vadd.f32 %v2605_v13, %v2563_v12  ;;  %v2444_v38 = vld [vmem:[%s7584_s7 + $0x70] sm:$0xff]  ;;  %v2402_v40 = vsub.f32 %v2339_v36, %v2360_v37  ;;  %v2592_v44 = vmul.f32 %v2508_v35, %v2508_v35  ;;  %v2516_v60 = vsub.f32 %v2432_v16, %v2474_v53  ;;  %v5169_v13 = vld [vmem:[%s7577_s0] sm:$0xff]   ;;  %v2433_v23 = vld [vmem:[%s7584_s7 + $0x18] sm:$0xff] }
  0x14   :  { %2707 = vadd.xlane.f32.xlu0 %v2640_v8  ;;  %v2628_v39 = vadd.f32 %v2586_v28, %v2544_v27  ;;  %v2465_v41 = vld [vmem:[%s7586_s9 + $0x70] sm:$0xff]  ;;  %v2558_v1 = vmul.f32 %v2411_v56, %v2411_v56  ;;  %v2454_v28 = vld [vmem:[%s7586_s9 + $0x18] sm:$0xff]  ;;  %v2370_v29 = vld [vmem:[%s7585_s8 + $0xc0] sm:$0xff] }
  0x15   :  { %2709 = vadd.xlane.f32.xlu1 %v2641_v7  ;;  %516 = vmatpush1.bf16.msra.mxu0 %v4710_v3  ;;  %v2507_v45 = vsub.f32 %v2444_v38, %v2465_v41  ;;  %v4714_v46 = vld [vmem:[%s7578_s1 + $0xc4] ss:$16 sps:$4 sm:$0xff]   ;;  %v4716_v47 = vld [vmem:[%s7578_s1 + $0xc0] ss:$16 sps:$4 sm:$0xff]   ;;  %v2549_v49 = vmul.f32 %v2402_v40, %v2402_v40  ;;  %v2634_v58 = vadd.f32 %v2592_v44, %v2550_v43  ;;  %v2486_v7 = vld [vmem:[%s7586_s9 + $0x118] sm:$0xff] }
  0x16   :  { %517 = vmatprep.subr.bf16.mxu0 %v4711_v24  ;;  %v2376_v48 = vld [vmem:[%s7585_s8 + $0xf0] sm:$0xff]  ;;  %v2424_v3 = vsub.f32 %v2340_v26, %v2382_v61  ;;  %v2600_v8 = vmul.f32 %v2516_v60, %v2516_v60  ;;  %v2528_v10 = vsub.f32 %v2444_v38, %v2486_v7  ;;  %v2475_v30 = vld [vmem:[%s7586_s9 + $0xc0] sm:$0xff]  ;;  %v2383_v43 = vld [vmem:[%s7585_s8 + $0x128] sm:$0xff] }
  0x17   :  { %v2418_v50 = vsub.f32 %v2334_v5, %v2376_v48  ;;  %v2481_v51 = vld [vmem:[%s7586_s9 + $0xf0] sm:$0xff]  ;;  %v2591_v54 = vmul.f32 %v2507_v45, %v2507_v45  ;;  %v2381_v5 = vld [vmem:[%s7585_s8 + $0x118] sm:$0xff]  ;;  %v2341_v32 = vld [vmem:[%s7583_s6 + $0x80] sm:$0xff] }
  0x18   :  { %2722 = vadd.xlane.f32.xlu0 %v2647_v22  ;;  %v2523_v55 = vsub.f32 %v2439_v6, %v2481_v51  ;;  %v4717_v57 = vld [vmem:[%s7578_s1 + $0xe4] ss:$16 sps:$4 sm:$0xff]   ;;  %v4719_v2 = vld [vmem:[%s7578_s1 + $0xe0] ss:$16 sps:$4 sm:$0xff]   ;;  %v2529_v6 = vsub.f32 %v2445_v31, %v2487_v62  ;;  %v2423_v9 = vsub.f32 %v2339_v36, %v2381_v5  ;;  %v2571_v12 = vmul.f32 %v2424_v3, %v2424_v3  ;;  %v2349_v22 = vld [vmem:[%s7585_s8 + $0x18] sm:$0xff] }
  0x19   :  { %2724 = vadd.xlane.f32.xlu1 %v2648_v21  ;;  %518 = vmatpush1.bf16.msra.mxu0 %v4713_v25  ;;  %v2565_v59 = vmul.f32 %v2418_v50, %v2418_v50  ;;  %v2633_v63 = vadd.f32 %v2591_v54, %v2549_v49  ;;  %v5164_v11 = vld [vmem:[%s7583_s6 + $0x50] sm:$0xff]  ;;  %v2642_v18 = vadd.f32 %v2600_v8, %v2558_v1  ;;  %v2328_v21 = vld [vmem:[%s7583_s6 + $0x18] sm:$0xff]  ;;  %v2362_v33 = vld [vmem:[%s7585_s8 + $0x80] sm:$0xff] }
  0x1a   :  { %519 = vmatprep.subr.bf16.mxu0 %v4714_v46  ;;  %v2607_v0 = vmul.f32 %v2523_v55, %v2523_v55  ;;  %v2356_v14 = vld [vmem:[%s7585_s8 + $0x50] sm:$0xff]  ;;  %v2613_v19 = vmul.f32 %v2529_v6, %v2529_v6  ;;  %v2570_v20 = vmul.f32 %v2423_v9, %v2423_v9  ;;  %v2612_v24 = vmul.f32 %v2528_v10, %v2528_v10  ;;  %v2446_v34 = vld [vmem:[%s7584_s7 + $0x80] sm:$0xff]  ;;  %v2488_v44 = vld [vmem:[%s7586_s9 + $0x128] sm:$0xff] }
  0x1b   :  { %v2440_v15 = vld [vmem:[%s7584_s7 + $0x50] sm:$0xff]  ;;  %v2398_v25 = vsub.f32 %v5164_v11, %v2356_v14  ;;  %v2391_v27 = vsub.f32 %v2328_v21, %v2349_v22  ;;  %v2496_v31 = vsub.f32 %v2433_v23, %v2454_v28  ;;  %v2412_v37 = vsub.f32 %v2328_v21, %v2370_v29  ;;  %v2467_v38 = vld [vmem:[%s7586_s9 + $0x80] sm:$0xff]  ;;  %v2377_v48 = vld [vmem:[%s7585_s8 + $0xf8] sm:$0xff] }
  0x1c   :  { %2665 = vadd.xlane.f32.xlu0 %v2621_v42  ;;  %v2461_v16 = vld [vmem:[%s7586_s9 + $0x50] sm:$0xff]  ;;  %v2649_v17 = vadd.f32 %v2607_v0, %v2565_v59  ;;  %v2655_v35 = vadd.f32 %v2613_v19, %v2571_v12  ;;  %v2517_v42 = vsub.f32 %v2433_v23, %v2475_v30  ;;  %v2654_v45 = vadd.f32 %v2612_v24, %v2570_v20  ;;  %v2482_v49 = vld [vmem:[%s7586_s9 + $0xf8] sm:$0xff]  ;;  %v5233_v51 = vld [vmem:[%s7577_s0 + $0x8] sm:$0xff]  }
  0x1d   :  { %2681 = vadd.xlane.f32.xlu1 %v2628_v39  ;;  %520 = vmatpush1.bf16.msra.mxu0 %v4716_v47  ;;  %v2503_v26 = vsub.f32 %v2440_v15, %v2461_v16  ;;  %v2545_v36 = vmul.f32 %v2398_v25, %v2398_v25  ;;  %v2538_v40 = vmul.f32 %v2391_v27, %v2391_v27  ;;  %v5228_v50 = vld [vmem:[%s7583_s6 + $0x58] sm:$0xff]  ;;  %v2329_v61 = vld [vmem:[%s7583_s6 + $0x20] sm:$0xff]  ;;  %v2371_v10 = vld [vmem:[%s7585_s8 + $0xc8] sm:$0xff] }
  0x1e   :  { %521 = vmatprep.subr.bf16.mxu0 %v4717_v57  ;;  %v2580_v41 = vmul.f32 %v2496_v31, %v2496_v31  ;;  %v2404_v46 = vsub.f32 %v2341_v32, %v2362_v33  ;;  %v2509_v47 = vsub.f32 %v2446_v34, %v2467_v38  ;;  %v2425_v52 = vsub.f32 %v2341_v32, %v2383_v43  ;;  %v2357_v54 = vld [vmem:[%s7585_s8 + $0x58] sm:$0xff]  ;;  %v2350_v3 = vld [vmem:[%s7585_s8 + $0x20] sm:$0xff]  ;;  %v2342_v21 = vld [vmem:[%s7583_s6 + $0x88] sm:$0xff] }
  0x1f   :  { %v2587_v39 = vmul.f32 %v2503_v26, %v2503_v26  ;;  %v2530_v53 = vsub.f32 %v2446_v34, %v2488_v44  ;;  %v5241_v55 = vld [vmem:[%s7584_s7 + $0x58] sm:$0xff]  ;;  %v2559_v59 = vmul.f32 %v2412_v37, %v2412_v37  ;;  %v2601_v60 = vmul.f32 %v2517_v42, %v2517_v42  ;;  %v2434_v5 = vld [vmem:[%s7584_s7 + $0x20] sm:$0xff]  ;;  %v2363_v22 = vld [vmem:[%s7585_s8 + $0x88] sm:$0xff] }
  0x20   :  { %2692 = vadd.xlane.f32.xlu0 %v2633_v63  ;;  %v2462_v56 = vld [vmem:[%s7586_s9 + $0x58] sm:$0xff]  ;;  %v2551_v62 = vmul.f32 %v2404_v46, %v2404_v46  ;;  %v2593_v63 = vmul.f32 %v2509_v47, %v2509_v47  ;;  %v2419_v0 = vsub.f32 %v5164_v11, %v2377_v48  ;;  %v2524_v1 = vsub.f32 %v2440_v15, %v2482_v49  ;;  %v2455_v7 = vld [vmem:[%s7586_s9 + $0x20] sm:$0xff]  ;;  %v2476_v15 = vld [vmem:[%s7586_s9 + $0xc8] sm:$0xff] }
  0x21   :  { %2694 = vadd.xlane.f32.xlu1 %v2634_v58  ;;  %522 = vmatpush1.bf16.msra.mxu0 %v4719_v2  ;;  %v2629_v57 = vadd.f32 %v2587_v39, %v2545_v36  ;;  %v2622_v58 = vadd.f32 %v2580_v41, %v2538_v40  ;;  %v2572_v8 = vmul.f32 %v2425_v52, %v2425_v52  ;;  %v4723_v16 = vld [vmem:[%s7578_s1 + $0xc] ss:$16 sps:$4 sm:$0xff]   ;;  %v5290_v28 = vld [vmem:[%s7577_s0 + $0x10] sm:$0xff]   ;;  %v4729_v37 = vld [vmem:[%s7578_s1 + $0x28] ss:$16 sps:$4 sm:$0xff]  }
  0x22   :  { %v2614_v2 = vmul.f32 %v2530_v53, %v2530_v53  ;;  %v2399_v6 = vsub.f32 %v5228_v50, %v2357_v54  ;;  %v2504_v9 = vsub.f32 %v5241_v55, %v2462_v56  ;;  %v2643_v11 = vadd.f32 %v2601_v60, %v2559_v59  ;;  %v2447_v23 = vld [vmem:[%s7584_s7 + $0x88] sm:$0xff]  ;;  %860 = vmatprep.subr.bf16.mxu1 %v4723_v16  ;;  %v2489_v36 = vld [vmem:[%s7586_s9 + $0x130] sm:$0xff]  ;;  %v2378_v40 = vld [vmem:[%s7585_s8 + $0x100] sm:$0xff] }
  0x23   :  { %v2392_v12 = vsub.f32 %v2329_v61, %v2350_v3  ;;  %v2497_v14 = vsub.f32 %v2434_v5, %v2455_v7  ;;  %v2566_v19 = vmul.f32 %v2419_v0, %v2419_v0  ;;  %v2608_v20 = vmul.f32 %v2524_v1, %v2524_v1  ;;  %v2468_v24 = vld [vmem:[%s7586_s9 + $0x88] sm:$0xff]  ;;  %v2483_v41 = vld [vmem:[%s7586_s9 + $0x100] sm:$0xff]  ;;  %v5356_v7 = vld [vmem:[%s7577_s0 + $0x18] sm:$0xff]  }
  0x24   :  { %2711 = vadd.xlane.f32.xlu0 %v2642_v18  ;;  %540 = vmatmul.mubr.bf16.vlgmr.msra.gmra.mrb[0].mxu0 %v5169_v13  ;;  %v2635_v18 = vadd.f32 %v2593_v63, %v2551_v62  ;;  %v2656_v25 = vadd.f32 %v2614_v2, %v2572_v8  ;;  %v2546_v26 = vmul.f32 %v2399_v6, %v2399_v6  ;;  %v4727_v30 = vld [vmem:[%s7578_s1 + $0x2c] ss:$16 sps:$4 sm:$0xff]   ;;  %v5313_v42 = vld [vmem:[%s7583_s6 + $0x60] sm:$0xff]  ;;  %v4732_v59 = vld [vmem:[%s7578_s1 + $0x48] ss:$16 sps:$4 sm:$0xff]  }
  0x25   :  { %2726 = vadd.xlane.f32.xlu1 %v2649_v17  ;;  %549 = vmatprep.mubr.bf16.mxu0 %v4899_v4  ;;  %v4725_v17 = vld [vmem:[%s7578_s1 + $0x8] ss:$16 sps:$4 sm:$0xff]   ;;  %v2588_v27 = vmul.f32 %v2504_v9, %v2504_v9  ;;  %v2413_v29 = vsub.f32 %v2329_v61, %v2371_v10  ;;  %v2539_v31 = vmul.f32 %v2392_v12, %v2392_v12  ;;  %v2358_v43 = vld [vmem:[%s7585_s8 + $0x60] sm:$0xff]  ;;  %v4730_v49 = vld [vmem:[%s7578_s1 + $0x4c] ss:$16 sps:$4 sm:$0xff]  }
  0x26   :  { %861 = vmatpush1.bf16.msra.mxu1 %v4725_v17  ;;  %v2581_v32 = vmul.f32 %v2497_v14, %v2497_v14  ;;  %v2518_v33 = vsub.f32 %v2434_v5, %v2476_v15  ;;  %v2405_v34 = vsub.f32 %v2342_v21, %v2363_v22  ;;  %v2650_v38 = vadd.f32 %v2608_v20, %v2566_v19  ;;  %v5321_v44 = vld [vmem:[%s7584_s7 + $0x60] sm:$0xff]  ;;  %v2435_v63 = vld [vmem:[%s7584_s7 + $0x28] sm:$0xff]  ;;  %v2477_v2 = vld [vmem:[%s7586_s9 + $0xd0] sm:$0xff] }
  0x27   :  { %v2510_v39 = vsub.f32 %v2447_v23, %v2468_v24  ;;  %862 = vmatprep.subr.bf16.mxu1 %v4727_v30  ;;  %v2630_v46 = vadd.f32 %v2588_v27, %v2546_v26  ;;  %v2531_v48 = vsub.f32 %v2447_v23, %v2489_v36  ;;  %v2560_v53 = vmul.f32 %v2413_v29, %v2413_v29  ;;  %v2456_v0 = vld [vmem:[%s7586_s9 + $0x28] sm:$0xff]  ;;  %v2343_v10 = vld [vmem:[%s7583_s6 + $0x90] sm:$0xff]  ;;  %v2385_v22 = vld [vmem:[%s7585_s8 + $0x138] sm:$0xff] }
  0x28   :  { %2737 = vadd.xlane.f32.xlu0 %v2654_v45  ;;  %v2463_v45 = vld [vmem:[%s7586_s9 + $0x60] sm:$0xff]  ;;  %v2623_v52 = vadd.f32 %v2581_v32, %v2539_v31  ;;  %v2602_v54 = vmul.f32 %v2518_v33, %v2518_v33  ;;  %v2552_v56 = vmul.f32 %v2405_v34, %v2405_v34  ;;  %v2420_v61 = vsub.f32 %v5228_v50, %v2378_v40  ;;  %v2372_v50 = vld [vmem:[%s7585_s8 + $0xd0] sm:$0xff]  ;;  %v4736_v12 = vld [vmem:[%s7578_s1 + $0x68] ss:$16 sps:$4 sm:$0xff]  }
  0x29   :  { %2739 = vadd.xlane.f32.xlu1 %v2655_v35  ;;  %v2384_v35 = vld [vmem:[%s7585_s8 + $0x130] sm:$0xff]  ;;  %v2594_v60 = vmul.f32 %v2510_v39, %v2510_v39  ;;  %v2525_v62 = vsub.f32 %v5241_v55, %v2483_v41  ;;  %v2400_v1 = vsub.f32 %v5313_v42, %v2358_v43  ;;  %v2505_v3 = vsub.f32 %v5321_v44, %v2463_v45  ;;  %v4737_v23 = vld [vmem:[%s7578_s1 + $0x8c] ss:$16 sps:$4 sm:$0xff]   ;;  %v4739_v31 = vld [vmem:[%s7578_s1 + $0x88] ss:$16 sps:$4 sm:$0xff]  }
  0x2a   :  { %v2426_v47 = vsub.f32 %v2342_v21, %v2384_v35  ;;  %863 = vmatpush1.bf16.msra.mxu1 %v4729_v37  ;;  %v2615_v5 = vmul.f32 %v2531_v48, %v2531_v48  ;;  %v2644_v6 = vadd.f32 %v2602_v54, %v2560_v53  ;;  %v2498_v9 = vsub.f32 %v2435_v63, %v2456_v0  ;;  %v2364_v17 = vld [vmem:[%s7585_s8 + $0x90] sm:$0xff]  ;;  %v2490_v29 = vld [vmem:[%s7586_s9 + $0x138] sm:$0xff]  ;;  %v2379_v30 = vld [vmem:[%s7585_s8 + $0x108] sm:$0xff] }
  0x2b   :  { %864 = vmatprep.subr.bf16.mxu1 %v4730_v49  ;;  %v2636_v14 = vadd.f32 %v2594_v60, %v2552_v56  ;;  %v2567_v15 = vmul.f32 %v2420_v61, %v2420_v61  ;;  %v2609_v16 = vmul.f32 %v2525_v62, %v2525_v62  ;;  %v2469_v19 = vld [vmem:[%s7586_s9 + $0x90] sm:$0xff]  ;;  %v2547_v20 = vmul.f32 %v2400_v1, %v2400_v1  ;;  %v2484_v35 = vld [vmem:[%s7586_s9 + $0x108] sm:$0xff]  ;;  %v5437_v61 = vld [vmem:[%s7577_s0 + $0x20] sm:$0xff]  }
  0x2c   :  { %2667 = vadd.xlane.f32.xlu0 %v2622_v58  ;;  %550 = vmatmul.mubr.bf16.gmra.mrb[4].mxu0 %v5233_v51  ;;  %v2351_v58 = vld [vmem:[%s7585_s8 + $0x28] sm:$0xff]  ;;  %v2573_v55 = vmul.f32 %v2426_v47, %v2426_v47  ;;  %v2589_v21 = vmul.f32 %v2505_v3, %v2505_v3  ;;  %v2519_v27 = vsub.f32 %v2435_v63, %v2477_v2  ;;  %v2331_v41 = vld [vmem:[%s7583_s6 + $0x30] sm:$0x1f]  ;;  %v2478_v1 = vld [vmem:[%s7586_s9 + $0xd8] sm:$0x1f] }
  0x2d   :  { %2683 = vadd.xlane.f32.xlu1 %v2629_v57  ;;  %559 = vmatprep.mubr.bf16.mxu0 %v4899_v4  ;;  %v2330_v57 = vld [vmem:[%s7583_s6 + $0x28] sm:$0xff]  ;;  %v2582_v32 = vmul.f32 %v2498_v9, %v2498_v9  ;;  %v2406_v33 = vsub.f32 %v2343_v10, %v2364_v17  ;;  %v2651_v40 = vadd.f32 %v2609_v16, %v2567_v15  ;;  %v2352_v43 = vld [vmem:[%s7585_s8 + $0x30] sm:$0x1f]  ;;  %v2449_v15 = vld [vmem:[%s7584_s7 + $0x98] sm:$0xff] }
  0x2e   :  { %v2393_v8 = vsub.f32 %v2330_v57, %v2351_v58  ;;  %865 = vmatpush1.bf16.msra.mxu1 %v4732_v59  ;;  %v2657_v24 = vadd.f32 %v2615_v5, %v2573_v55  ;;  %v2414_v26 = vsub.f32 %v2330_v57, %v2372_v50  ;;  %v5400_v36 = vld [vmem:[%s7583_s6 + $0x68] sm:$0x1f]  ;;  %v2436_v45 = vld [vmem:[%s7584_s7 + $0x30] sm:$0x1f]  ;;  %v2603_v49 = vmul.f32 %v2519_v27, %v2519_v27  ;;  %v2470_v16 = vld [vmem:[%s7586_s9 + $0x98] sm:$0xff] }
  0x2f   :  { %v2359_v37 = vld [vmem:[%s7585_s8 + $0x68] sm:$0x1f]  ;;  %v2457_v47 = vld [vmem:[%s7586_s9 + $0x30] sm:$0x1f]  ;;  %v2553_v57 = vmul.f32 %v2406_v33, %v2406_v33  ;;  %v2421_v59 = vsub.f32 %v5313_v42, %v2379_v30  ;;  %v2526_v62 = vsub.f32 %v5321_v44, %v2484_v35  ;;  %v2373_v42 = vld [vmem:[%s7585_s8 + $0xd8] sm:$0x1f]  ;;  %v2394_v3 = vsub.f32 %v2331_v41, %v2352_v43 }
  0x30   :  { %2696 = vadd.xlane.f32.xlu0 %v2635_v18  ;;  %v2448_v18 = vld [vmem:[%s7584_s7 + $0x90] sm:$0xff]  ;;  %v2464_v39 = vld [vmem:[%s7586_s9 + $0x68] sm:$0x1f]  ;;  %v2561_v48 = vmul.f32 %v2414_v26, %v2414_v26  ;;  %v2401_v63 = vsub.f32 %v5400_v36, %v2359_v37  ;;  %v2499_v50 = vsub.f32 %v2436_v45, %v2457_v47  ;;  %v2344_v44 = vld [vmem:[%s7583_s6 + $0x98] sm:$0xff]  ;;  %v2512_v35 = vsub.f32 %v2449_v15, %v2470_v16 }
  0x31   :  { %2713 = vadd.xlane.f32.xlu1 %v2643_v11  ;;  %v4734_v11 = vld [vmem:[%s7578_s1 + $0x6c] ss:$16 sps:$4 sm:$0xff]   ;;  %v2511_v34 = vsub.f32 %v2448_v18, %v2469_v19  ;;  %v2532_v53 = vsub.f32 %v2448_v18, %v2490_v29  ;;  %v4743_v60 = vld [vmem:[%s7578_s1 + $0xa8] ss:$16 sps:$4 sm:$0xff]   ;;  %v2610_v17 = vmul.f32 %v2526_v62, %v2526_v62  ;;  %v2491_v29 = vld [vmem:[%s7586_s9 + $0x140] sm:$0xff] }
  0x32   :  { %866 = vmatprep.subr.bf16.mxu1 %v4734_v11  ;;  %v4741_v54 = vld [vmem:[%s7578_s1 + $0xac] ss:$16 sps:$4 sm:$0xff]   ;;  %v2645_v55 = vadd.f32 %v2603_v49, %v2561_v48  ;;  %v2415_v11 = vsub.f32 %v2331_v41, %v2373_v42  ;;  %v2548_v18 = vmul.f32 %v2401_v63, %v2401_v63  ;;  %v2485_v30 = vld [vmem:[%s7586_s9 + $0x110] sm:$0x1f] }
  0x33   :  { %867 = vmatpush1.bf16.msra.mxu1 %v4736_v12  ;;  %v2595_v58 = vmul.f32 %v2511_v34, %v2511_v34  ;;  %v4744_v2 = vld [vmem:[%s7578_s1 + $0xcc] ss:$16 sps:$4 sm:$0xff]   ;;  %v2520_v12 = vsub.f32 %v2436_v45, %v2478_v1  ;;  %v2366_v45 = vld [vmem:[%s7585_s8 + $0xa0] sm:$0x1f] }
  0x34   :  { %2728 = vadd.xlane.f32.xlu0 %v2650_v38  ;;  %560 = vmatmul.mubr.bf16.gmra.mrb[8].mxu0 %v5290_v28  ;;  %v5408_v38 = vld [vmem:[%s7584_s7 + $0x68] sm:$0x1f]  ;;  %v2562_v33 = vmul.f32 %v2415_v11, %v2415_v11 }
  0x35   :  { %2741 = vadd.xlane.f32.xlu1 %v2656_v25  ;;  %569 = vmatprep.mubr.bf16.mxu0 %v4899_v4  ;;  %v2540_v25 = vmul.f32 %v2393_v8, %v2393_v8  ;;  %v2506_v0 = vsub.f32 %v5408_v38, %v2464_v39  ;;  %v2616_v8 = vmul.f32 %v2532_v53, %v2532_v53  ;;  %v5480_v26 = vld [vmem:[%s7577_s0 + $0x28] sm:$0xff]   ;;  %v2450_v39 = vld [vmem:[%s7584_s7 + $0xa0] sm:$0x1f] }
  0x36   :  { %868 = vmatprep.subr.bf16.mxu1 %v4737_v23  ;;  %v2637_v9 = vadd.f32 %v2595_v58, %v2553_v57  ;;  %v2386_v23 = vld [vmem:[%s7585_s8 + $0x140] sm:$0xff]  ;;  %v2604_v34 = vmul.f32 %v2520_v12, %v2520_v12  ;;  %v2387_v37 = vld [vmem:[%s7585_s8 + $0x148] sm:$0x1f]  ;;  %v2527_v49 = vsub.f32 %v5408_v38, %v2485_v30  ;;  %v2533_v57 = vsub.f32 %v2449_v15, %v2491_v29  ;;  %v4751_v12 = vld [vmem:[%s7577_s0 + $0x38] sm:$0xff]  }
  0x37   :  { %869 = vmatpush1.bf16.msra.mxu1 %v4739_v31  ;;  %v2624_v56 = vadd.f32 %v2582_v32, %v2540_v25  ;;  %v2590_v19 = vmul.f32 %v2506_v0, %v2506_v0  ;;  %v4750_v31 = vld [vmem:[%s7578_s1 + $0xe8] ss:$16 sps:$4 sm:$0xff]   ;;  %v2345_v32 = vld [vmem:[%s7583_s6 + $0xa0] sm:$0x1f]  ;;  %v2428_v53 = vsub.f32 %v2344_v44, %v2386_v23 }
  0x38   :  { %2669 = vadd.xlane.f32.xlu0 %v2623_v52  ;;  %v2427_v52 = vsub.f32 %v2343_v10, %v2385_v22  ;;  %870 = vmatprep.subr.bf16.mxu1 %v4741_v54  ;;  %v2568_v10 = vmul.f32 %v2421_v59, %v2421_v59  ;;  %v2583_v22 = vmul.f32 %v2499_v50, %v2499_v50 }
  0x39   :  { %2685 = vadd.xlane.f32.xlu1 %v2630_v46  ;;  %v2631_v46 = vadd.f32 %v2589_v21, %v2547_v20  ;;  %v2380_v20 = vld [vmem:[%s7585_s8 + $0x110] sm:$0x1f]  ;;  %v2541_v21 = vmul.f32 %v2394_v3, %v2394_v3  ;;  %v2632_v43 = vadd.f32 %v2590_v19, %v2548_v18  ;;  %v2646_v54 = vadd.f32 %v2604_v34, %v2562_v33 }
  0x3a   :  { %v2574_v5 = vmul.f32 %v2427_v52, %v2427_v52  ;;  %v2652_v41 = vadd.f32 %v2610_v17, %v2568_v10  ;;  %v2422_v48 = vsub.f32 %v5400_v36, %v2380_v20  ;;  %v2429_v58 = vsub.f32 %v2345_v32, %v2387_v37 }
  0x3b   :  { %871 = vmatpush1.bf16.msra.mxu1 %v4743_v60  ;;  %v2625_v47 = vadd.f32 %v2583_v22, %v2541_v21  ;;  %v2689_v59 = vsel %vm2673_vm0, %v2632_v43, 0.0  ;;  %v2408_v62 = vsub.f32 %v2345_v32, %v2366_v45  ;;  %v2611_v0 = vmul.f32 %v2527_v49, %v2527_v49 }
  0x3c   :  { %2698 = vadd.xlane.f32.xlu0 %v2636_v14  ;;  %570 = vmatmul.mubr.bf16.gmra.mrb[12].mxu0 %v5356_v7  ;;  %v2365_v14 = vld [vmem:[%s7585_s8 + $0x98] sm:$0xff]  ;;  %v2658_v25 = vadd.f32 %v2616_v8, %v2574_v5  ;;  %v2569_v38 = vmul.f32 %v2422_v48, %v2422_v48  ;;  %v2719_v42 = vsel %vm2673_vm0, %v2646_v54, 0.0  ;;  %v2575_v3 = vmul.f32 %v2428_v53, %v2428_v53 }
  0x3d   :  { %2715 = vadd.xlane.f32.xlu1 %v2644_v6  ;;  %579 = vmatprep.mubr.bf16.mxu0 %v4899_v4  ;;  %v4746_v6 = vld [vmem:[%s7578_s1 + $0xc8] ss:$16 sps:$4 sm:$0xff]   ;;  %v2407_v27 = vsub.f32 %v2344_v44, %v2365_v14  ;;  %v2674_v36 = vsel %vm2673_vm0, %v2625_v47, 0.0  ;;  %v2617_v50 = vmul.f32 %v2533_v57, %v2533_v57  ;;  %v2576_v5 = vmul.f32 %v2429_v58, %v2429_v58 }
  0x3e   :  { %872 = vmatprep.subr.bf16.mxu1 %v4744_v2  ;;  %v2555_v44 = vmul.f32 %v2408_v62, %v2408_v62 }
  0x3f   :  { %873 = vmatpush1.bf16.msra.mxu1 %v4746_v6  ;;  %v2554_v52 = vmul.f32 %v2407_v27, %v2407_v27  ;;  %v2653_v6 = vadd.f32 %v2611_v0, %v2569_v38 }
  0x40   :  { %2730 = vadd.xlane.f32.xlu0 %v2651_v40  ;;  %v2492_v40 = vld [vmem:[%s7586_s9 + $0x148] sm:$0x1f] }
  0x41   :  { %2743 = vadd.xlane.f32.xlu1 %v2657_v24  ;;  %v4748_v24 = vld [vmem:[%s7578_s1 + $0xec] ss:$16 sps:$4 sm:$0xff]   ;;  %v2534_v60 = vsub.f32 %v2450_v39, %v2492_v40  ;;  %v2734_v11 = vsel %vm2673_vm0, %v2653_v6, 0.0 }
  0x42   :  { %874 = vmatprep.subr.bf16.mxu1 %v4748_v24 }
  0x43   :  { %875 = vmatpush1.bf16.msra.mxu1 %v4750_v31  ;;  %v2618_v8 = vmul.f32 %v2534_v60, %v2534_v60 }
  0x44   :  { %2671 = vadd.xlane.f32.xlu0 %v2624_v56  ;;  %580 = vmatmul.mubr.bf16.gmra.mrb[16].mxu0 %v5437_v61  ;;  %v2596_v56 = vmul.f32 %v2512_v35, %v2512_v35 }
  0x45   :  { %2687 = vadd.xlane.f32.xlu1 %v2631_v46  ;;  %589 = vmatprep.mubr.bf16.mxu0 %v4899_v4  ;;  %v2471_v46 = vld [vmem:[%s7586_s9 + $0xa0] sm:$0x1f] }
  0x46   :  { %v2513_v63 = vsub.f32 %v2450_v39, %v2471_v46  ;;  %893 = vmatmul.mubr.bf16.vlgmr.msra.gmra.mrb[0].mxu1 %v5169_v13  ;;  %v2638_v1 = vadd.f32 %v2596_v56, %v2554_v52  ;;  %v2659_v13 = vadd.f32 %v2617_v50, %v2575_v3 }
  0x47   :  { %902 = vmatprep.mubr.bf16.mxu1 %v4899_v4 }
  0x48   :  { %2700 = vadd.xlane.f32.xlu0 %v2637_v9  ;;  %v2597_v2 = vmul.f32 %v2513_v63, %v2513_v63  ;;  %v2660_v9 = vadd.f32 %v2618_v8, %v2576_v5 }
  0x49   :  { %2717 = vadd.xlane.f32.xlu1 %v2645_v55  ;;  %v4747_v55 = vld [vmem:[%s7577_s0 + $0x30] sm:$0xff]  }
  0x4a   :  { %v2639_v10 = vadd.f32 %v2597_v2, %v2555_v44  ;;  %v2749_v14 = vsel %vm2673_vm0, %v2660_v9, 0.0 }
  0x4c   :  { %2732 = vadd.xlane.f32.xlu0 %v2652_v41  ;;  %590 = vmatmul.mubr.bf16.gmra.mrb[20].mxu0 %v5480_v26  ;;  %v2704_v15 = vsel %vm2673_vm0, %v2639_v10, 0.0 }
  0x4d   :  { %2745 = vadd.xlane.f32.xlu1 %v2658_v25  ;;  %599 = vmatprep.mubr.bf16.mxu0 %v4899_v4 }
  0x4e   :  { %903 = vmatmul.mubr.bf16.gmra.mrb[4].mxu1 %v5233_v51  ;;  %v4752_v51 = vld [vmem:[%s7577_s0 + $0x40] sm:$0xff]  }
  0x4f   :  { %912 = vmatprep.mubr.bf16.mxu1 %v4899_v4 }
  0x50   :  { %2675 = vadd.xlane.f32.xlu0 %v2674_v36 }
  0x51   :  { %2690 = vadd.xlane.f32.xlu1 %v2689_v59 }
  0x54   :  { %2702 = vadd.xlane.f32.xlu0 %v2638_v1  ;;  %600 = vmatmul.mubr.bf16.gmra.mrb[24].mxu0 %v4747_v55 }
  0x55   :  { %2720 = vadd.xlane.f32.xlu1 %v2719_v42  ;;  %609 = vmatprep.mubr.bf16.mxu0 %v4899_v4 }
  0x56   :  { %913 = vmatmul.mubr.bf16.gmra.mrb[8].mxu1 %v5290_v28 }
  0x57   :  { %922 = vmatprep.mubr.bf16.mxu1 %v4899_v4 }
  0x58   :  { %2735 = vadd.xlane.f32.xlu0 %v2734_v11 }
  0x59   :  { %2747 = vadd.xlane.f32.xlu1 %v2659_v13 }
  0x5c   :  { %2705 = vadd.xlane.f32.xlu0 %v2704_v15  ;;  %610 = vmatmul.mubr.bf16.gmra.mrb[28].mxu0 %v4751_v12 }
  0x5d   :  { %2750 = vadd.xlane.f32.xlu1 %v2749_v14  ;;  %619 = vmatprep.mubr.bf16.mxu0 %v4899_v4 }
  0x64   :  { %620 = vmatmul.mubr.bf16.gmra.mrb[32].mxu0 %v4752_v51 }
  0x65   :  { %15 = vsyncpa [#allocation3], 0  ;;  %629 = vmatprep.mubr.bf16.mxu0 %v4899_v4  ;;  %923 = vmatmul.mubr.bf16.gmra.mrb[12].mxu1 %v5356_v7  ;;  %v4753_v16 = vld [vmem:[%s7577_s0 + $0x48] sm:$0xff]   ;;  %v4754_v28 = vld [vmem:[%s7577_s0 + $0x50] sm:$0xff]   ;;  %v135_v19 = vlaneseq }
  0x66   :  { %932 = vmatprep.mubr.bf16.mxu1 %v4899_v4  ;;  %v5554_v7 = vld [vmem:[%s7577_s0 + $0x58] sm:$0xff]   ;;  %v5570_v17 = vld [vmem:[%s7577_s0 + $0x68] sm:$0xff]   ;;  %v5578_v18 = vld [vmem:[%s7577_s0 + $0x70] sm:$0xff]  }
  0x67   :  { %v5588_v21 = vld [vmem:[%s7577_s0 + $0x78] sm:$0xff]   ;;  %v5591_v22 = vand.u32 127, %v135_v19  ;;  %v5599_v25 = vshrl.u32 %v135_v19, 7  ;;  %v5624_v39 = vld [vmem:[%s7577_s0 + $0x80] sm:$0xff]   ;;  %v5699_v8 = vld [vmem:[%s7577_s0 + $0x88] sm:$0xff]  }
  0x68   :  { %v133_v40 = vld [vmem:[%s7579_s2] sm:$0xf] }
  0x69   :  { %7609 = vst [vmem:[#allocation5_spill] sm:$0xff] %v5591_v22  ;;  %7610 = vst [vmem:[#allocation6_spill] sm:$0xff] %v5599_v25  ;;  %v3101_v29 = vadd.s32 4294967280, %v5591_v22  ;;  %v3108_v30 = vadd.s32 4294967272, %v5591_v22  ;;  %v3115_v31 = vadd.s32 4294967264, %v5591_v22  ;;  %v3122_v32 = vadd.s32 4294967256, %v5591_v22 }
  0x6a   :  { %v5613_v33 = vsub.s32 0, %v5599_v25  ;;  %v5616_v34 = vsub.s32 1, %v5599_v25  ;;  %v3129_v35 = vadd.s32 4294967248, %v5591_v22  ;;  %v5631_v41 = vsub.s32 %v5591_v22, %v5599_v25 }
  0x6b   :  { %v5640_v46 = vsub.s32 %v3101_v29, %v5599_v25  ;;  %v5644_v47 = vsub.s32 %v3108_v30, %v5599_v25  ;;  %v5647_v48 = vsub.s32 %v3115_v31, %v5599_v25  ;;  %v5650_v49 = vsub.s32 %v3122_v32, %v5599_v25  ;;  %v4776_v30 = vld [vmem:[%s7580_s3] sm:$0xff]  }
  0x6c   :  { %630 = vmatmul.mubr.bf16.gmra.mrb[36].mxu0 %v4753_v16  ;;  %7611 = vst [vmem:[#allocation7_spill] sm:$0xff] %v5631_v41  ;;  %v5654_v53 = vrot.slane %v133_v40, %v5613_v33  ;;  %v5657_v54 = vrot.slane %v133_v40, %v5616_v34  ;;  %v5660_v56 = vsub.s32 %v3129_v35, %v5599_v25 }
  0x6d   :  { %639 = vmatprep.mubr.bf16.mxu0 %v4899_v4  ;;  %933 = vmatmul.mubr.bf16.gmra.mrb[16].mxu1 %v5437_v61  ;;  %v5562_v61 = vld [vmem:[%s7577_s0 + $0x60] sm:$0xff]   ;;  %7613 = vst [vmem:[#allocation9_spill] sm:$0xff] %v5640_v46  ;;  %7614 = vst [vmem:[#allocation10_spill] sm:$0xff] %v5644_v47 }
  0x6e   :  { %942 = vmatprep.mubr.bf16.mxu1 %v4899_v4  ;;  %7615 = vst [vmem:[#allocation11_spill] sm:$0xff] %v5647_v48  ;;  %7616 = vst [vmem:[#allocation12_spill] sm:$0xff] %v5650_v49  ;;  %4607 = vmatprep.subr.bf16.mxu0 %v4776_v30 }
  0x6f   :  { %7617 = vst [vmem:[#allocation13_spill] sm:$0xff] %v5660_v56  ;;  %4608 = vmatpush3.bf16.msra.mxu0 %v4776_v30 }
  0x74   :  { %640 = vmatmul.mubr.bf16.gmra.mrb[40].mxu0 %v4754_v28 }
  0x75   :  { %649 = vmatprep.mubr.bf16.mxu0 %v4899_v4  ;;  %943 = vmatmul.mubr.bf16.gmra.mrb[20].mxu1 %v5480_v26  ;;  %v3094_v26 = vadd.s32 4294967288, %v5591_v22 }
  0x76   :  { %952 = vmatprep.mubr.bf16.mxu1 %v4899_v4 }
  0x77   :  { %v5634_v43 = vsub.s32 %v3094_v26, %v5599_v25 }
  0x79   :  { %7612 = vst [vmem:[#allocation8_spill] sm:$0xff] %v5634_v43 }
  0x7c   :  { %650 = vmatmul.mubr.bf16.gmra.mrb[44].mxu0 %v5554_v7 }
  0x7d   :  { %659 = vmatprep.mubr.bf16.mxu0 %v4899_v4  ;;  %953 = vmatmul.mubr.bf16.gmra.mrb[24].mxu1 %v4747_v55 }
  0x7e   :  { %962 = vmatprep.mubr.bf16.mxu1 %v4899_v4 }
  0x84   :  { %660 = vmatmul.mubr.bf16.gmra.mrb[48].mxu0 %v5562_v61 }
  0x85   :  { %669 = vmatprep.mubr.bf16.mxu0 %v4899_v4  ;;  %963 = vmatmul.mubr.bf16.gmra.mrb[28].mxu1 %v4751_v12 }
  0x86   :  { %972 = vmatprep.mubr.bf16.mxu1 %v4899_v4 }
  0x8c   :  { %670 = vmatmul.mubr.bf16.gmra.mrb[52].mxu0 %v5570_v17 }
  0x8d   :  { %679 = vmatprep.mubr.bf16.mxu0 %v4899_v4  ;;  %973 = vmatmul.mubr.bf16.gmra.mrb[32].mxu1 %v4752_v51 }
  0x8e   :  { %982 = vmatprep.mubr.bf16.mxu1 %v4899_v4 }
  0x94   :  { %680 = vmatmul.mubr.bf16.gmra.mrb[56].mxu0 %v5578_v18 }
  0x95   :  { %689 = vmatprep.mubr.bf16.mxu0 %v4899_v4  ;;  %983 = vmatmul.mubr.bf16.gmra.mrb[36].mxu1 %v4753_v16 }
  0x96   :  { %992 = vmatprep.mubr.bf16.mxu1 %v4899_v4 }
  0x98   :  { %v5583_v20 = vpop.xlane.xlu1 %2677 }
  0x99   :  { %4784 = vrsqrt.f32 %v5583_v20  ;;  %v5593_v23 = vpop.xlane.xlu0 %2661  ;;  %vm2803_vm1 = vcmp.eq.f32.partialorder %v5583_v20, inf  ;;  %vm2805_vm2 = vcmp.eq.f32.partialorder %v5583_v20, 0.0  ;;  %v2806_v59 = vand.u32 2147483648, %v5583_v20 }
  0x9a   :  { %4786 = vrsqrt.f32 %v5593_v23  ;;  %vm2754_vm3 = vcmp.eq.f32.partialorder %v5593_v23, inf  ;;  %vm2756_vm4 = vcmp.eq.f32.partialorder %v5593_v23, 0.0  ;;  %v2757_v63 = vand.u32 2147483648, %v5593_v23 }
  0x9c   :  { %690 = vmatmul.mubr.bf16.gmra.mrb[60].mxu0 %v5588_v21 }
  0x9d   :  { %v5603_v27 = vpop.xlane.xlu0 %2663  ;;  %699 = vmatprep.mubr.bf16.mxu0 %v4899_v4  ;;  %993 = vmatmul.mubr.bf16.gmra.mrb[40].mxu1 %v4754_v28 }
  0x9e   :  { %v5596_v24 = vpop.xlane.xlu1 %2679  ;;  %1002 = vmatprep.mubr.bf16.mxu1 %v4899_v4  ;;  %vm2761_vm7 = vcmp.eq.f32.partialorder %v5603_v27, inf  ;;  %vm2763_vm8 = vcmp.eq.f32.partialorder %v5603_v27, 0.0  ;;  %v2764_v42 = vand.u32 2147483648, %v5603_v27 }
  0x9f   :  { %4788 = vrsqrt.f32 %v5596_v24  ;;  %vm2810_vm5 = vcmp.eq.f32.partialorder %v5596_v24, inf  ;;  %vm2812_vm6 = vcmp.eq.f32.partialorder %v5596_v24, 0.0  ;;  %v2813_v38 = vand.u32 2147483648, %v5596_v24 }
  0xa0   :  { %4790 = vrsqrt.f32 %v5603_v27 }
  0xa1   :  { %v5637_v45 = vpop.xlane.xlu0 %2707 }
  0xa2   :  { %v5619_v37 = vpop.xlane.xlu1 %2709  ;;  %vm2901_vm11 = vcmp.eq.f32.partialorder %v5637_v45, inf  ;;  %vm2903_vm12 = vcmp.eq.f32.partialorder %v5637_v45, 0.0  ;;  %v2904_v13 = vand.u32 2147483648, %v5637_v45 }
  0xa3   :  { %4792 = vrsqrt.f32 %v5619_v37  ;;  %v4785_v52 = vpop.eup %4784  ;;  %vm2908_vm9 = vcmp.eq.f32.partialorder %v5619_v37, inf  ;;  %vm2910_vm10 = vcmp.eq.f32.partialorder %v5619_v37, 0.0  ;;  %v2911_v2 = vand.u32 2147483648, %v5619_v37 }
  0xa4   :  { %4794 = vrsqrt.f32 %v5637_v45  ;;  %v4787_v57 = vpop.eup %4786  ;;  %v2802_v58 = vmul.f32 %v4785_v52, %v5583_v20  ;;  %700 = vmatmul.mubr.bf16.gmra.mrb[64].mxu0 %v5624_v39 }
  0xa5   :  { %v2753_v62 = vmul.f32 %v4787_v57, %v5593_v23  ;;  %v5673_v36 = vpop.xlane.xlu0 %2722  ;;  %709 = vmatprep.mubr.bf16.mxu0 %v4899_v4  ;;  %1003 = vmatmul.mubr.bf16.gmra.mrb[44].mxu1 %v5554_v7  ;;  %v5773_v57 = vld [vmem:[%s7577_s0 + $0x90] sm:$0xff]  }
  0xa6   :  { %v5666_v60 = vpop.xlane.xlu1 %2724  ;;  %1012 = vmatprep.mubr.bf16.mxu1 %v4899_v4  ;;  %v2804_v3 = vsel %vm2803_vm1, %v5583_v20, %v2802_v58  ;;  %vm2950_vm15 = vcmp.eq.f32.partialorder %v5673_v36, inf  ;;  %vm2952_vm0 = vcmp.eq.f32.partialorder %v5673_v36, 0.0  ;;  %v2953_v19 = vand.u32 2147483648, %v5673_v36 }
  0xa7   :  { %4796 = vrsqrt.f32 %v5666_v60  ;;  %v2755_v50 = vsel %vm2754_vm3, %v5593_v23, %v2753_v62  ;;  %vm2957_vm13 = vcmp.eq.f32.partialorder %v5666_v60, inf  ;;  %v5713_v10 = vsel %vm2805_vm2, %v2806_v59, %v2804_v3 }
  0xa8   :  { %4798 = vrsqrt.f32 %v5673_v36  ;;  %v5717_v11 = vsel %vm2756_vm4, %v2757_v63, %v2755_v50  ;;  %vm2959_vm14 = vcmp.eq.f32.partialorder %v5666_v60, 0.0  ;;  %v2960_v16 = vand.u32 2147483648, %v5666_v60 }
  0xa9   :  { %v4789_v0 = vpop.eup %4788  ;;  %v5705_v6 = vpop.xlane.xlu0 %2665 }
  0xaa   :  { %v4791_v1 = vpop.eup %4790  ;;  %v2809_v55 = vmul.f32 %v4789_v0, %v5596_v24  ;;  %v5694_v5 = vpop.xlane.xlu1 %2681  ;;  %vm2768_vm3 = vcmp.eq.f32.partialorder %v5705_v6, inf  ;;  %vm2770_vm4 = vcmp.eq.f32.partialorder %v5705_v6, 0.0  ;;  %v2771_v0 = vand.u32 2147483648, %v5705_v6 }
  0xab   :  { %v2760_v44 = vmul.f32 %v4791_v1, %v5603_v27  ;;  %4800 = vrsqrt.f32 %v5694_v5  ;;  %vm2817_vm1 = vcmp.eq.f32.partialorder %v5694_v5, inf  ;;  %vm2819_vm2 = vcmp.eq.f32.partialorder %v5694_v5, 0.0 }
  0xac   :  { %4802 = vrsqrt.f32 %v5705_v6  ;;  %v2811_v12 = vsel %vm2810_vm5, %v5596_v24, %v2809_v55  ;;  %710 = vmatmul.mubr.bf16.gmra.mrb[68].mxu0 %v5699_v8  ;;  %v2820_v52 = vand.u32 2147483648, %v5694_v5 }
  0xad   :  { %v4793_v9 = vpop.eup %4792  ;;  %v2762_v15 = vsel %vm2761_vm7, %v5603_v27, %v2760_v44  ;;  %v5736_v20 = vpop.xlane.xlu0 %2692  ;;  %719 = vmatprep.mubr.bf16.mxu0 %v4899_v4  ;;  %1013 = vmatmul.mubr.bf16.gmra.mrb[48].mxu1 %v5562_v61  ;;  %v5746_v29 = vsel %vm2812_vm6, %v2813_v38, %v2811_v12 }
  0xae   :  { %v4795_v14 = vpop.eup %4794  ;;  %v2907_v51 = vmul.f32 %v4793_v9, %v5619_v37  ;;  %v5729_v28 = vpop.xlane.xlu1 %2694  ;;  %1022 = vmatprep.mubr.bf16.mxu1 %v4899_v4  ;;  %v5755_v61 = vsel %vm2763_vm8, %v2764_v42, %v2762_v15  ;;  %vm2852_vm7 = vcmp.eq.f32.partialorder %v5736_v20, inf  ;;  %vm2854_vm8 = vcmp.eq.f32.partialorder %v5736_v20, 0.0 }
  0xaf   :  { %v2900_v7 = vmul.f32 %v4795_v14, %v5637_v45  ;;  %4804 = vrsqrt.f32 %v5729_v28  ;;  %vm2859_vm5 = vcmp.eq.f32.partialorder %v5729_v28, inf  ;;  %vm2861_vm6 = vcmp.eq.f32.partialorder %v5729_v28, 0.0 }
  0xb0   :  { %4806 = vrsqrt.f32 %v5736_v20  ;;  %v2909_v32 = vsel %vm2908_vm9, %v5619_v37, %v2907_v51  ;;  %v2862_v44 = vand.u32 2147483648, %v5729_v28  ;;  %v2855_v15 = vand.u32 2147483648, %v5736_v20  ;;  %v4777_v51 = vld [vmem:[%s7580_s3 + $0x8] sm:$0xff]  }
  0xb1   :  { %v4797_v31 = vpop.eup %4796  ;;  %v2902_v35 = vsel %vm2901_vm11, %v5637_v45, %v2900_v7  ;;  %v5780_v62 = vpop.xlane.xlu0 %2711  ;;  %v5786_v38 = vsel %vm2910_vm10, %v2911_v2, %v2909_v32  ;;  %4609 = vmatprep.subr.bf16.mxu0 %v4777_v51 }
  0xb2   :  { %v4799_v24 = vpop.eup %4798  ;;  %v2956_v40 = vmul.f32 %v4797_v31, %v5666_v60  ;;  %v5768_v27 = vpop.xlane.xlu1 %2726  ;;  %v5792_v1 = vsel %vm2903_vm12, %v2904_v13, %v2902_v35  ;;  %v3211_v2 = vrot.slane %v5786_v38, %v5634_v43  ;;  %vm2915_vm11 = vcmp.eq.f32.partialorder %v5780_v62, inf  ;;  %4610 = vmatpush3.bf16.msra.mxu0 %v4777_v51 }
  0xb3   :  { %v2949_v59 = vmul.f32 %v4799_v24, %v5673_v36  ;;  %4808 = vrsqrt.f32 %v5768_v27  ;;  %v3207_v12 = vrot.slane %v5792_v1, %v5631_v41  ;;  %vm2964_vm9 = vcmp.eq.f32.partialorder %v5768_v27, inf }
  0xb4   :  { %4810 = vrsqrt.f32 %v5780_v62  ;;  %v2958_v3 = vsel %vm2957_vm13, %v5666_v60, %v2956_v40  ;;  %720 = vmatmul.mubr.bf16.gmra.mrb[72].mxu0 %v5773_v57  ;;  %vm2966_vm10 = vcmp.eq.f32.partialorder %v5768_v27, 0.0  ;;  %v2967_v24 = vand.u32 2147483648, %v5768_v27 }
  0xb5   :  { %v4801_v42 = vpop.eup %4800  ;;  %v2951_v50 = vsel %vm2950_vm15, %v5673_v36, %v2949_v59  ;;  %v5813_v9 = vpop.xlane.xlu0 %2737  ;;  %729 = vmatprep.mubr.bf16.mxu0 %v4899_v4  ;;  %1023 = vmatmul.mubr.bf16.gmra.mrb[52].mxu1 %v5570_v17  ;;  %v5821_v14 = vsel %vm2959_vm14, %v2960_v16, %v2958_v3  ;;  %v4778_v17 = vld [vmem:[%s7580_s3 + $0x10] sm:$0xff]   ;;  %vm2917_vm12 = vcmp.eq.f32.partialorder %v5780_v62, 0.0 }
  0xb6   :  { %v4803_v37 = vpop.eup %4802  ;;  %v2816_v55 = vmul.f32 %v4801_v42, %v5694_v5  ;;  %v5805_v45 = vpop.xlane.xlu1 %2739  ;;  %1032 = vmatprep.mubr.bf16.mxu1 %v4899_v4  ;;  %v5834_v60 = vsel %vm2952_vm0, %v2953_v19, %v2951_v50  ;;  %v5852_v19 = vld [vmem:[%s7577_s0 + $0x98] sm:$0xff]   ;;  %4611 = vmatprep.subr.bf16.mxu0 %v4778_v17  ;;  %vm2999_vm15 = vcmp.eq.f32.partialorder %v5813_v9, inf  ;;  %vm3001_vm0 = vcmp.eq.f32.partialorder %v5813_v9, 0.0 }
  0xb7   :  { %v2767_v13 = vmul.f32 %v4803_v37, %v5705_v6  ;;  %4812 = vrsqrt.f32 %v5805_v45  ;;  %v2918_v37 = vand.u32 2147483648, %v5780_v62  ;;  %vm3006_vm13 = vcmp.eq.f32.partialorder %v5805_v45, inf  ;;  %4612 = vmatpush3.bf16.msra.mxu0 %v4778_v17  ;;  %v4780_v17 = vld [vmem:[%s7580_s3 + $0x20] sm:$0xff]  }
  0xb8   :  { %4814 = vrsqrt.f32 %v5813_v9  ;;  %v2818_v16 = vsel %vm2817_vm1, %v5694_v5, %v2816_v55  ;;  %vm3008_vm14 = vcmp.eq.f32.partialorder %v5805_v45, 0.0 }
  0xb9   :  { %v4805_v7 = vpop.eup %4804  ;;  %v2769_v31 = vsel %vm2768_vm3, %v5705_v6, %v2767_v13  ;;  %v5859_v59 = vpop.xlane.xlu0 %2667  ;;  %v5865_v3 = vsel %vm2819_vm2, %v2820_v52, %v2818_v16 }
  0xba   :  { %v4807_v30 = vpop.eup %4806  ;;  %v2858_v32 = vmul.f32 %v4805_v7, %v5729_v28  ;;  %v5847_v36 = vpop.xlane.xlu1 %2683  ;;  %v5871_v55 = vsel %vm2770_vm4, %v2771_v0, %v2769_v31  ;;  %v3009_v7 = vand.u32 2147483648, %v5805_v45  ;;  %vm2775_vm3 = vcmp.eq.f32.partialorder %v5859_v59, inf }
  0xbb   :  { %v2851_v40 = vmul.f32 %v4807_v30, %v5736_v20  ;;  %4816 = vrsqrt.f32 %v5847_v36  ;;  %vm2824_vm1 = vcmp.eq.f32.partialorder %v5847_v36, inf  ;;  %vm2826_vm2 = vcmp.eq.f32.partialorder %v5847_v36, 0.0 }
  0xbc   :  { %4818 = vrsqrt.f32 %v5859_v59  ;;  %v2860_v13 = vsel %vm2859_vm5, %v5729_v28, %v2858_v32  ;;  %730 = vmatmul.mubr.bf16.gmra.mrb[76].mxu0 %v5852_v19  ;;  %vm2777_vm4 = vcmp.eq.f32.partialorder %v5859_v59, 0.0 }
  0xbd   :  { %v4809_v50 = vpop.eup %4808  ;;  %v2853_v52 = vsel %vm2852_vm7, %v5736_v20, %v2851_v40  ;;  %v5892_v30 = vpop.xlane.xlu0 %2696  ;;  %739 = vmatprep.mubr.bf16.mxu0 %v4899_v4  ;;  %1033 = vmatmul.mubr.bf16.gmra.mrb[56].mxu1 %v5578_v18  ;;  %v5902_v32 = vsel %vm2861_vm6, %v2862_v44, %v2860_v13  ;;  %v3002_v40 = vand.u32 2147483648, %v5813_v9  ;;  %v4779_v18 = vld [vmem:[%s7580_s3 + $0x18] sm:$0xff]   ;;  %v2827_v44 = vand.u32 2147483648, %v5847_v36 }
  0xbe   :  { %v4811_v5 = vpop.eup %4810  ;;  %v2963_v51 = vmul.f32 %v4809_v50, %v5768_v27  ;;  %v5884_v6 = vpop.xlane.xlu1 %2713  ;;  %1042 = vmatprep.mubr.bf16.mxu1 %v4899_v4  ;;  %4613 = vmatprep.subr.bf16.mxu0 %v4779_v18  ;;  %vm2866_vm7 = vcmp.eq.f32.partialorder %v5892_v30, inf }
  0xbf   :  { %v2914_v16 = vmul.f32 %v4811_v5, %v5780_v62  ;;  %4820 = vrsqrt.f32 %v5884_v6  ;;  %v5912_v5 = vsel %vm2854_vm8, %v2855_v15, %v2853_v52  ;;  %v5934_v52 = vld [vmem:[%s7577_s0 + $0xa0] sm:$0xff]   ;;  %vm2922_vm5 = vcmp.eq.f32.partialorder %v5884_v6, inf  ;;  %4614 = vmatpush3.bf16.msra.mxu0 %v4779_v18 }
  0xc0   :  { %4822 = vrsqrt.f32 %v5892_v30  ;;  %v2965_v28 = vsel %vm2964_vm9, %v5768_v27, %v2963_v51  ;;  %vm2924_vm6 = vcmp.eq.f32.partialorder %v5884_v6, 0.0  ;;  %v2925_v27 = vand.u32 2147483648, %v5884_v6  ;;  %4615 = vmatprep.subr.bf16.mxu0 %v4780_v17 }
  0xc1   :  { %v4813_v50 = vpop.eup %4812  ;;  %v2916_v0 = vsel %vm2915_vm11, %v5780_v62, %v2914_v16  ;;  %v5941_v58 = vpop.xlane.xlu0 %2728  ;;  %v5949_v31 = vsel %vm2966_vm10, %v2967_v24, %v2965_v28  ;;  %vm2868_vm8 = vcmp.eq.f32.partialorder %v5892_v30, 0.0  ;;  %vm7588_vm9 = vcmask 130112  }
  0xc2   :  { %v4815_v13 = vpop.eup %4814  ;;  %v3005_v20 = vmul.f32 %v4813_v50, %v5805_v45  ;;  %v5929_v15 = vpop.xlane.xlu1 %2741  ;;  %v2778_v50 = vand.u32 2147483648, %v5859_v59  ;;  %v5955_v51 = vsel %vm2917_vm12, %v2918_v37, %v2916_v0  ;;  %vm2971_vm12 = vcmp.eq.f32.partialorder %v5941_v58, inf  ;;  %v6017_v37 = vld [vmem:[%s7577_s0 + $0xa8] sm:$0xff]  }
  0xc3   :  { %v2998_v16 = vmul.f32 %v4815_v13, %v5813_v9  ;;  %4824 = vrsqrt.f32 %v5929_v15  ;;  %vm3013_vm10 = vcmp.eq.f32.partialorder %v5929_v15, inf  ;;  %4616 = vmatpush3.bf16.msra.mxu0 %v4780_v17  ;;  %vm3015_vm11 = vcmp.eq.f32.partialorder %v5929_v15, 0.0 }
  0xc4   :  { %4826 = vrsqrt.f32 %v5941_v58  ;;  %v3007_v23 = vsel %vm3006_vm13, %v5805_v45, %v3005_v20  ;;  %740 = vmatmul.mubr.bf16.gmra.mrb[80].mxu0 %v5934_v52  ;;  %v2869_v20 = vand.u32 2147483648, %v5892_v30  ;;  %vm7589_vm13 = vcmask 195712   ;;  %v4782_v45 = vld [vmem:[%s7580_s3 + $0x30] sm:$0xff]  }
  0xc5   :  { %v4817_v13 = vpop.eup %4816  ;;  %v3000_v28 = vsel %vm2999_vm15, %v5813_v9, %v2998_v16  ;;  %v5976_v16 = vpop.xlane.xlu0 %2669  ;;  %749 = vmatprep.mubr.bf16.mxu0 %v4899_v4  ;;  %1043 = vmatmul.mubr.bf16.gmra.mrb[60].mxu1 %v5588_v21  ;;  %v5986_v63 = vsel %vm3008_vm14, %v3009_v7, %v3007_v23  ;;  %v4781_v21 = vld [vmem:[%s7580_s3 + $0x28] sm:$0xff]   ;;  %vm2973_vm14 = vcmp.eq.f32.partialorder %v5941_v58, 0.0  ;;  %v2974_v42 = vand.u32 2147483648, %v5941_v58 }
  0xc6   :  { %v4819_v24 = vpop.eup %4818  ;;  %v2823_v18 = vmul.f32 %v4817_v13, %v5847_v36  ;;  %v5968_v62 = vpop.xlane.xlu1 %2685  ;;  %1052 = vmatprep.mubr.bf16.mxu1 %v4899_v4  ;;  %v5996_v26 = vsel %vm3001_vm0, %v3002_v40, %v3000_v28  ;;  %4617 = vmatprep.subr.bf16.mxu0 %v4781_v21  ;;  %vm7590_vm0 = vcmask 261312  }
  0xc7   :  { %v2774_v0 = vmul.f32 %v4819_v24, %v5859_v59  ;;  %4828 = vrsqrt.f32 %v5968_v62  ;;  %vm2831_vm15 = vcmp.eq.f32.partialorder %v5968_v62, inf  ;;  %4618 = vmatpush3.bf16.msra.mxu0 %v4781_v21  ;;  %v4783_v21 = vld [vmem:[%s7580_s3 + $0x38] sm:$0xff]  }
  0xc8   :  { %4830 = vrsqrt.f32 %v5976_v16  ;;  %v2825_v17 = vsel %vm2824_vm1, %v5847_v36, %v2823_v18  ;;  %vm2782_vm1 = vcmp.eq.f32.partialorder %v5976_v16, inf  ;;  %4619 = vmatprep.subr.bf16.mxu0 %v4782_v45 }
  0xc9   :  { %v4821_v24 = vpop.eup %4820  ;;  %v2776_v9 = vsel %vm2775_vm3, %v5859_v59, %v2774_v0  ;;  %v6024_v0 = vpop.xlane.xlu0 %2698  ;;  %v6037_v35 = vsel %vm2826_vm2, %v2827_v44, %v2825_v17 }
  0xca   :  { %v4823_v7 = vpop.eup %4822  ;;  %v2921_v40 = vmul.f32 %v4821_v24, %v5884_v6  ;;  %v6012_v28 = vpop.xlane.xlu1 %2715  ;;  %v6043_v24 = vsel %vm2777_vm4, %v2778_v50, %v2776_v9  ;;  %v2785_v50 = vand.u32 2147483648, %v5976_v16  ;;  %vm2873_vm4 = vcmp.eq.f32.partialorder %v6024_v0, inf }
  0xcb   :  { %v2865_v18 = vmul.f32 %v4823_v7, %v5892_v30  ;;  %4832 = vrsqrt.f32 %v6012_v28  ;;  %vm2929_vm2 = vcmp.eq.f32.partialorder %v6012_v28, inf  ;;  %vm2931_vm3 = vcmp.eq.f32.partialorder %v6012_v28, 0.0  ;;  %4620 = vmatpush3.bf16.msra.mxu0 %v4782_v45 }
  0xcc   :  { %v2923_v23 = vsel %vm2922_vm5, %v5884_v6, %v2921_v40  ;;  %4834 = vrsqrt.f32 %v6024_v0  ;;  %750 = vmatmul.mubr.bf16.gmra.mrb[84].mxu0 %v6017_v37  ;;  %4621 = vmatprep.subr.bf16.mxu0 %v4783_v21 }
  0xcd   :  { %v4825_v7 = vpop.eup %4824  ;;  %v2926_v36 = vsel %vm2924_vm6, %v2925_v27, %v2923_v23  ;;  %v2867_v44 = vsel %vm2866_vm7, %v5892_v30, %v2865_v18  ;;  %v6063_v6 = vpop.xlane.xlu0 %2730  ;;  %759 = vmatprep.mubr.bf16.mxu0 %v4899_v4  ;;  %1053 = vmatmul.mubr.bf16.gmra.mrb[64].mxu1 %v5624_v39  ;;  %v3212_v27 = vsel %vm7588_vm9, %v3211_v2, %v3207_v12 }
  0xce   :  { %v4827_v13 = vpop.eup %4826  ;;  %v3012_v59 = vmul.f32 %v4825_v7, %v5929_v15  ;;  %v6057_v17 = vpop.xlane.xlu1 %2743  ;;  %1062 = vmatprep.mubr.bf16.mxu1 %v4899_v4  ;;  %v6083_v1 = vsel %vm2868_vm8, %v2869_v20, %v2867_v44  ;;  %v3221_v12 = vrot.slane %v2926_v36, %v5644_v47  ;;  %v6100_v20 = vld [vmem:[%s7577_s0 + $0xb0] sm:$0xff]   ;;  %v7618_v7 = vrot.slane %v5955_v51, %v5640_v46 }
  0xcf   :  { %v2970_v9 = vmul.f32 %v4827_v13, %v5941_v58  ;;  %4836 = vrsqrt.f32 %v6057_v17  ;;  %v2932_v13 = vand.u32 2147483648, %v6012_v28  ;;  %vm3020_vm5 = vcmp.eq.f32.partialorder %v6057_v17, inf  ;;  %4622 = vmatpush3.bf16.msra.mxu0 %v4783_v21 }
  0xd0   :  { %4838 = vrsqrt.f32 %v6063_v6  ;;  %v3014_v38 = vsel %vm3013_vm10, %v5929_v15, %v3012_v59  ;;  %v3217_v36 = vsel %vm7589_vm13, %v7618_v7, %v3212_v27  ;;  %vm3022_vm6 = vcmp.eq.f32.partialorder %v6057_v17, 0.0 }
  0xd1   :  { %v4829_v39 = vpop.eup %4828  ;;  %v2972_v45 = vsel %vm2971_vm12, %v5941_v58, %v2970_v9  ;;  %v3023_v59 = vand.u32 2147483648, %v6057_v17  ;;  %v6110_v9 = vpop.xlane.xlu0 %2671  ;;  %vm2978_vm7 = vcmp.eq.f32.partialorder %v6063_v6, inf  ;;  %vm2980_vm8 = vcmp.eq.f32.partialorder %v6063_v6, 0.0 }
  0xd2   :  { %v4831_v23 = vpop.eup %4830  ;;  %v2830_v18 = vmul.f32 %v4829_v39, %v5968_v62  ;;  %v6095_v30 = vpop.xlane.xlu1 %2687  ;;  %v7619_v39 = vand.u32 2147483648, %v5929_v15  ;;  %v2975_v27 = vsel %vm2973_vm14, %v2974_v42, %v2972_v45  ;;  %v6123_v7 = vsel %vm7590_vm0, %v3221_v12, %v3217_v36 }
  0xd3   :  { %v2781_v44 = vmul.f32 %v4831_v23, %v5976_v16  ;;  %4840 = vrsqrt.f32 %v6095_v30  ;;  %v2981_v23 = vand.u32 2147483648, %v6063_v6  ;;  %v7620_v15 = vrot.slane %v5834_v60, %v5631_v41 }
  0xd4   :  { %v3017_v2 = vsel %vm3015_vm11, %v7619_v39, %v3014_v38  ;;  %4842 = vrsqrt.f32 %v6110_v9  ;;  %v7621_v38 = vrot.slane %v5821_v14, %v5634_v43  ;;  %v6135_v21 = vsel %vm2831_vm15, %v5968_v62, %v2830_v18  ;;  %760 = vmatmul.mubr.bf16.gmra.mrb[88].mxu0 %v6100_v20 }
  0xd5   :  { %v4833_v51 = vpop.eup %4832  ;;  %vm2838_vm10 = vcmp.eq.f32.partialorder %v6095_v30, inf  ;;  %v6146_v14 = vsel %vm2782_vm1, %v5976_v16, %v2781_v44  ;;  %vm2789_vm11 = vcmp.eq.f32.partialorder %v6110_v9, inf  ;;  %v6151_v45 = vpop.xlane.xlu0 %2700  ;;  %769 = vmatprep.mubr.bf16.mxu0 %v4899_v4  ;;  %1063 = vmatmul.mubr.bf16.gmra.mrb[68].mxu1 %v5699_v8  ;;  %vm2784_vm12 = vcmp.eq.f32.partialorder %v5976_v16, 0.0 }
  0xd6   :  { %v3246_v39 = vsel %vm7588_vm9, %v7621_v38, %v7620_v15  ;;  %v4835_v40 = vpop.eup %4834  ;;  %v2928_v58 = vmul.f32 %v4833_v51, %v6012_v28  ;;  %v6140_v12 = vpop.xlane.xlu1 %2717  ;;  %1072 = vmatprep.mubr.bf16.mxu1 %v4899_v4  ;;  %vm3120_vm14 = vcmask 326912   ;;  %vm2791_vm15 = vcmp.eq.f32.partialorder %v6110_v9, 0.0 }
  0xd7   :  { %v2872_v60 = vmul.f32 %v4835_v40, %v6024_v0  ;;  %4844 = vrsqrt.f32 %v6140_v12  ;;  %v7622_v40 = vrot.slane %v5949_v31, %v5640_v46  ;;  %v3255_v15 = vrot.slane %v2975_v27, %v5644_v47 }
  0xd8   :  { %v2930_v18 = vsel %vm2929_vm2, %v6012_v28, %v2928_v58  ;;  %4846 = vrsqrt.f32 %v6151_v45  ;;  %v7623_v38 = vrot.slane %v5996_v26, %v5631_v41  ;;  %v7624_v58 = vrot.slane %v5986_v63, %v5634_v43  ;;  %v6188_v26 = vld [vmem:[%s7577_s0 + $0xb8] sm:$0xff]  }
  0xd9   :  { %v3251_v44 = vsel %vm7589_vm13, %v7622_v40, %v3246_v39  ;;  %v4837_v51 = vpop.eup %4836  ;;  %v2933_v8 = vsel %vm2931_vm3, %v2932_v13, %v2930_v18  ;;  %v3284_v31 = vrot.slane %v3017_v2, %v5640_v46  ;;  %vm2833_vm1 = vcmp.eq.f32.partialorder %v5968_v62, 0.0  ;;  %v6198_v27 = vpop.xlane.xlu0 %2732 }
  0xda   :  { %v3280_v42 = vsel %vm7588_vm9, %v7624_v58, %v7623_v38  ;;  %v4839_v36 = vpop.eup %4838  ;;  %v3019_v39 = vmul.f32 %v4837_v51, %v6057_v17  ;;  %vm2936_vm2 = vcmp.eq.f32.partialorder %v6140_v12, inf  ;;  %vm2938_vm3 = vcmp.eq.f32.partialorder %v6140_v12, 0.0  ;;  %v6183_v13 = vpop.xlane.xlu1 %2745 }
  0xdb   :  { %v6193_v63 = vsel %vm2873_vm4, %v6024_v0, %v2872_v60  ;;  %v2977_v2 = vmul.f32 %v4839_v36, %v6063_v6  ;;  %4848 = vrsqrt.f32 %v6183_v13  ;;  %v3226_v51 = vrot.slane %v2933_v8, %v5647_v48 }
  0xdc   :  { %v3021_v18 = vsel %vm3020_vm5, %v6057_v17, %v3019_v39  ;;  %4850 = vrsqrt.f32 %v6198_v27  ;;  %vm2840_vm4 = vcmp.eq.f32.partialorder %v6095_v30, 0.0  ;;  %v6213_v58 = vsel %vm7590_vm0, %v3255_v15, %v3251_v44  ;;  %770 = vmatmul.mubr.bf16.gmra.mrb[92].mxu0 %v6188_v26 }
  0xdd   :  { %v4841_v60 = vpop.eup %4840  ;;  %v2979_v36 = vsel %vm2978_vm7, %v6063_v6, %v2977_v2  ;;  %v3024_v38 = vsel %vm3022_vm6, %v3023_v59, %v3021_v18  ;;  %v3285_v39 = vsel %vm7589_vm13, %v3284_v31, %v3280_v42  ;;  %vm3027_vm5 = vcmp.eq.f32.partialorder %v6183_v13, inf  ;;  %v6225_v59 = vpop.xlane.xlu0 %2675  ;;  %779 = vmatprep.mubr.bf16.mxu0 %v4899_v4  ;;  %1073 = vmatmul.mubr.bf16.gmra.mrb[72].mxu1 %v5773_v57 }
  0xde   :  { %v4843_v40 = vpop.eup %4842  ;;  %v2837_v28 = vmul.f32 %v4841_v60, %v6095_v30  ;;  %vm3029_vm9 = vcmp.eq.f32.partialorder %v6183_v13, 0.0  ;;  %v3030_v8 = vand.u32 2147483648, %v6183_v13  ;;  %v6220_v2 = vpop.xlane.xlu1 %2690  ;;  %v2982_v42 = vsel %vm2980_vm8, %v2981_v23, %v2979_v36  ;;  %1082 = vmatprep.mubr.bf16.mxu1 %v4899_v4 }
  0xdf   :  { %v2788_v17 = vmul.f32 %v4843_v40, %v6110_v9  ;;  %4852 = vrsqrt.f32 %v6220_v2  ;;  %v3289_v44 = vrot.slane %v3024_v38, %v5644_v47  ;;  %vm2985_vm6 = vcmp.eq.f32.partialorder %v6198_v27, inf  ;;  %v6259_v38 = vld [vmem:[%s7577_s0 + $0xc0] sm:$0xff]  }
  0xe0   :  { %vm2987_vm7 = vcmp.eq.f32.partialorder %v6198_v27, 0.0  ;;  %v2988_v15 = vand.u32 2147483648, %v6198_v27  ;;  %4854 = vrsqrt.f32 %v6225_v59  ;;  %v2839_v57 = vsel %vm2838_vm10, %v6095_v30, %v2837_v28 }
  0xe1   :  { %v4845_v31 = vpop.eup %4844  ;;  %v2790_v6 = vsel %vm2789_vm11, %v6110_v9, %v2788_v17  ;;  %v6248_v18 = vsel %vm3120_vm14, %v3226_v51, %v6123_v7  ;;  %vm2796_vm13 = vcmp.eq.f32.partialorder %v6225_v59, inf  ;;  %v3260_v17 = vrot.slane %v2982_v42, %v5647_v48  ;;  %v6266_v51 = vpop.xlane.xlu0 %2702 }
  0xe2   :  { %v4847_v40 = vpop.eup %4846  ;;  %v2935_v60 = vmul.f32 %v4845_v31, %v6140_v12  ;;  %v6254_v28 = vpop.xlane.xlu1 %2720  ;;  %vm2875_vm10 = vcmp.eq.f32.partialorder %v6024_v0, 0.0  ;;  %vm3127_vm8 = vcmask 392512   ;;  %v3290_v31 = vsel %vm7590_vm0, %v3289_v44, %v3285_v39 }
  0xe3   :  { %v2879_v7 = vmul.f32 %v4847_v40, %v6151_v45  ;;  %4856 = vrsqrt.f32 %v6254_v28  ;;  %v6274_v23 = vsel %vm2784_vm12, %v2785_v50, %v6146_v14  ;;  %v7625_v40 = vand.u32 2147483648, %v6110_v9 }
  0xe4   :  { %v2937_v42 = vsel %vm2936_vm2, %v6140_v12, %v2935_v60  ;;  %4858 = vrsqrt.f32 %v6266_v51  ;;  %vm2798_vm0 = vcmp.eq.f32.partialorder %v6225_v59, 0.0  ;;  %vm2943_vm11 = vcmp.eq.f32.partialorder %v6254_v28, inf  ;;  %780 = vmatmul.mubr.bf16.gmra.mrb[96].mxu0 %v6259_v38 }
  0xe5   :  { %v6284_v36 = vsel %vm2791_vm15, %v7625_v40, %v2790_v6  ;;  %v4849_v39 = vpop.eup %4848  ;;  %v7626_v50 = vand.u32 2147483648, %v6140_v12  ;;  %v7627_v44 = vand.u32 2147483648, %v5968_v62  ;;  %vm7628_vm12 = vcmp.eq.f32.partialorder %v6151_v45, inf  ;;  %789 = vmatprep.mubr.bf16.mxu0 %v4899_v4  ;;  %1083 = vmatmul.mubr.bf16.gmra.mrb[76].mxu1 %v5852_v19 }
  0xe6   :  { %v4851_v6 = vpop.eup %4850  ;;  %v2881_v60 = vsel %vm7628_vm12, %v6151_v45, %v2879_v7  ;;  %v3026_v40 = vmul.f32 %v4849_v39, %v6183_v13  ;;  %vm2887_vm15 = vcmp.eq.f32.partialorder %v6266_v51, inf  ;;  %v2890_v16 = vand.u32 2147483648, %v6266_v51  ;;  %v6306_v12 = vpop.xlane.xlu1 %2747  ;;  %1092 = vmatprep.mubr.bf16.mxu1 %v4899_v4 }
  0xe7   :  { %v2940_v14 = vsel %vm2938_vm3, %v7626_v50, %v2937_v42  ;;  %v6298_v9 = vsel %vm2833_vm1, %v7627_v44, %v6135_v21  ;;  %vm2945_vm2 = vcmp.eq.f32.partialorder %v6254_v28, 0.0  ;;  %v2984_v62 = vmul.f32 %v4851_v6, %v6198_v27  ;;  %v6312_v21 = vpop.xlane.xlu0 %2735 }
  0xe8   :  { %4860 = vrsqrt.f32 %v6306_v12  ;;  %v3231_v7 = vrot.slane %v2940_v14, %v5650_v49  ;;  %v3261_v42 = vsel %vm3120_vm14, %v3260_v17, %v6213_v58  ;;  %v3028_v39 = vsel %vm3027_vm5, %v6183_v13, %v3026_v40  ;;  %v6347_v40 = vld [vmem:[%s7577_s0 + $0xc8] sm:$0xff]  }
  0xe9   :  { %4862 = vrsqrt.f32 %v6312_v21  ;;  %v7629_v50 = vand.u32 2147483648, %v6095_v30  ;;  %vm2847_vm1 = vcmp.eq.f32.partialorder %v6220_v2, 0.0  ;;  %v4853_v19 = vpop.eup %4852  ;;  %v2986_v58 = vsel %vm2985_vm6, %v6198_v27, %v2984_v62 }
  0xea   :  { %vm3034_vm3 = vcmp.eq.f32.partialorder %v6306_v12, inf  ;;  %v3031_v14 = vsel %vm3029_vm9, %v3030_v8, %v3028_v39  ;;  %v4855_v6 = vpop.eup %4854  ;;  %v2844_v30 = vmul.f32 %v4853_v19, %v6220_v2  ;;  %v2989_v62 = vsel %vm2987_vm7, %v2988_v15, %v2986_v58 }
  0xeb   :  { %v6328_v44 = vsel %vm2840_vm4, %v7629_v50, %v2839_v57  ;;  %vm2992_vm4 = vcmp.eq.f32.partialorder %v6312_v21, inf  ;;  %v6342_v57 = vpop.xlane.xlu1 %2750  ;;  %v3294_v13 = vrot.slane %v3031_v14, %v5647_v48  ;;  %v2795_v8 = vmul.f32 %v4855_v6, %v6225_v59  ;;  %v6357_v50 = vpop.xlane.xlu0 %2705 }
  0xec   :  { %4864 = vrsqrt.f32 %v6342_v57  ;;  %vm2994_vm9 = vcmp.eq.f32.partialorder %v6312_v21, 0.0  ;;  %vm3036_vm5 = vcmp.eq.f32.partialorder %v6306_v12, 0.0  ;;  %vm3134_vm6 = vcmask 458112   ;;  %790 = vmatmul.mubr.bf16.gmra.mrb[100].mxu0 %v6347_v40 }
  0xed   :  { %4866 = vrsqrt.f32 %v6357_v50  ;;  %v3232_v27 = vsel %vm3127_vm8, %v3231_v7, %v6248_v18  ;;  %v3265_v15 = vrot.slane %v2989_v62, %v5650_v49  ;;  %v4857_v19 = vpop.eup %4856  ;;  %v3044_v58 = vand.u32 2147483648, %v6342_v57  ;;  %799 = vmatprep.mubr.bf16.mxu0 %v4899_v4  ;;  %1093 = vmatmul.mubr.bf16.gmra.mrb[80].mxu1 %v5934_v52 }
  0xee   :  { %v6368_v14 = vsel %vm3120_vm14, %v3294_v13, %v3290_v31  ;;  %v2797_v6 = vsel %vm2796_vm13, %v6225_v59, %v2795_v8  ;;  %vm7630_vm12 = vcmp.eq.f32.partialorder %v6220_v2, inf  ;;  %v4859_v17 = vpop.eup %4858  ;;  %v2942_v18 = vmul.f32 %v4857_v19, %v6254_v28  ;;  %1102 = vmatprep.mubr.bf16.mxu1 %v4899_v4 }
  0xef   :  { %v2846_v39 = vsel %vm7630_vm12, %v6220_v2, %v2844_v30  ;;  %vm3043_vm7 = vcmp.eq.f32.partialorder %v6342_v57, 0.0  ;;  %v3266_v7 = vsel %vm3127_vm8, %v3265_v15, %v3261_v42  ;;  %v7631_v31 = vand.u32 2147483648, %v6024_v0 }
  0xf0   :  { %v7632_v13 = vand.u32 2147483648, %v6151_v45  ;;  %vm7633_vm13 = vcmp.eq.f32.partialorder %v6151_v45, 0.0  ;;  %v2886_v8 = vmul.f32 %v4859_v17, %v6266_v51  ;;  %v7634_v42 = vand.u32 2147483648, %v6225_v59 }
  0xf1   :  { %v6385_v62 = vsel %vm2875_vm10, %v7631_v31, %v6193_v63  ;;  %v7635_v0 = vand.u32 2147483648, %v6220_v2  ;;  %vm2889_vm10 = vcmp.eq.f32.partialorder %v6266_v51, 0.0  ;;  %v2944_v45 = vsel %vm2943_vm11, %v6254_v28, %v2942_v18 }
  0xf2   :  { %v6391_v30 = vsel %vm7633_vm13, %v7632_v13, %v2881_v60  ;;  %v2800_v15 = vsel %vm2798_vm0, %v7634_v42, %v2797_v6  ;;  %vm2894_vm12 = vcmp.eq.f32.partialorder %v6357_v50, inf  ;;  %vm2896_vm13 = vcmp.eq.f32.partialorder %v6357_v50, 0.0  ;;  %v4861_v59 = vpop.eup %4860 }
  0xf3   :  { %v6404_v63 = vsel %vm2847_vm1, %v7635_v0, %v2846_v39  ;;  %v3112_v52 = vrot.slane %v6043_v24, %v5644_v47  ;;  %v7636_v2 = vand.u32 2147483648, %v6254_v28  ;;  %v2888_v17 = vsel %vm2887_vm15, %v6266_v51, %v2886_v8  ;;  %v4863_v18 = vpop.eup %4862  ;;  %v6435_v28 = vld [vmem:[%s7577_s0 + $0xd0] sm:$0xff]  }
  0xf4   :  { %v7637_v39 = vrot.slane %v5717_v11, %v5631_v41  ;;  %v7638_v19 = vrot.slane %v5755_v61, %v5634_v43  ;;  %vm7639_vm0 = vcmask 130112   ;;  %v3119_v6 = vrot.slane %v6274_v23, %v5647_v48  ;;  %800 = vmatmul.mubr.bf16.gmra.mrb[104].mxu0 %v6435_v28 }
  0xf5   :  { %v2947_v60 = vsel %vm2945_vm2, %v7636_v2, %v2944_v45  ;;  %v3033_v31 = vmul.f32 %v4861_v59, %v6306_v12  ;;  %vm3306_vm11 = vcmask 1041409   ;;  %vm3308_vm15 = vcmask 1042434   ;;  %809 = vmatprep.mubr.bf16.mxu0 %v4899_v4  ;;  %1103 = vmatmul.mubr.bf16.gmra.mrb[84].mxu1 %v6017_v37 }
  0xf6   :  { %v3100_v24 = vsel %vm7639_vm0, %v7638_v19, %v7637_v39  ;;  %v3236_v13 = vrot.slane %v2947_v60, %v5660_v56  ;;  %v2897_v11 = vand.u32 2147483648, %v6357_v50  ;;  %v7640_v61 = vrot.slane %v5871_v55, %v5640_v46  ;;  %v4865_v39 = vpop.eup %4864  ;;  %1112 = vmatprep.mubr.bf16.mxu1 %v4899_v4 }
  0xf7   :  { %vm7641_vm2 = vcmask 195712   ;;  %v2991_v23 = vmul.f32 %v4863_v18, %v6312_v21  ;;  %vm3314_vm1 = vcmask 428032   ;;  %v6448_v42 = vsel %vm2889_vm10, %v2890_v16, %v2888_v17  ;;  %v4867_v19 = vpop.eup %4866 }
  0xf8   :  { %v3107_v8 = vsel %vm7641_vm2, %v7640_v61, %v3100_v24  ;;  %vm7642_vm0 = vcmask 261312   ;;  %v3126_v45 = vrot.slane %v6284_v36, %v5650_v49  ;;  %v3035_v55 = vsel %vm3034_vm3, %v6306_v12, %v3033_v31  ;;  %vm7655_vm10 = vmmov %vm7641_vm2 }
  0xf9   :  { %v3114_v0 = vsel %vm7642_vm0, %v3112_v52, %v3107_v8  ;;  %v3133_v2 = vrot.slane %v2800_v15, %v5660_v56  ;;  %v3153_v60 = vrot.slane %v6037_v35, %v5644_v47  ;;  %v2993_v51 = vsel %vm2992_vm4, %v6312_v21, %v2991_v23  ;;  %vm7649_vm4 = vmmov %vm7641_vm2 }
  0xfa   :  { %v3121_v59 = vsel %vm3120_vm14, %v3119_v6, %v3114_v0  ;;  %v7643_v16 = vand.u32 2147483648, %v6306_v12  ;;  %v3237_v52 = vsel %vm3134_vm6, %v3236_v13, %v3232_v27  ;;  %v7644_v17 = vrot.slane %v5713_v10, %v5631_v41 }
  0xfb   :  { %v7645_v15 = vrot.slane %v5746_v29, %v5634_v43  ;;  %vm7646_vm3 = vcmask 130112   ;;  %v3040_v24 = vmul.f32 %v4865_v39, %v6342_v57  ;;  %v7647_v6 = vand.u32 2147483648, %v6312_v21 }
  0xfc   :  { %v3038_v36 = vsel %vm3036_vm5, %v7643_v16, %v3035_v55  ;;  %v3128_v18 = vsel %vm3127_vm8, %v3126_v45, %v3121_v59  ;;  %v2893_v10 = vmul.f32 %v4867_v19, %v6357_v50  ;;  %v7648_v31 = vrot.slane %v5865_v3, %v5640_v46  ;;  %vm7651_vm5 = vmmov %vm7642_vm0  ;;  %v541_v3 = vpop.f32.mrb[0].mxu0 }
  0xfd   :  { %v3144_v35 = vsel %vm7646_vm3, %v7645_v15, %v7644_v17  ;;  %v2996_v12 = vsel %vm2994_vm9, %v7647_v6, %v2993_v51  ;;  %v3299_v27 = vrot.slane %v3038_v36, %v5650_v49  ;;  %v3158_v61 = vrot.slane %v6298_v9, %v5647_v48  ;;  %v543_v37 = vpop.f32.mrb[1].mxu0  ;;  %1113 = vmatmul.mubr.bf16.gmra.mrb[88].mxu1 %v6100_v20  ;;  %vm7696_vm2 = vmmov %vm7646_vm3 }
  0xfe   :  { %v3270_v29 = vrot.slane %v2996_v12, %v5660_v56  ;;  %v3149_v13 = vsel %vm7649_vm4, %v7648_v31, %v3144_v35  ;;  %vm7650_vm9 = vcmp.eq.f32.partialorder %v6342_v57, inf  ;;  %v3135_v8 = vsel %vm3134_vm6, %v3133_v2, %v3128_v18  ;;  %1122 = vmatprep.mubr.bf16.mxu1 %v4899_v4 }
  0xff   :  { %v3042_v21 = vsel %vm7650_vm9, %v6342_v57, %v3040_v24  ;;  %v3154_v23 = vsel %vm7651_vm5, %v3153_v60, %v3149_v13  ;;  %v3163_v0 = vrot.slane %v6328_v44, %v5650_v49  ;;  %v3300_v55 = vsel %vm3127_vm8, %v3299_v27, %v6368_v14 }
 0x100   :  { %v3045_v9 = vsel %vm3043_vm7, %v3044_v58, %v3042_v21  ;;  %v3271_v45 = vsel %vm3134_vm6, %v3270_v29, %v3266_v7  ;;  %v2895_v59 = vsel %vm2894_vm12, %v6357_v50, %v2893_v10  ;;  %v542_v44 = vadd.f32 %v541_v3, %v5654_v53  ;;  %v6519_v58 = vld [vmem:[%s7577_s0 + $0xd8] sm:$0xff]   ;;  %v545_v7 = vpop.f32.mrb[2].mxu0  ;;  %vm7654_vm7 = vmmov %vm7646_vm3 }
 0x101   :  { %v3304_v2 = vrot.slane %v3045_v9, %v5660_v56  ;;  %v3159_v60 = vsel %vm3120_vm14, %v3158_v61, %v3154_v23  ;;  %v3168_v57 = vrot.slane %v6404_v63, %v5660_v56  ;;  %v544_v14 = vadd.f32 %v543_v37, %v5657_v54  ;;  %v547_v19 = vpop.f32.mrb[3].mxu0  ;;  %810 = vmatmul.mubr.bf16.gmra.mrb[108].mxu0 %v6519_v58  ;;  %vm7656_vm12 = vmmov %vm7642_vm0  ;;  %v6562_v9 = vld [vmem:[%s7577_s0 + $0xe0] sm:$0xff]  }
 0x102   :  { %v3310_v39 = vsel %vm3306_vm11, %v3271_v45, %v3237_v52  ;;  %v2898_v51 = vsel %vm2896_vm13, %v2897_v11, %v2895_v59  ;;  %v3182_v16 = vrot.slane %v6083_v1, %v5640_v46  ;;  %v546_v36 = vadd.f32 %v545_v7, %v5654_v53  ;;  %819 = vmatprep.mubr.bf16.mxu0 %v4899_v4  ;;  %v551_v61 = vpop.f32.mrb[4].mxu0 }
 0x103   :  { %v3305_v63 = vsel %vm3134_vm6, %v3304_v2, %v3300_v55  ;;  %v3164_v17 = vsel %vm3127_vm8, %v3163_v0, %v3159_v60  ;;  %v7652_v15 = vrot.slane %v5912_v5, %v5631_v41  ;;  %v7653_v35 = vrot.slane %v5902_v32, %v5634_v43  ;;  %v553_v3 = vpop.f32.mrb[5].mxu0 }
 0x104   :  { %v1213_v50 = vmax.f32 %v542_v44, 0.0  ;;  %v3311_v11 = vsel %vm3308_vm15, %v3305_v63, %v3310_v39  ;;  %v3187_v24 = vrot.slane %v6385_v62, %v5644_v47  ;;  %v1217_v6 = vmax.f32 %v546_v36, 0.0  ;;  %v555_v59 = vpop.f32.mrb[6].mxu0  ;;  %v6576_v36 = vld [vmem:[%s7577_s0 + $0xe8] sm:$0xff]  }
 0x105   :  { %v3178_v52 = vsel %vm7654_vm7, %v7653_v35, %v7652_v15  ;;  %v3318_v12 = vsel %vm3314_vm1, %v3311_v11, 0.0  ;;  %v3192_v5 = vrot.slane %v6391_v30, %v5647_v48  ;;  %v3197_v32 = vrot.slane %v6448_v42, %v5650_v49  ;;  %v557_v2 = vpop.f32.mrb[7].mxu0  ;;  %1123 = vmatmul.mubr.bf16.gmra.mrb[92].mxu1 %v6188_v26 }
 0x106   :  { %v3183_v1 = vsel %vm7655_vm10, %v3182_v16, %v3178_v52  ;;  %3319 = vadd.xlane.f32.xlu1 %v3318_v12  ;;  %v3169_v27 = vsel %vm3134_vm6, %v3168_v57, %v3164_v17  ;;  %v3202_v10 = vrot.slane %v2898_v51, %v5660_v56  ;;  %v548_v62 = vadd.f32 %v547_v19, %v5657_v54 }
 0x107   :  { %v3188_v18 = vsel %vm7656_vm12, %v3187_v24, %v3183_v1  ;;  %v1469_v29 = vpack.c.bf16 %v1217_v6, %v1213_v50  ;;  %v1214_v30 = vmax.f32 %v544_v14, 0.0  ;;  %v3307_v23 = vsel %vm3306_vm11, %v3169_v27, %v3135_v8  ;;  %v561_v16 = vpop.f32.mrb[8].mxu0  ;;  %1132 = vmatprep.mubr.bf16.mxu1 %v4899_v4 }
 0x108   :  { %v3193_v31 = vsel %vm3120_vm14, %v3192_v5, %v3188_v18  ;;  %v1218_v13 = vmax.f32 %v548_v62, 0.0  ;;  %v552_v0 = vadd.f32 %v551_v61, %v5654_v53  ;;  %v554_v55 = vadd.f32 %v553_v3, %v5657_v54  ;;  %v563_v17 = vpop.f32.mrb[9].mxu0  ;;  %v6602_v3 = vld [vmem:[%s7577_s0 + $0xf8] sm:$0xff]  }
 0x109   :  { %v3198_v42 = vsel %vm3127_vm8, %v3197_v32, %v3193_v31  ;;  %v556_v37 = vadd.f32 %v555_v59, %v5654_v53  ;;  %v558_v8 = vadd.f32 %v557_v2, %v5657_v54  ;;  %820 = vmatmul.mubr.bf16.gmra.mrb[112].mxu0 %v6562_v9  ;;  %v562_v63 = vadd.f32 %v561_v16, %v5654_v53  ;;  %v565_v35 = vpop.f32.mrb[10].mxu0  ;;  %v6589_v32 = vld [vmem:[%s7577_s0 + $0xf0] sm:$0xff]  }
 0x10a   :  { %v3203_v21 = vsel %vm3134_vm6, %v3202_v10, %v3198_v42  ;;  %v1470_v45 = vpack.c.bf16 %v1218_v13, %v1214_v30  ;;  %v1221_v60 = vmax.f32 %v552_v0, 0.0  ;;  %v1222_v14 = vmax.f32 %v554_v55, 0.0  ;;  %829 = vmatprep.mubr.bf16.mxu0 %v4899_v4  ;;  %v567_v26 = vpop.f32.mrb[11].mxu0 }
 0x10b   :  { %v3309_v20 = vsel %vm3308_vm15, %v3203_v21, %v3307_v23  ;;  %v1225_v57 = vmax.f32 %v556_v37, 0.0  ;;  %v1226_v7 = vmax.f32 %v558_v8, 0.0  ;;  %v564_v15 = vadd.f32 %v563_v17, %v5657_v54  ;;  %vm7695_vm15 = vmmov %vm7646_vm3 }
 0x10c   :  { %v3315_v44 = vsel %vm3314_vm1, %v3309_v20, 0.0  ;;  %2051 = vmatprep.subr.bf16.mxu1 %v1470_v45  ;;  %v566_v52 = vadd.f32 %v565_v35, %v5654_v53  ;;  %v568_v19 = vadd.f32 %v567_v26, %v5657_v54  ;;  %v1229_v50 = vmax.f32 %v562_v63, 0.0  ;;  %vm7697_vm1 = vmmov %vm7649_vm4 }
 0x10d   :  { %3316 = vadd.xlane.f32.xlu0 %v3315_v44  ;;  %2052 = vmatpush1.bf16.msra.mxu1 %v1469_v29  ;;  %v1473_v39 = vpack.c.bf16 %v1225_v57, %v1221_v60  ;;  %v1474_v51 = vpack.c.bf16 %v1226_v7, %v1222_v14  ;;  %v1230_v1 = vmax.f32 %v564_v15, 0.0  ;;  %v6607_v44 = vsub.s32 2, %v5599_v25  ;;  %vm7699_vm0 = vmmov %vm7697_vm1 }
 0x10e   :  { %v1233_v11 = vmax.f32 %v566_v52, 0.0  ;;  %v1234_v24 = vmax.f32 %v568_v19, 0.0  ;;  %1133 = vmatmul.mubr.bf16.gmra.mrb[96].mxu1 %v6259_v38  ;;  %v149_v2 = vsub.s32 3, %v5599_v25  ;;  %vm3333_vm13 = vcmask 17408   ;;  %vm7702_vm3 = vmmov %vm7651_vm5 }
 0x10f   :  { %2053 = vmatprep.subr.bf16.mxu1 %v1474_v51  ;;  %1142 = vmatprep.mubr.bf16.mxu1 %v4899_v4  ;;  %v571_v5 = vpop.f32.mrb[12].mxu0  ;;  %vm7703_vm4 = vmmov %vm7702_vm3  ;;  %vm4241_vm9 = vcmask 523712   ;;  %vm4248_vm5 = vcmask 589312   ;;  %vm4269_vm7 = vcmask 786112   ;;  %vm4283_vm10 = vcmask 917312  }
 0x110   :  { %v1477_v6 = vpack.c.bf16 %v1233_v11, %v1229_v50  ;;  %v1478_v12 = vpack.c.bf16 %v1234_v24, %v1230_v1  ;;  %v572_v27 = vadd.f32 %v571_v5, %v5654_v53  ;;  %v573_v18 = vpop.f32.mrb[13].mxu0  ;;  %vm4290_vm12 = vcmask 982912  }
 0x111   :  { %2054 = vmatpush1.bf16.msra.mxu1 %v1473_v39  ;;  %830 = vmatmul.mubr.bf16.gmra.mrb[116].mxu0 %v6576_v36  ;;  %v574_v10 = vadd.f32 %v573_v18, %v5657_v54  ;;  %v575_v62 = vpop.f32.mrb[14].mxu0  ;;  %v4874_v39 = vld [vmem:[%s7579_s2] sm:$0xf] }
 0x112   :  { %839 = vmatprep.mubr.bf16.mxu0 %v4899_v4  ;;  %2055 = vmatprep.subr.bf16.mxu1 %v1478_v12  ;;  %v576_v29 = vadd.f32 %v575_v62, %v5654_v53  ;;  %v577_v38 = vpop.f32.mrb[15].mxu0  ;;  %v1237_v30 = vmax.f32 %v572_v27, 0.0  ;;  %v6617_v51 = vrot.slane %v4874_v39, %v6607_v44  ;;  %v6620_v63 = vrot.slane %v4874_v39, %v149_v2 }
 0x113   :  { %v578_v31 = vadd.f32 %v577_v38, %v5657_v54  ;;  %v1238_v13 = vmax.f32 %v574_v10, 0.0 }
 0x114   :  { %v1241_v42 = vmax.f32 %v576_v29, 0.0 }
 0x115   :  { %2056 = vmatpush1.bf16.msra.mxu1 %v1477_v6  ;;  %v1242_v61 = vmax.f32 %v578_v31, 0.0 }
 0x116   :  { %1143 = vmatmul.mubr.bf16.gmra.mrb[100].mxu1 %v6347_v40  ;;  %v1481_v21 = vpack.c.bf16 %v1241_v42, %v1237_v30 }
 0x117   :  { %v1482_v23 = vpack.c.bf16 %v1242_v61, %v1238_v13  ;;  %1152 = vmatprep.mubr.bf16.mxu1 %v4899_v4  ;;  %v581_v0 = vpop.f32.mrb[16].mxu0 }
 0x118   :  { %v582_v20 = vadd.f32 %v581_v0, %v5654_v53  ;;  %v583_v45 = vpop.f32.mrb[17].mxu0 }
 0x119   :  { %840 = vmatmul.mubr.bf16.gmra.mrb[120].mxu0 %v6589_v32  ;;  %2057 = vmatprep.subr.bf16.mxu1 %v1482_v23  ;;  %v584_v55 = vadd.f32 %v583_v45, %v5657_v54  ;;  %v585_v59 = vpop.f32.mrb[18].mxu0  ;;  %v894_v26 = vpop.f32.mrb[0].mxu1 }
 0x11a   :  { %849 = vmatprep.mubr.bf16.mxu0 %v4899_v4  ;;  %2058 = vmatpush1.bf16.msra.mxu1 %v1481_v21  ;;  %v586_v40 = vadd.f32 %v585_v59, %v5654_v53  ;;  %v587_v37 = vpop.f32.mrb[19].mxu0  ;;  %v1245_v60 = vmax.f32 %v582_v20, 0.0  ;;  %v895_v11 = vadd.f32 %v894_v26, %v6617_v51  ;;  %v896_v1 = vpop.f32.mrb[1].mxu1 }
 0x11b   :  { %v588_v8 = vadd.f32 %v587_v37, %v5657_v54  ;;  %v1246_v14 = vmax.f32 %v584_v55, 0.0  ;;  %v897_v6 = vadd.f32 %v896_v1, %v6620_v63  ;;  %v898_v12 = vpop.f32.mrb[2].mxu1 }
 0x11c   :  { %v1249_v57 = vmax.f32 %v586_v40, 0.0  ;;  %v1215_v27 = vmax.f32 %v895_v11, 0.0  ;;  %v899_v18 = vadd.f32 %v898_v12, %v6617_v51  ;;  %v900_v10 = vpop.f32.mrb[3].mxu1 }
 0x11d   :  { %v1250_v7 = vmax.f32 %v588_v8, 0.0  ;;  %v1216_v38 = vmax.f32 %v897_v6, 0.0  ;;  %v901_v31 = vadd.f32 %v900_v10, %v6620_v63 }
 0x11e   :  { %1153 = vmatmul.mubr.bf16.gmra.mrb[104].mxu1 %v6435_v28  ;;  %v1485_v16 = vpack.c.bf16 %v1249_v57, %v1245_v60  ;;  %v1219_v13 = vmax.f32 %v899_v18, 0.0 }
 0x11f   :  { %1162 = vmatprep.mubr.bf16.mxu1 %v4899_v4  ;;  %v1486_v17 = vpack.c.bf16 %v1250_v7, %v1246_v14  ;;  %v591_v15 = vpop.f32.mrb[20].mxu0  ;;  %v1220_v21 = vmax.f32 %v901_v31, 0.0 }
 0x120   :  { %v592_v35 = vadd.f32 %v591_v15, %v5654_v53  ;;  %v593_v52 = vpop.f32.mrb[21].mxu0  ;;  %v6633_v0 = vpack.c.bf16 %v1219_v13, %v1215_v27 }
 0x121   :  { %850 = vmatmul.mubr.bf16.gmra.mrb[124].mxu0 %v6602_v3  ;;  %2059 = vmatprep.subr.bf16.mxu1 %v1486_v17  ;;  %v594_v19 = vadd.f32 %v593_v52, %v5657_v54  ;;  %v595_v50 = vpop.f32.mrb[22].mxu0  ;;  %v1472_v45 = vpack.c.bf16 %v1220_v21, %v1216_v38  ;;  %v904_v59 = vpop.f32.mrb[4].mxu1 }
 0x122   :  { %2060 = vmatpush1.bf16.msra.mxu1 %v1485_v16  ;;  %v596_v28 = vadd.f32 %v595_v50, %v5654_v53  ;;  %v597_v24 = vpop.f32.mrb[23].mxu0  ;;  %v1253_v62 = vmax.f32 %v592_v35, 0.0  ;;  %v905_v37 = vadd.f32 %v904_v59, %v6617_v51  ;;  %v906_v8 = vpop.f32.mrb[5].mxu1 }
 0x123   :  { %v598_v5 = vadd.f32 %v597_v24, %v5657_v54  ;;  %v1254_v30 = vmax.f32 %v594_v19, 0.0  ;;  %v907_v60 = vadd.f32 %v906_v8, %v6620_v63  ;;  %v908_v14 = vpop.f32.mrb[6].mxu1  ;;  %4623 = vmatprep.mubr.bf16.mxu0 %v1472_v45 }
 0x124   :  { %v1257_v29 = vmax.f32 %v596_v28, 0.0  ;;  %v1223_v39 = vmax.f32 %v905_v37, 0.0  ;;  %v909_v16 = vadd.f32 %v908_v14, %v6617_v51  ;;  %v910_v15 = vpop.f32.mrb[7].mxu1 }
 0x125   :  { %v1258_v42 = vmax.f32 %v598_v5, 0.0  ;;  %v1224_v52 = vmax.f32 %v907_v60, 0.0  ;;  %v911_v19 = vadd.f32 %v910_v15, %v6620_v63 }
 0x126   :  { %1163 = vmatmul.mubr.bf16.gmra.mrb[108].mxu1 %v6519_v58  ;;  %v1489_v61 = vpack.c.bf16 %v1257_v29, %v1253_v62  ;;  %v1227_v11 = vmax.f32 %v909_v16, 0.0  ;;  %v4900_v16 = vmov 1966171168  }
 0x127   :  { %1172 = vmatprep.mubr.bf16.mxu1 %v4899_v4  ;;  %v1490_v23 = vpack.c.bf16 %v1258_v42, %v1254_v30  ;;  %v601_v20 = vpop.f32.mrb[24].mxu0  ;;  %v1228_v24 = vmax.f32 %v911_v19, 0.0 }
 0x128   :  { %v602_v55 = vadd.f32 %v601_v20, %v5654_v53  ;;  %v603_v40 = vpop.f32.mrb[25].mxu0  ;;  %v6645_v6 = vpack.c.bf16 %v1227_v11, %v1223_v39 }
 0x129   :  { %2061 = vmatprep.subr.bf16.mxu1 %v1490_v23  ;;  %v604_v2 = vadd.f32 %v603_v40, %v5657_v54  ;;  %v605_v58 = vpop.f32.mrb[26].mxu0  ;;  %v1476_v27 = vpack.c.bf16 %v1228_v24, %v1224_v52  ;;  %v914_v18 = vpop.f32.mrb[8].mxu1 }
 0x12a   :  { %2062 = vmatpush1.bf16.msra.mxu1 %v1489_v61  ;;  %v606_v57 = vadd.f32 %v605_v58, %v5654_v53  ;;  %v607_v7 = vpop.f32.mrb[27].mxu0  ;;  %v1261_v35 = vmax.f32 %v602_v55, 0.0  ;;  %v915_v29 = vadd.f32 %v914_v18, %v6617_v51  ;;  %v916_v38 = vpop.f32.mrb[9].mxu1 }
 0x12b   :  { %v608_v17 = vadd.f32 %v607_v7, %v5657_v54  ;;  %v1262_v50 = vmax.f32 %v604_v2, 0.0  ;;  %v917_v30 = vadd.f32 %v916_v38, %v6620_v63  ;;  %v918_v42 = vpop.f32.mrb[10].mxu1  ;;  %4624 = vmatmul.mubr.bf16.vlgmr.msra.gmra.mrb[128].mxu0 %v1476_v27 }
 0x12c   :  { %v1265_v26 = vmax.f32 %v606_v57, 0.0  ;;  %v1231_v21 = vmax.f32 %v915_v29, 0.0  ;;  %v919_v23 = vadd.f32 %v918_v42, %v6617_v51  ;;  %v920_v20 = vpop.f32.mrb[11].mxu1 }
 0x12d   :  { %v1266_v1 = vmax.f32 %v608_v17, 0.0  ;;  %v1232_v55 = vmax.f32 %v917_v30, 0.0  ;;  %v921_v59 = vadd.f32 %v920_v20, %v6620_v63  ;;  %v2032_v17 = vunpack.c.l.s4 %v4900_v16 }
 0x12e   :  { %1173 = vmatmul.mubr.bf16.gmra.mrb[112].mxu1 %v6562_v9  ;;  %v1493_v28 = vpack.c.bf16 %v1265_v26, %v1261_v35  ;;  %v1235_v2 = vmax.f32 %v919_v23, 0.0 }
 0x12f   :  { %1182 = vmatprep.mubr.bf16.mxu1 %v4899_v4  ;;  %v1494_v12 = vpack.c.bf16 %v1266_v1, %v1262_v50  ;;  %v611_v5 = vpop.f32.mrb[28].mxu0  ;;  %v1236_v60 = vmax.f32 %v921_v59, 0.0  ;;  %v2033_v29 = vunpack.c.0.s8 %v2032_v17 }
 0x130   :  { %v612_v10 = vadd.f32 %v611_v5, %v5654_v53  ;;  %v613_v62 = vpop.f32.mrb[29].mxu0  ;;  %v6657_v14 = vpack.c.bf16 %v1235_v2, %v1231_v21 }
 0x131   :  { %2063 = vmatprep.subr.bf16.mxu1 %v1494_v12  ;;  %v614_v31 = vadd.f32 %v613_v62, %v5657_v54  ;;  %v615_v9 = vpop.f32.mrb[30].mxu0  ;;  %v1480_v15 = vpack.c.bf16 %v1236_v60, %v1232_v55  ;;  %v6669_v62 = vld.sshfl [vmem:[%s7582_s5] sm:$0x33 pattern:$0x75316420] }
 0x132   :  { %2064 = vmatpush1.bf16.msra.mxu1 %v1493_v28  ;;  %v616_v13 = vadd.f32 %v615_v9, %v5654_v53  ;;  %v617_v61 = vpop.f32.mrb[31].mxu0  ;;  %v1269_v40 = vmax.f32 %v612_v10, 0.0  ;;  %v2030_v59 = vcombine.high %v6669_v62, %v6669_v62 }
 0x133   :  { %v618_v45 = vadd.f32 %v617_v61, %v5657_v54  ;;  %v1270_v8 = vmax.f32 %v614_v31, 0.0  ;;  %4627 = vmatprep.mubr.bf16.mxu0 %v1480_v15 }
 0x134   :  { %v1273_v37 = vmax.f32 %v616_v13, 0.0 }
 0x135   :  { %v1274_v58 = vmax.f32 %v618_v45, 0.0 }
 0x136   :  { %1183 = vmatmul.mubr.bf16.gmra.mrb[116].mxu1 %v6576_v36  ;;  %v1497_v57 = vpack.c.bf16 %v1273_v37, %v1269_v40  ;;  %v6679_v40 = vsub.s32 %v2033_v29, %v5599_v25 }
 0x137   :  { %1192 = vmatprep.mubr.bf16.mxu1 %v4899_v4  ;;  %v1498_v7 = vpack.c.bf16 %v1274_v58, %v1270_v8  ;;  %v621_v39 = vpop.f32.mrb[32].mxu0 }
 0x138   :  { %v924_v35 = vpop.f32.mrb[12].mxu1  ;;  %v622_v52 = vadd.f32 %v621_v39, %v5654_v53  ;;  %v623_v26 = vpop.f32.mrb[33].mxu0 }
 0x139   :  { %v925_v19 = vadd.f32 %v924_v35, %v6617_v51  ;;  %v926_v50 = vpop.f32.mrb[13].mxu1  ;;  %2065 = vmatprep.subr.bf16.mxu1 %v1498_v7  ;;  %v624_v36 = vadd.f32 %v623_v26, %v5657_v54  ;;  %v625_v11 = vpop.f32.mrb[34].mxu0 }
 0x13a   :  { %v927_v1 = vadd.f32 %v926_v50, %v6620_v63  ;;  %v928_v28 = vpop.f32.mrb[14].mxu1  ;;  %2066 = vmatpush1.bf16.msra.mxu1 %v1497_v57  ;;  %v626_v24 = vadd.f32 %v625_v11, %v5654_v53  ;;  %v627_v12 = vpop.f32.mrb[35].mxu0  ;;  %v1277_v9 = vmax.f32 %v622_v52, 0.0 }
 0x13b   :  { %v1239_v5 = vmax.f32 %v925_v19, 0.0  ;;  %v929_v27 = vadd.f32 %v928_v28, %v6617_v51  ;;  %v930_v18 = vpop.f32.mrb[15].mxu1  ;;  %v628_v10 = vadd.f32 %v627_v12, %v5657_v54  ;;  %v1278_v13 = vmax.f32 %v624_v36, 0.0 }
 0x13c   :  { %v1240_v38 = vmax.f32 %v927_v1, 0.0  ;;  %v931_v31 = vadd.f32 %v930_v18, %v6620_v63  ;;  %v1281_v30 = vmax.f32 %v626_v24, 0.0  ;;  %v6689_v19 = vrot.slane %v2030_v59, %v6679_v40 }
 0x13d   :  { %v1243_v42 = vmax.f32 %v929_v27, 0.0  ;;  %v1282_v61 = vmax.f32 %v628_v10, 0.0 }
 0x13e   :  { %1193 = vmatmul.mubr.bf16.gmra.mrb[120].mxu1 %v6589_v32  ;;  %v1244_v21 = vmax.f32 %v931_v31, 0.0  ;;  %v1501_v23 = vpack.c.bf16 %v1281_v30, %v1277_v9 }
 0x13f   :  { %1202 = vmatprep.mubr.bf16.mxu1 %v4899_v4  ;;  %v6674_v20 = vpack.c.bf16 %v1243_v42, %v1239_v5  ;;  %v1502_v45 = vpack.c.bf16 %v1282_v61, %v1278_v13  ;;  %v631_v55 = vpop.f32.mrb[36].mxu0 }
 0x140   :  { %v1484_v37 = vpack.c.bf16 %v1244_v21, %v1240_v38  ;;  %v934_v2 = vpop.f32.mrb[16].mxu1  ;;  %v632_v8 = vadd.f32 %v631_v55, %v5654_v53  ;;  %v633_v58 = vpop.f32.mrb[37].mxu0 }
 0x141   :  { %v935_v32 = vadd.f32 %v934_v2, %v6617_v51  ;;  %v936_v60 = vpop.f32.mrb[17].mxu1  ;;  %2067 = vmatprep.subr.bf16.mxu1 %v1502_v45  ;;  %v634_v4 = vadd.f32 %v633_v58, %v5657_v54  ;;  %v635_v57 = vpop.f32.mrb[38].mxu0 }
 0x142   :  { %v937_v7 = vadd.f32 %v936_v60, %v6620_v63  ;;  %v938_v39 = vpop.f32.mrb[18].mxu1  ;;  %4628 = vmatmul.mubr.bf16.gmra.mrb[132].mxu0 %v1484_v37  ;;  %2068 = vmatpush1.bf16.msra.mxu1 %v1501_v23  ;;  %v636_v16 = vadd.f32 %v635_v57, %v5654_v53  ;;  %v637_v17 = vpop.f32.mrb[39].mxu0  ;;  %v1285_v11 = vmax.f32 %v632_v8, 0.0 }
 0x143   :  { %v1247_v15 = vmax.f32 %v935_v32, 0.0  ;;  %v939_v35 = vadd.f32 %v938_v39, %v6617_v51  ;;  %v940_v52 = vpop.f32.mrb[19].mxu1  ;;  %v638_v26 = vadd.f32 %v637_v17, %v5657_v54  ;;  %v1286_v24 = vmax.f32 %v634_v4, 0.0 }
 0x144   :  { %v1248_v50 = vmax.f32 %v937_v7, 0.0  ;;  %v941_v36 = vadd.f32 %v940_v52, %v6620_v63  ;;  %v1289_v1 = vmax.f32 %v636_v16, 0.0 }
 0x145   :  { %v1251_v28 = vmax.f32 %v939_v35, 0.0  ;;  %v1290_v12 = vmax.f32 %v638_v26, 0.0 }
 0x146   :  { %1203 = vmatmul.mubr.bf16.gmra.mrb[124].mxu1 %v6602_v3  ;;  %v1252_v5 = vmax.f32 %v941_v36, 0.0  ;;  %v1505_v27 = vpack.c.bf16 %v1289_v1, %v1285_v11 }
 0x147   :  { %v6693_v18 = vpack.c.bf16 %v1251_v28, %v1247_v15  ;;  %v1506_v10 = vpack.c.bf16 %v1290_v12, %v1286_v24  ;;  %v641_v29 = vpop.f32.mrb[40].mxu0  ;;  %2083 = vmatprep.mubr.bf16.mxu1 %v6689_v19 }
 0x148   :  { %v1488_v38 = vpack.c.bf16 %v1252_v5, %v1248_v50  ;;  %v944_v31 = vpop.f32.mrb[20].mxu1  ;;  %v642_v9 = vadd.f32 %v641_v29, %v5654_v53  ;;  %v643_v30 = vpop.f32.mrb[41].mxu0 }
 0x149   :  { %v945_v42 = vadd.f32 %v944_v31, %v6617_v51  ;;  %v946_v13 = vpop.f32.mrb[21].mxu1  ;;  %v644_v61 = vadd.f32 %v643_v30, %v5657_v54  ;;  %v645_v21 = vpop.f32.mrb[42].mxu0  ;;  %2069 = vmatprep.subr.bf16.mxu1 %v1506_v10 }
 0x14a   :  { %v947_v3 = vadd.f32 %v946_v13, %v6620_v63  ;;  %v948_v23 = vpop.f32.mrb[22].mxu1  ;;  %4631 = vmatprep.mubr.bf16.mxu0 %v1488_v38  ;;  %v646_v45 = vadd.f32 %v645_v21, %v5654_v53  ;;  %v647_v55 = vpop.f32.mrb[43].mxu0  ;;  %2070 = vmatpush1.bf16.msra.mxu1 %v1505_v27  ;;  %v1293_v60 = vmax.f32 %v642_v9, 0.0 }
 0x14b   :  { %v1255_v59 = vmax.f32 %v945_v42, 0.0  ;;  %v949_v37 = vadd.f32 %v948_v23, %v6617_v51  ;;  %v950_v2 = vpop.f32.mrb[23].mxu1  ;;  %v648_v8 = vadd.f32 %v647_v55, %v5657_v54  ;;  %v1294_v7 = vmax.f32 %v644_v61, 0.0 }
 0x14c   :  { %v1256_v58 = vmax.f32 %v947_v3, 0.0  ;;  %v951_v32 = vadd.f32 %v950_v2, %v6620_v63  ;;  %v1297_v4 = vmax.f32 %v646_v45, 0.0 }
 0x14d   :  { %v1259_v57 = vmax.f32 %v949_v37, 0.0  ;;  %v1298_v39 = vmax.f32 %v648_v8, 0.0 }
 0x14e   :  { %v1260_v16 = vmax.f32 %v951_v32, 0.0  ;;  %v1509_v17 = vpack.c.bf16 %v1297_v4, %v1293_v60 }
 0x14f   :  { %v6704_v15 = vpack.c.bf16 %v1259_v57, %v1255_v59  ;;  %v1510_v35 = vpack.c.bf16 %v1298_v39, %v1294_v7  ;;  %v651_v52 = vpop.f32.mrb[44].mxu0 }
 0x150   :  { %v1492_v26 = vpack.c.bf16 %v1260_v16, %v1256_v58  ;;  %v954_v50 = vpop.f32.mrb[24].mxu1  ;;  %v652_v36 = vadd.f32 %v651_v52, %v5654_v53  ;;  %v653_v11 = vpop.f32.mrb[45].mxu0 }
 0x151   :  { %v955_v1 = vadd.f32 %v954_v50, %v6617_v51  ;;  %v956_v28 = vpop.f32.mrb[25].mxu1  ;;  %v654_v24 = vadd.f32 %v653_v11, %v5657_v54  ;;  %v655_v12 = vpop.f32.mrb[46].mxu0  ;;  %2071 = vmatprep.subr.bf16.mxu1 %v1510_v35 }
 0x152   :  { %v957_v5 = vadd.f32 %v956_v28, %v6620_v63  ;;  %v958_v27 = vpop.f32.mrb[26].mxu1  ;;  %4632 = vmatmul.mubr.bf16.gmra.mrb[136].mxu0 %v1492_v26  ;;  %v656_v10 = vadd.f32 %v655_v12, %v5654_v53  ;;  %v657_v29 = vpop.f32.mrb[47].mxu0  ;;  %2072 = vmatpush1.bf16.msra.mxu1 %v1509_v17  ;;  %v1301_v61 = vmax.f32 %v652_v36, 0.0 }
 0x153   :  { %v1263_v38 = vmax.f32 %v955_v1, 0.0  ;;  %v959_v31 = vadd.f32 %v958_v27, %v6617_v51  ;;  %v960_v9 = vpop.f32.mrb[27].mxu1  ;;  %v658_v30 = vadd.f32 %v657_v29, %v5657_v54  ;;  %v1302_v23 = vmax.f32 %v654_v24, 0.0 }
 0x154   :  { %v1264_v42 = vmax.f32 %v957_v5, 0.0  ;;  %v961_v13 = vadd.f32 %v960_v9, %v6620_v63  ;;  %v1305_v21 = vmax.f32 %v656_v10, 0.0 }
 0x155   :  { %v1267_v3 = vmax.f32 %v959_v31, 0.0  ;;  %v1306_v45 = vmax.f32 %v658_v30, 0.0 }
 0x156   :  { %v1268_v55 = vmax.f32 %v961_v13, 0.0  ;;  %v1513_v59 = vpack.c.bf16 %v1305_v21, %v1301_v61 }
 0x157   :  { %v6714_v37 = vpack.c.bf16 %v1267_v3, %v1263_v38  ;;  %v1514_v2 = vpack.c.bf16 %v1306_v45, %v1302_v23  ;;  %v661_v8 = vpop.f32.mrb[48].mxu0 }
 0x158   :  { %v1496_v58 = vpack.c.bf16 %v1268_v55, %v1264_v42  ;;  %v964_v32 = vpop.f32.mrb[28].mxu1  ;;  %v662_v60 = vadd.f32 %v661_v8, %v5654_v53  ;;  %v663_v4 = vpop.f32.mrb[49].mxu0 }
 0x159   :  { %v965_v57 = vadd.f32 %v964_v32, %v6617_v51  ;;  %v966_v7 = vpop.f32.mrb[29].mxu1  ;;  %v664_v39 = vadd.f32 %v663_v4, %v5657_v54  ;;  %v665_v16 = vpop.f32.mrb[50].mxu0  ;;  %2073 = vmatprep.subr.bf16.mxu1 %v1514_v2 }
 0x15a   :  { %v967_v17 = vadd.f32 %v966_v7, %v6620_v63  ;;  %v968_v35 = vpop.f32.mrb[30].mxu1  ;;  %4635 = vmatprep.mubr.bf16.mxu0 %v1496_v58  ;;  %v666_v52 = vadd.f32 %v665_v16, %v5654_v53  ;;  %v667_v26 = vpop.f32.mrb[51].mxu0  ;;  %2074 = vmatpush1.bf16.msra.mxu1 %v1513_v59  ;;  %v1309_v12 = vmax.f32 %v662_v60, 0.0 }
 0x15b   :  { %v1271_v50 = vmax.f32 %v965_v57, 0.0  ;;  %v969_v36 = vadd.f32 %v968_v35, %v6617_v51  ;;  %v970_v11 = vpop.f32.mrb[31].mxu1  ;;  %v668_v1 = vadd.f32 %v667_v26, %v5657_v54  ;;  %v1310_v10 = vmax.f32 %v664_v39, 0.0 }
 0x15c   :  { %v1272_v28 = vmax.f32 %v967_v17, 0.0  ;;  %v971_v24 = vadd.f32 %v970_v11, %v6620_v63  ;;  %v1313_v5 = vmax.f32 %v666_v52, 0.0 }
 0x15d   :  { %v1275_v27 = vmax.f32 %v969_v36, 0.0  ;;  %v1314_v29 = vmax.f32 %v668_v1, 0.0 }
 0x15e   :  { %v1276_v38 = vmax.f32 %v971_v24, 0.0  ;;  %v1517_v31 = vpack.c.bf16 %v1313_v5, %v1309_v12 }
 0x15f   :  { %v6724_v9 = vpack.c.bf16 %v1275_v27, %v1271_v50  ;;  %v1518_v30 = vpack.c.bf16 %v1314_v29, %v1310_v10  ;;  %v671_v42 = vpop.f32.mrb[52].mxu0 }
 0x160   :  { %v1500_v13 = vpack.c.bf16 %v1276_v38, %v1272_v28  ;;  %v974_v61 = vpop.f32.mrb[32].mxu1  ;;  %v672_v21 = vadd.f32 %v671_v42, %v5654_v53  ;;  %v673_v3 = vpop.f32.mrb[53].mxu0 }
 0x161   :  { %v975_v23 = vadd.f32 %v974_v61, %v6617_v51  ;;  %v976_v45 = vpop.f32.mrb[33].mxu1  ;;  %v674_v55 = vadd.f32 %v673_v3, %v5657_v54  ;;  %v675_v59 = vpop.f32.mrb[54].mxu0  ;;  %2075 = vmatprep.subr.bf16.mxu1 %v1518_v30 }
 0x162   :  { %v977_v2 = vadd.f32 %v976_v45, %v6620_v63  ;;  %v978_v8 = vpop.f32.mrb[34].mxu1  ;;  %4636 = vmatmul.mubr.bf16.gmra.mrb[140].mxu0 %v1500_v13  ;;  %v676_v58 = vadd.f32 %v675_v59, %v5654_v53  ;;  %v677_v32 = vpop.f32.mrb[55].mxu0  ;;  %2076 = vmatpush1.bf16.msra.mxu1 %v1517_v31  ;;  %v1317_v17 = vmax.f32 %v672_v21, 0.0 }
 0x163   :  { %v1279_v60 = vmax.f32 %v975_v23, 0.0  ;;  %v979_v4 = vadd.f32 %v978_v8, %v6617_v51  ;;  %v980_v57 = vpop.f32.mrb[35].mxu1  ;;  %v678_v7 = vadd.f32 %v677_v32, %v5657_v54  ;;  %v1318_v26 = vmax.f32 %v674_v55, 0.0 }
 0x164   :  { %v1280_v39 = vmax.f32 %v977_v2, 0.0  ;;  %v981_v16 = vadd.f32 %v980_v57, %v6620_v63  ;;  %v1321_v35 = vmax.f32 %v676_v58, 0.0 }
 0x165   :  { %v1283_v52 = vmax.f32 %v979_v4, 0.0  ;;  %v1322_v50 = vmax.f32 %v678_v7, 0.0 }
 0x166   :  { %v1284_v36 = vmax.f32 %v981_v16, 0.0  ;;  %v1521_v11 = vpack.c.bf16 %v1321_v35, %v1317_v17 }
 0x167   :  { %v6734_v1 = vpack.c.bf16 %v1283_v52, %v1279_v60  ;;  %v1522_v28 = vpack.c.bf16 %v1322_v50, %v1318_v26  ;;  %v681_v24 = vpop.f32.mrb[56].mxu0 }
 0x168   :  { %v1504_v12 = vpack.c.bf16 %v1284_v36, %v1280_v39  ;;  %v984_v5 = vpop.f32.mrb[36].mxu1  ;;  %v682_v27 = vadd.f32 %v681_v24, %v5654_v53  ;;  %v683_v10 = vpop.f32.mrb[57].mxu0 }
 0x169   :  { %v985_v29 = vadd.f32 %v984_v5, %v6617_v51  ;;  %v986_v38 = vpop.f32.mrb[37].mxu1  ;;  %v684_v31 = vadd.f32 %v683_v10, %v5657_v54  ;;  %v685_v30 = vpop.f32.mrb[58].mxu0  ;;  %2077 = vmatprep.subr.bf16.mxu1 %v1522_v28 }
 0x16a   :  { %v987_v42 = vadd.f32 %v986_v38, %v6620_v63  ;;  %v988_v13 = vpop.f32.mrb[38].mxu1  ;;  %4639 = vmatprep.mubr.bf16.mxu0 %v1504_v12  ;;  %v686_v61 = vadd.f32 %v685_v30, %v5654_v53  ;;  %v687_v21 = vpop.f32.mrb[59].mxu0  ;;  %2078 = vmatpush1.bf16.msra.mxu1 %v1521_v11  ;;  %v1325_v8 = vmax.f32 %v682_v27, 0.0 }
 0x16b   :  { %v1287_v3 = vmax.f32 %v985_v29, 0.0  ;;  %v989_v23 = vadd.f32 %v988_v13, %v6617_v51  ;;  %v990_v45 = vpop.f32.mrb[39].mxu1  ;;  %v688_v55 = vadd.f32 %v687_v21, %v5657_v54  ;;  %v1326_v60 = vmax.f32 %v684_v31, 0.0 }
 0x16c   :  { %v1288_v59 = vmax.f32 %v987_v42, 0.0  ;;  %v991_v2 = vadd.f32 %v990_v45, %v6620_v63  ;;  %v1329_v58 = vmax.f32 %v686_v61, 0.0 }
 0x16d   :  { %v1291_v32 = vmax.f32 %v989_v23, 0.0  ;;  %v1330_v4 = vmax.f32 %v688_v55, 0.0 }
 0x16e   :  { %v1292_v57 = vmax.f32 %v991_v2, 0.0  ;;  %v1525_v7 = vpack.c.bf16 %v1329_v58, %v1325_v8 }
 0x16f   :  { %v6744_v39 = vpack.c.bf16 %v1291_v32, %v1287_v3  ;;  %v1526_v16 = vpack.c.bf16 %v1330_v4, %v1326_v60  ;;  %v691_v17 = vpop.f32.mrb[60].mxu0 }
 0x170   :  { %v1508_v35 = vpack.c.bf16 %v1292_v57, %v1288_v59  ;;  %v994_v52 = vpop.f32.mrb[40].mxu1  ;;  %v692_v26 = vadd.f32 %v691_v17, %v5654_v53  ;;  %v693_v50 = vpop.f32.mrb[61].mxu0 }
 0x171   :  { %v995_v36 = vadd.f32 %v994_v52, %v6617_v51  ;;  %v996_v11 = vpop.f32.mrb[41].mxu1  ;;  %v694_v28 = vadd.f32 %v693_v50, %v5657_v54  ;;  %v695_v24 = vpop.f32.mrb[62].mxu0  ;;  %2079 = vmatprep.subr.bf16.mxu1 %v1526_v16  ;;  %v6761_v52 = vrot.slane %v6669_v62, %v6679_v40  ;;  %v6770_v40 = vcombine.high %v6689_v19, %v6689_v19 }
 0x172   :  { %4640 = vmatmul.mubr.bf16.gmra.mrb[144].mxu0 %v1508_v35  ;;  %v997_v12 = vadd.f32 %v996_v11, %v6620_v63  ;;  %v998_v5 = vpop.f32.mrb[42].mxu1  ;;  %v696_v27 = vadd.f32 %v695_v24, %v5654_v53  ;;  %v697_v10 = vpop.f32.mrb[63].mxu0  ;;  %2080 = vmatpush1.bf16.msra.mxu1 %v1525_v7  ;;  %v1333_v61 = vmax.f32 %v692_v26, 0.0 }
 0x173   :  { %v1295_v29 = vmax.f32 %v995_v36, 0.0  ;;  %v999_v38 = vadd.f32 %v998_v5, %v6617_v51  ;;  %v1000_v31 = vpop.f32.mrb[43].mxu1  ;;  %v698_v30 = vadd.f32 %v697_v10, %v5657_v54  ;;  %v1334_v23 = vmax.f32 %v694_v28, 0.0 }
 0x174   :  { %v1296_v42 = vmax.f32 %v997_v12, 0.0  ;;  %v1001_v13 = vadd.f32 %v1000_v31, %v6620_v63  ;;  %v1337_v21 = vmax.f32 %v696_v27, 0.0 }
 0x175   :  { %v1299_v3 = vmax.f32 %v999_v38, 0.0  ;;  %v1338_v45 = vmax.f32 %v698_v30, 0.0 }
 0x176   :  { %v1300_v55 = vmax.f32 %v1001_v13, 0.0  ;;  %v1529_v59 = vpack.c.bf16 %v1337_v21, %v1333_v61 }
 0x177   :  { %v6754_v2 = vpack.c.bf16 %v1299_v3, %v1295_v29  ;;  %v1530_v8 = vpack.c.bf16 %v1338_v45, %v1334_v23  ;;  %v701_v58 = vpop.f32.mrb[64].mxu0 }
 0x178   :  { %v1512_v32 = vpack.c.bf16 %v1300_v55, %v1296_v42  ;;  %v1004_v60 = vpop.f32.mrb[44].mxu1  ;;  %v702_v4 = vadd.f32 %v701_v58, %v5654_v53  ;;  %v703_v57 = vpop.f32.mrb[65].mxu0 }
 0x179   :  { %v1005_v7 = vadd.f32 %v1004_v60, %v6617_v51  ;;  %v1006_v16 = vpop.f32.mrb[45].mxu1  ;;  %v704_v17 = vadd.f32 %v703_v57, %v5657_v54  ;;  %v705_v35 = vpop.f32.mrb[66].mxu0  ;;  %2081 = vmatprep.subr.bf16.mxu1 %v1530_v8 }
 0x17a   :  { %v1007_v26 = vadd.f32 %v1006_v16, %v6620_v63  ;;  %v1008_v50 = vpop.f32.mrb[46].mxu1  ;;  %4643 = vmatprep.mubr.bf16.mxu0 %v1512_v32  ;;  %v706_v36 = vadd.f32 %v705_v35, %v5654_v53  ;;  %v707_v11 = vpop.f32.mrb[67].mxu0  ;;  %2082 = vmatpush1.bf16.msra.mxu1 %v1529_v59  ;;  %v1341_v5 = vmax.f32 %v702_v4, 0.0 }
 0x17b   :  { %v1303_v28 = vmax.f32 %v1005_v7, 0.0  ;;  %v1009_v24 = vadd.f32 %v1008_v50, %v6617_v51  ;;  %v1010_v12 = vpop.f32.mrb[47].mxu1  ;;  %v708_v27 = vadd.f32 %v707_v11, %v5657_v54  ;;  %v1342_v31 = vmax.f32 %v704_v17, 0.0 }
 0x17c   :  { %v1304_v10 = vmax.f32 %v1007_v26, 0.0  ;;  %v1011_v29 = vadd.f32 %v1010_v12, %v6620_v63  ;;  %v1345_v62 = vmax.f32 %v706_v36, 0.0 }
 0x17d   :  { %v1307_v38 = vmax.f32 %v1009_v24, 0.0  ;;  %v1346_v30 = vmax.f32 %v708_v27, 0.0  ;;  %2084 = vmatmul.mubr.bf16.vlgmr.msra.gmra.mrb[128].mxu1 %v6761_v52 }
 0x17e   :  { %v1308_v42 = vmax.f32 %v1011_v29, 0.0  ;;  %v1533_v13 = vpack.c.bf16 %v1345_v62, %v1341_v5  ;;  %2124 = vmatprep.mubr.bf16.mxu1 %v6770_v40 }
 0x17f   :  { %v6774_v61 = vpack.c.bf16 %v1307_v38, %v1303_v28  ;;  %v1534_v21 = vpack.c.bf16 %v1346_v30, %v1342_v31  ;;  %v711_v3 = vpop.f32.mrb[68].mxu0 }
 0x180   :  { %v1516_v23 = vpack.c.bf16 %v1308_v42, %v1304_v10  ;;  %v1014_v45 = vpop.f32.mrb[48].mxu1  ;;  %v712_v55 = vadd.f32 %v711_v3, %v5654_v53  ;;  %v713_v59 = vpop.f32.mrb[69].mxu0 }
 0x181   :  { %v1015_v8 = vadd.f32 %v1014_v45, %v6617_v51  ;;  %v1016_v58 = vpop.f32.mrb[49].mxu1  ;;  %v714_v32 = vadd.f32 %v713_v59, %v5657_v54  ;;  %v715_v60 = vpop.f32.mrb[70].mxu0  ;;  %2092 = vmatprep.subr.bf16.mxu1 %v1534_v21 }
 0x182   :  { %4644 = vmatmul.mubr.bf16.gmra.mrb[148].mxu0 %v1516_v23  ;;  %v1017_v4 = vadd.f32 %v1016_v58, %v6620_v63  ;;  %v1018_v57 = vpop.f32.mrb[50].mxu1  ;;  %v716_v7 = vadd.f32 %v715_v60, %v5654_v53  ;;  %v717_v16 = vpop.f32.mrb[71].mxu0  ;;  %2093 = vmatpush1.bf16.msra.mxu1 %v1533_v13  ;;  %v1349_v28 = vmax.f32 %v712_v55, 0.0 }
 0x183   :  { %v1311_v17 = vmax.f32 %v1015_v8, 0.0  ;;  %v1019_v35 = vadd.f32 %v1018_v57, %v6617_v51  ;;  %v1020_v26 = vpop.f32.mrb[51].mxu1  ;;  %v718_v50 = vadd.f32 %v717_v16, %v5657_v54  ;;  %v1350_v5 = vmax.f32 %v714_v32, 0.0 }
 0x184   :  { %v1312_v36 = vmax.f32 %v1017_v4, 0.0  ;;  %v1021_v11 = vadd.f32 %v1020_v26, %v6620_v63  ;;  %v1353_v24 = vmax.f32 %v716_v7, 0.0 }
 0x185   :  { %v1315_v12 = vmax.f32 %v1019_v35, 0.0  ;;  %v1354_v27 = vmax.f32 %v718_v50, 0.0 }
 0x186   :  { %v1316_v10 = vmax.f32 %v1021_v11, 0.0  ;;  %v1537_v29 = vpack.c.bf16 %v1353_v24, %v1349_v28 }
 0x187   :  { %v6784_v62 = vpack.c.bf16 %v1315_v12, %v1311_v17  ;;  %v1538_v38 = vpack.c.bf16 %v1354_v27, %v1350_v5  ;;  %v721_v31 = vpop.f32.mrb[72].mxu0 }
 0x188   :  { %v1520_v30 = vpack.c.bf16 %v1316_v10, %v1312_v36  ;;  %v1024_v42 = vpop.f32.mrb[52].mxu1  ;;  %v722_v13 = vadd.f32 %v721_v31, %v5654_v53  ;;  %v723_v21 = vpop.f32.mrb[73].mxu0 }
 0x189   :  { %v1025_v3 = vadd.f32 %v1024_v42, %v6617_v51  ;;  %v1026_v23 = vpop.f32.mrb[53].mxu1  ;;  %v725_v45 = vpop.f32.mrb[74].mxu0  ;;  %2094 = vmatprep.subr.bf16.mxu1 %v1538_v38  ;;  %v724_v8 = vadd.f32 %v723_v21, %v5657_v54 }
 0x18a   :  { %v1027_v55 = vadd.f32 %v1026_v23, %v6620_v63  ;;  %v1028_v59 = vpop.f32.mrb[54].mxu1  ;;  %4647 = vmatprep.mubr.bf16.mxu0 %v1520_v30  ;;  %v726_v58 = vadd.f32 %v725_v45, %v5654_v53  ;;  %2095 = vmatpush1.bf16.msra.mxu1 %v1537_v29  ;;  %v1357_v57 = vmax.f32 %v722_v13, 0.0  ;;  %v727_v7 = vpop.f32.mrb[75].mxu0 }
 0x18b   :  { %v1319_v32 = vmax.f32 %v1025_v3, 0.0  ;;  %v1029_v60 = vadd.f32 %v1028_v59, %v6617_v51  ;;  %v1030_v4 = vpop.f32.mrb[55].mxu1  ;;  %v728_v50 = vadd.f32 %v727_v7, %v5657_v54  ;;  %v1358_v28 = vmax.f32 %v724_v8, 0.0 }
 0x18c   :  { %v1320_v17 = vmax.f32 %v1027_v55, 0.0  ;;  %v1031_v35 = vadd.f32 %v1030_v4, %v6620_v63  ;;  %v1361_v26 = vmax.f32 %v726_v58, 0.0 }
 0x18d   :  { %v1323_v36 = vmax.f32 %v1029_v60, 0.0  ;;  %v1362_v12 = vmax.f32 %v728_v50, 0.0 }
 0x18e   :  { %v1324_v11 = vmax.f32 %v1031_v35, 0.0  ;;  %v1541_v24 = vpack.c.bf16 %v1361_v26, %v1357_v57 }
 0x18f   :  { %v6798_v27 = vpack.c.bf16 %v1323_v36, %v1319_v32  ;;  %v731_v10 = vpop.f32.mrb[76].mxu0  ;;  %v1542_v30 = vpack.c.bf16 %v1362_v12, %v1358_v28 }
 0x190   :  { %v1524_v38 = vpack.c.bf16 %v1324_v11, %v1320_v17  ;;  %v1034_v31 = vpop.f32.mrb[56].mxu1  ;;  %v732_v3 = vadd.f32 %v731_v10, %v5654_v53  ;;  %v733_v23 = vpop.f32.mrb[77].mxu0 }
 0x191   :  { %v1035_v13 = vadd.f32 %v1034_v31, %v6617_v51  ;;  %v1036_v21 = vpop.f32.mrb[57].mxu1  ;;  %v734_v59 = vadd.f32 %v733_v23, %v5657_v54  ;;  %v735_v8 = vpop.f32.mrb[78].mxu0  ;;  %2096 = vmatprep.subr.bf16.mxu1 %v1542_v30 }
 0x192   :  { %4648 = vmatmul.mubr.bf16.gmra.mrb[152].mxu0 %v1524_v38  ;;  %v1037_v45 = vadd.f32 %v1036_v21, %v6620_v63  ;;  %v1038_v55 = vpop.f32.mrb[58].mxu1  ;;  %v736_v57 = vadd.f32 %v735_v8, %v5654_v53  ;;  %v737_v7 = vpop.f32.mrb[79].mxu0  ;;  %2097 = vmatpush1.bf16.msra.mxu1 %v1541_v24  ;;  %v1365_v36 = vmax.f32 %v732_v3, 0.0 }
 0x193   :  { %v6792_v16 = vpop.xlane.xlu1 %3319  ;;  %v1327_v32 = vmax.f32 %v1035_v13, 0.0  ;;  %v1039_v60 = vadd.f32 %v1038_v55, %v6617_v51  ;;  %v1040_v4 = vpop.f32.mrb[59].mxu1  ;;  %v738_v28 = vadd.f32 %v737_v7, %v5657_v54  ;;  %v1366_v10 = vmax.f32 %v734_v59, 0.0 }
 0x194   :  { %v3330_v5 = vrot.slane %v6792_v16, %v5631_v41  ;;  %v1328_v35 = vmax.f32 %v1037_v45, 0.0  ;;  %v1041_v26 = vadd.f32 %v1040_v4, %v6620_v63  ;;  %v1369_v11 = vmax.f32 %v736_v57, 0.0 }
 0x195   :  { %v1331_v50 = vmax.f32 %v1039_v60, 0.0  ;;  %v1370_v31 = vmax.f32 %v738_v28, 0.0 }
 0x196   :  { %v1332_v12 = vmax.f32 %v1041_v26, 0.0  ;;  %v1545_v38 = vpack.c.bf16 %v1369_v11, %v1365_v36 }
 0x197   :  { %v741_v30 = vpop.f32.mrb[80].mxu0  ;;  %v1546_v55 = vpack.c.bf16 %v1370_v31, %v1366_v10 }
 0x198   :  { %v1044_v24 = vpop.f32.mrb[60].mxu1  ;;  %v742_v13 = vadd.f32 %v741_v30, %v5654_v53  ;;  %v743_v21 = vpop.f32.mrb[81].mxu0 }
 0x199   :  { %v1045_v23 = vadd.f32 %v1044_v24, %v6617_v51  ;;  %v1046_v45 = vpop.f32.mrb[61].mxu1  ;;  %v744_v3 = vadd.f32 %v743_v21, %v5657_v54  ;;  %v745_v8 = vpop.f32.mrb[82].mxu0  ;;  %2098 = vmatprep.subr.bf16.mxu1 %v1546_v55 }
 0x19a   :  { %v6800_v29 = vpop.xlane.xlu0 %3316  ;;  %v746_v59 = vadd.f32 %v745_v8, %v5654_v53  ;;  %v747_v60 = vpop.f32.mrb[83].mxu0  ;;  %2099 = vmatpush1.bf16.msra.mxu1 %v1545_v38 }
 0x19b   :  { %v3326_v42 = vrot.slane %v6800_v29, %v5631_v41  ;;  %v1335_v4 = vmax.f32 %v1045_v23, 0.0  ;;  %v1374_v28 = vmax.f32 %v744_v3, 0.0 }
 0x19c   :  { %v1377_v36 = vmax.f32 %v746_v59, 0.0 }
 0x19d   :  { %v3331_v58 = vsel %vm3306_vm11, %v3330_v5, %v3326_v42  ;;  %v6814_v5 = vpack.c.bf16 %v1331_v50, %v1327_v32  ;;  %v1528_v42 = vpack.c.bf16 %v1332_v12, %v1328_v35  ;;  %v1048_v32 = vpop.f32.mrb[62].mxu1  ;;  %v1373_v50 = vmax.f32 %v742_v13, 0.0 }
 0x19e   :  { %v3334_v17 = vsel %vm3333_vm13, %v3331_v58, -inf  ;;  %v1047_v58 = vadd.f32 %v1046_v45, %v6620_v63  ;;  %v1049_v57 = vadd.f32 %v1048_v32, %v6617_v51  ;;  %v1050_v7 = vpop.f32.mrb[63].mxu1 }
 0x19f   :  { %3335 = vmax.xlane.f32.xlu0 %v3334_v17  ;;  %4651 = vmatprep.mubr.bf16.mxu0 %v1528_v42  ;;  %v748_v17 = vadd.f32 %v747_v60, %v5657_v54  ;;  %v1051_v26 = vadd.f32 %v1050_v7, %v6620_v63  ;;  %v1549_v31 = vpack.c.bf16 %v1377_v36, %v1373_v50  ;;  %v751_v24 = vpop.f32.mrb[84].mxu0 }
 0x1a0   :  { %v1336_v35 = vmax.f32 %v1047_v58, 0.0  ;;  %v1339_v11 = vmax.f32 %v1049_v57, 0.0  ;;  %v752_v23 = vadd.f32 %v751_v24, %v5654_v53  ;;  %v753_v45 = vpop.f32.mrb[85].mxu0  ;;  %v1054_v55 = vpop.f32.mrb[64].mxu1 }
 0x1a1   :  { %v1378_v12 = vmax.f32 %v748_v17, 0.0  ;;  %v1340_v10 = vmax.f32 %v1051_v26, 0.0  ;;  %v754_v8 = vadd.f32 %v753_v45, %v5657_v54  ;;  %v755_v58 = vpop.f32.mrb[86].mxu0  ;;  %v1055_v38 = vadd.f32 %v1054_v55, %v6617_v51  ;;  %v1056_v13 = vpop.f32.mrb[65].mxu1 }
 0x1a2   :  { %v6824_v30 = vpack.c.bf16 %v1339_v11, %v1335_v4  ;;  %v756_v3 = vadd.f32 %v755_v58, %v5654_v53  ;;  %v757_v32 = vpop.f32.mrb[87].mxu0  ;;  %v1057_v59 = vadd.f32 %v1056_v13, %v6620_v63  ;;  %v1058_v60 = vpop.f32.mrb[66].mxu1 }
 0x1a3   :  { %v1550_v42 = vpack.c.bf16 %v1378_v12, %v1374_v28  ;;  %v1532_v21 = vpack.c.bf16 %v1340_v10, %v1336_v35  ;;  %v758_v4 = vadd.f32 %v757_v32, %v5657_v54  ;;  %v1343_v57 = vmax.f32 %v1055_v38, 0.0  ;;  %v1060_v17 = vpop.f32.mrb[67].mxu1 }
 0x1a4   :  { %v1059_v7 = vadd.f32 %v1058_v60, %v6617_v51  ;;  %v1381_v35 = vmax.f32 %v752_v23, 0.0  ;;  %v1385_v26 = vmax.f32 %v756_v3, 0.0  ;;  %v1344_v50 = vmax.f32 %v1057_v59, 0.0 }
 0x1a5   :  { %2100 = vmatprep.subr.bf16.mxu1 %v1550_v42  ;;  %4652 = vmatmul.mubr.bf16.gmra.mrb[156].mxu0 %v1532_v21  ;;  %v1061_v36 = vadd.f32 %v1060_v17, %v6620_v63  ;;  %v1382_v11 = vmax.f32 %v754_v8, 0.0  ;;  %v1386_v28 = vmax.f32 %v758_v4, 0.0 }
 0x1a6   :  { %2101 = vmatpush1.bf16.msra.mxu1 %v1549_v31  ;;  %v1347_v12 = vmax.f32 %v1059_v7, 0.0  ;;  %v1553_v10 = vpack.c.bf16 %v1385_v26, %v1381_v35 }
 0x1a7   :  { %v1348_v42 = vmax.f32 %v1061_v36, 0.0  ;;  %v1554_v31 = vpack.c.bf16 %v1386_v28, %v1382_v11  ;;  %v761_v24 = vpop.f32.mrb[88].mxu0 }
 0x1a8   :  { %v6834_v21 = vpack.c.bf16 %v1347_v12, %v1343_v57  ;;  %v762_v45 = vadd.f32 %v761_v24, %v5654_v53  ;;  %v763_v55 = vpop.f32.mrb[89].mxu0  ;;  %v1064_v38 = vpop.f32.mrb[68].mxu1 }
 0x1a9   :  { %v1536_v58 = vpack.c.bf16 %v1348_v42, %v1344_v50  ;;  %v764_v23 = vadd.f32 %v763_v55, %v5657_v54  ;;  %v765_v13 = vpop.f32.mrb[90].mxu0  ;;  %2102 = vmatprep.subr.bf16.mxu1 %v1554_v31  ;;  %v1065_v3 = vadd.f32 %v1064_v38, %v6617_v51  ;;  %v1066_v8 = vpop.f32.mrb[69].mxu1 }
 0x1aa   :  { %v766_v32 = vadd.f32 %v765_v13, %v5654_v53  ;;  %v767_v59 = vpop.f32.mrb[91].mxu0  ;;  %2103 = vmatpush1.bf16.msra.mxu1 %v1553_v10  ;;  %v1067_v60 = vadd.f32 %v1066_v8, %v6620_v63  ;;  %v1068_v4 = vpop.f32.mrb[70].mxu1  ;;  %v1389_v26 = vmax.f32 %v762_v45, 0.0 }
 0x1ab   :  { %4655 = vmatprep.mubr.bf16.mxu0 %v1536_v58  ;;  %v768_v57 = vadd.f32 %v767_v59, %v5657_v54  ;;  %v1351_v7 = vmax.f32 %v1065_v3, 0.0  ;;  %v1069_v17 = vadd.f32 %v1068_v4, %v6617_v51  ;;  %v1070_v35 = vpop.f32.mrb[71].mxu1  ;;  %v1390_v28 = vmax.f32 %v764_v23, 0.0 }
 0x1ac   :  { %v1393_v50 = vmax.f32 %v766_v32, 0.0  ;;  %v1352_v36 = vmax.f32 %v1067_v60, 0.0  ;;  %v1071_v11 = vadd.f32 %v1070_v35, %v6620_v63 }
 0x1ad   :  { %v1394_v12 = vmax.f32 %v768_v57, 0.0  ;;  %v1355_v42 = vmax.f32 %v1069_v17, 0.0 }
 0x1ae   :  { %v1557_v31 = vpack.c.bf16 %v1393_v50, %v1389_v26  ;;  %v1356_v10 = vmax.f32 %v1071_v11, 0.0 }
 0x1af   :  { %v1558_v24 = vpack.c.bf16 %v1394_v12, %v1390_v28  ;;  %v771_v55 = vpop.f32.mrb[92].mxu0  ;;  %v6844_v38 = vpack.c.bf16 %v1355_v42, %v1351_v7 }
 0x1b0   :  { %v772_v58 = vadd.f32 %v771_v55, %v5654_v53  ;;  %v773_v13 = vpop.f32.mrb[93].mxu0  ;;  %v1540_v3 = vpack.c.bf16 %v1356_v10, %v1352_v36  ;;  %v1074_v8 = vpop.f32.mrb[72].mxu1 }
 0x1b1   :  { %v774_v45 = vadd.f32 %v773_v13, %v5657_v54  ;;  %v775_v32 = vpop.f32.mrb[94].mxu0  ;;  %2104 = vmatprep.subr.bf16.mxu1 %v1558_v24  ;;  %v1075_v59 = vadd.f32 %v1074_v8, %v6617_v51  ;;  %v1076_v23 = vpop.f32.mrb[73].mxu1 }
 0x1b2   :  { %v776_v60 = vadd.f32 %v775_v32, %v5654_v53  ;;  %v777_v4 = vpop.f32.mrb[95].mxu0  ;;  %2105 = vmatpush1.bf16.msra.mxu1 %v1557_v31  ;;  %v1077_v57 = vadd.f32 %v1076_v23, %v6620_v63  ;;  %v1078_v7 = vpop.f32.mrb[74].mxu1  ;;  %4656 = vmatmul.mubr.bf16.gmra.mrb[160].mxu0 %v1540_v3  ;;  %v1397_v36 = vmax.f32 %v772_v58, 0.0 }
 0x1b3   :  { %v778_v17 = vadd.f32 %v777_v4, %v5657_v54  ;;  %v1359_v35 = vmax.f32 %v1075_v59, 0.0  ;;  %v1079_v26 = vadd.f32 %v1078_v7, %v6617_v51  ;;  %v1080_v50 = vpop.f32.mrb[75].mxu1  ;;  %v1398_v42 = vmax.f32 %v774_v45, 0.0 }
 0x1b4   :  { %v1401_v11 = vmax.f32 %v776_v60, 0.0  ;;  %v1360_v28 = vmax.f32 %v1077_v57, 0.0  ;;  %v1081_v12 = vadd.f32 %v1080_v50, %v6620_v63 }
 0x1b5   :  { %v1402_v10 = vmax.f32 %v778_v17, 0.0  ;;  %v1363_v24 = vmax.f32 %v1079_v26, 0.0 }
 0x1b6   :  { %v1561_v55 = vpack.c.bf16 %v1401_v11, %v1397_v36  ;;  %v1364_v31 = vmax.f32 %v1081_v12, 0.0 }
 0x1b7   :  { %v1562_v13 = vpack.c.bf16 %v1402_v10, %v1398_v42  ;;  %v781_v8 = vpop.f32.mrb[96].mxu0  ;;  %v6854_v32 = vpack.c.bf16 %v1363_v24, %v1359_v35 }
 0x1b8   :  { %v782_v3 = vadd.f32 %v781_v8, %v5654_v53  ;;  %v783_v59 = vpop.f32.mrb[97].mxu0  ;;  %v1544_v23 = vpack.c.bf16 %v1364_v31, %v1360_v28  ;;  %v1084_v4 = vpop.f32.mrb[76].mxu1 }
 0x1b9   :  { %v784_v58 = vadd.f32 %v783_v59, %v5657_v54  ;;  %v785_v60 = vpop.f32.mrb[98].mxu0  ;;  %2106 = vmatprep.subr.bf16.mxu1 %v1562_v13  ;;  %v1085_v57 = vadd.f32 %v1084_v4, %v6617_v51  ;;  %v1086_v45 = vpop.f32.mrb[77].mxu1 }
 0x1ba   :  { %v786_v7 = vadd.f32 %v785_v60, %v5654_v53  ;;  %v787_v17 = vpop.f32.mrb[99].mxu0  ;;  %2107 = vmatpush1.bf16.msra.mxu1 %v1561_v55  ;;  %v1087_v26 = vadd.f32 %v1086_v45, %v6620_v63  ;;  %v1088_v35 = vpop.f32.mrb[78].mxu1  ;;  %4659 = vmatprep.mubr.bf16.mxu0 %v1544_v23  ;;  %v1405_v12 = vmax.f32 %v782_v3, 0.0 }
 0x1bb   :  { %v788_v50 = vadd.f32 %v787_v17, %v5657_v54  ;;  %v1367_v36 = vmax.f32 %v1085_v57, 0.0  ;;  %v1089_v11 = vadd.f32 %v1088_v35, %v6617_v51  ;;  %v1090_v28 = vpop.f32.mrb[79].mxu1  ;;  %v1406_v31 = vmax.f32 %v784_v58, 0.0 }
 0x1bc   :  { %v1409_v42 = vmax.f32 %v786_v7, 0.0  ;;  %v1368_v10 = vmax.f32 %v1087_v26, 0.0  ;;  %v1091_v24 = vadd.f32 %v1090_v28, %v6620_v63 }
 0x1bd   :  { %v1410_v13 = vmax.f32 %v788_v50, 0.0  ;;  %v1371_v8 = vmax.f32 %v1089_v11, 0.0 }
 0x1be   :  { %v1565_v59 = vpack.c.bf16 %v1409_v42, %v1405_v12  ;;  %v1372_v55 = vmax.f32 %v1091_v24, 0.0 }
 0x1bf   :  { %v1566_v4 = vpack.c.bf16 %v1410_v13, %v1406_v31  ;;  %v791_v60 = vpop.f32.mrb[100].mxu0  ;;  %v6864_v45 = vpack.c.bf16 %v1371_v8, %v1367_v36 }
 0x1c0   :  { %v792_v23 = vadd.f32 %v791_v60, %v5654_v53  ;;  %v793_v57 = vpop.f32.mrb[101].mxu0  ;;  %v1548_v17 = vpack.c.bf16 %v1372_v55, %v1368_v10  ;;  %v1094_v35 = vpop.f32.mrb[80].mxu1 }
 0x1c1   :  { %v794_v3 = vadd.f32 %v793_v57, %v5657_v54  ;;  %v795_v7 = vpop.f32.mrb[102].mxu0  ;;  %2108 = vmatprep.subr.bf16.mxu1 %v1566_v4  ;;  %v1095_v26 = vadd.f32 %v1094_v35, %v6617_v51  ;;  %v1096_v58 = vpop.f32.mrb[81].mxu1 }
 0x1c2   :  { %v796_v50 = vadd.f32 %v795_v7, %v5654_v53  ;;  %v797_v11 = vpop.f32.mrb[103].mxu0  ;;  %2109 = vmatpush1.bf16.msra.mxu1 %v1565_v59  ;;  %v1097_v28 = vadd.f32 %v1096_v58, %v6620_v63  ;;  %v1098_v36 = vpop.f32.mrb[82].mxu1  ;;  %4660 = vmatmul.mubr.bf16.gmra.mrb[164].mxu0 %v1548_v17  ;;  %v1413_v31 = vmax.f32 %v792_v23, 0.0 }
 0x1c3   :  { %v798_v12 = vadd.f32 %v797_v11, %v5657_v54  ;;  %v1375_v42 = vmax.f32 %v1095_v26, 0.0  ;;  %v1099_v10 = vadd.f32 %v1098_v36, %v6617_v51  ;;  %v1100_v24 = vpop.f32.mrb[83].mxu1  ;;  %v1414_v4 = vmax.f32 %v794_v3, 0.0 }
 0x1c4   :  { %v1417_v13 = vmax.f32 %v796_v50, 0.0  ;;  %v1376_v8 = vmax.f32 %v1097_v28, 0.0  ;;  %v1101_v55 = vadd.f32 %v1100_v24, %v6620_v63 }
 0x1c5   :  { %v1418_v60 = vmax.f32 %v798_v12, 0.0  ;;  %v1379_v57 = vmax.f32 %v1099_v10, 0.0 }
 0x1c6   :  { %v1569_v35 = vpack.c.bf16 %v1417_v13, %v1413_v31  ;;  %v1380_v59 = vmax.f32 %v1101_v55, 0.0 }
 0x1c7   :  { %v1570_v7 = vpack.c.bf16 %v1418_v60, %v1414_v4  ;;  %v801_v58 = vpop.f32.mrb[104].mxu0  ;;  %v6874_v49 = vpack.c.bf16 %v1379_v57, %v1375_v42 }
 0x1c8   :  { %v802_v17 = vadd.f32 %v801_v58, %v5654_v53  ;;  %v803_v26 = vpop.f32.mrb[105].mxu0  ;;  %v1552_v11 = vpack.c.bf16 %v1380_v59, %v1376_v8  ;;  %v1104_v50 = vpop.f32.mrb[84].mxu1 }
 0x1c9   :  { %v804_v36 = vadd.f32 %v803_v26, %v5657_v54  ;;  %v805_v23 = vpop.f32.mrb[106].mxu0  ;;  %2110 = vmatprep.subr.bf16.mxu1 %v1570_v7  ;;  %v1105_v12 = vadd.f32 %v1104_v50, %v6617_v51  ;;  %v1106_v10 = vpop.f32.mrb[85].mxu1 }
 0x1ca   :  { %v806_v28 = vadd.f32 %v805_v23, %v5654_v53  ;;  %v807_v3 = vpop.f32.mrb[107].mxu0  ;;  %2111 = vmatpush1.bf16.msra.mxu1 %v1569_v35  ;;  %4663 = vmatprep.mubr.bf16.mxu0 %v1552_v11  ;;  %v1107_v24 = vadd.f32 %v1106_v10, %v6620_v63  ;;  %v1108_v31 = vpop.f32.mrb[86].mxu1  ;;  %v1421_v13 = vmax.f32 %v802_v17, 0.0 }
 0x1cb   :  { %v808_v42 = vadd.f32 %v807_v3, %v5657_v54  ;;  %v1383_v55 = vmax.f32 %v1105_v12, 0.0  ;;  %v1109_v4 = vadd.f32 %v1108_v31, %v6617_v51  ;;  %v1110_v60 = vpop.f32.mrb[87].mxu1  ;;  %v1422_v57 = vmax.f32 %v804_v36, 0.0 }
 0x1cc   :  { %v1425_v8 = vmax.f32 %v806_v28, 0.0  ;;  %v1384_v7 = vmax.f32 %v1107_v24, 0.0  ;;  %v1111_v35 = vadd.f32 %v1110_v60, %v6620_v63 }
 0x1cd   :  { %v1426_v59 = vmax.f32 %v808_v42, 0.0  ;;  %v1387_v26 = vmax.f32 %v1109_v4, 0.0 }
 0x1ce   :  { %v1573_v58 = vpack.c.bf16 %v1425_v8, %v1421_v13  ;;  %v1388_v50 = vmax.f32 %v1111_v35, 0.0 }
 0x1cf   :  { %v1574_v23 = vpack.c.bf16 %v1426_v59, %v1422_v57  ;;  %v6885_v56 = vpack.c.bf16 %v1387_v26, %v1383_v55 }
 0x1d0   :  { %v1556_v12 = vpack.c.bf16 %v1388_v50, %v1384_v7  ;;  %v1114_v36 = vpop.f32.mrb[88].mxu1 }
 0x1d1   :  { %2112 = vmatprep.subr.bf16.mxu1 %v1574_v23  ;;  %v1115_v31 = vadd.f32 %v1114_v36, %v6617_v51  ;;  %v1116_v13 = vpop.f32.mrb[89].mxu1 }
 0x1d2   :  { %2113 = vmatpush1.bf16.msra.mxu1 %v1573_v58  ;;  %v1117_v4 = vadd.f32 %v1116_v13, %v6620_v63  ;;  %v1118_v60 = vpop.f32.mrb[90].mxu1  ;;  %4664 = vmatmul.mubr.bf16.gmra.mrb[168].mxu0 %v1556_v12 }
 0x1d3   :  { %v1391_v59 = vmax.f32 %v1115_v31, 0.0  ;;  %v1119_v35 = vadd.f32 %v1118_v60, %v6617_v51  ;;  %v1120_v7 = vpop.f32.mrb[91].mxu1 }
 0x1d4   :  { %v811_v11 = vpop.f32.mrb[108].mxu0  ;;  %v1121_v58 = vadd.f32 %v1120_v7, %v6620_v63 }
 0x1d5   :  { %v812_v3 = vadd.f32 %v811_v11, %v5654_v53  ;;  %v813_v10 = vpop.f32.mrb[109].mxu0  ;;  %v1392_v11 = vmax.f32 %v1117_v4, 0.0 }
 0x1d6   :  { %v814_v17 = vadd.f32 %v813_v10, %v5657_v54  ;;  %v815_v28 = vpop.f32.mrb[110].mxu0  ;;  %v1395_v10 = vmax.f32 %v1119_v35, 0.0 }
 0x1d7   :  { %v816_v42 = vadd.f32 %v815_v28, %v5654_v53  ;;  %v817_v24 = vpop.f32.mrb[111].mxu0  ;;  %v1429_v55 = vmax.f32 %v812_v3, 0.0 }
 0x1d8   :  { %v818_v8 = vadd.f32 %v817_v24, %v5657_v54  ;;  %v1430_v26 = vmax.f32 %v814_v17, 0.0  ;;  %v1396_v24 = vmax.f32 %v1121_v58, 0.0  ;;  %v6895_v12 = vpack.c.bf16 %v1395_v10, %v1391_v59  ;;  %v1124_v17 = vpop.f32.mrb[92].mxu1 }
 0x1d9   :  { %v1433_v57 = vmax.f32 %v816_v42, 0.0  ;;  %v1125_v60 = vadd.f32 %v1124_v17, %v6617_v51 }
 0x1da   :  { %v1434_v23 = vmax.f32 %v818_v8, 0.0  ;;  %v1560_v31 = vpack.c.bf16 %v1396_v24, %v1392_v11 }
 0x1db   :  { %v1577_v50 = vpack.c.bf16 %v1433_v57, %v1429_v55  ;;  %v1126_v55 = vpop.f32.mrb[93].mxu1 }
 0x1dc   :  { %v1578_v28 = vpack.c.bf16 %v1434_v23, %v1430_v26  ;;  %v821_v36 = vpop.f32.mrb[112].mxu0  ;;  %v1127_v35 = vadd.f32 %v1126_v55, %v6620_v63  ;;  %v1128_v7 = vpop.f32.mrb[94].mxu1  ;;  %4667 = vmatprep.mubr.bf16.mxu0 %v1560_v31 }
 0x1dd   :  { %v822_v13 = vadd.f32 %v821_v36, %v5654_v53  ;;  %v823_v25 = vpop.f32.mrb[113].mxu0  ;;  %v1129_v23 = vadd.f32 %v1128_v7, %v6617_v51  ;;  %v1130_v11 = vpop.f32.mrb[95].mxu1 }
 0x1de   :  { %v824_v3 = vadd.f32 %v823_v25, %v5657_v54  ;;  %v825_v42 = vpop.f32.mrb[114].mxu0  ;;  %2114 = vmatprep.subr.bf16.mxu1 %v1578_v28  ;;  %v1399_v25 = vmax.f32 %v1125_v60, 0.0  ;;  %v1400_v28 = vmax.f32 %v1127_v35, 0.0 }
 0x1df   :  { %v826_v8 = vadd.f32 %v825_v42, %v5654_v53  ;;  %v827_v4 = vpop.f32.mrb[115].mxu0  ;;  %2115 = vmatpush1.bf16.msra.mxu1 %v1577_v50  ;;  %v1437_v59 = vmax.f32 %v822_v13, 0.0  ;;  %v1131_v50 = vadd.f32 %v1130_v11, %v6620_v63  ;;  %v1403_v24 = vmax.f32 %v1129_v23, 0.0 }
 0x1e0   :  { %v828_v57 = vadd.f32 %v827_v4, %v5657_v54  ;;  %v1438_v58 = vmax.f32 %v824_v3, 0.0 }
 0x1e1   :  { %v1441_v26 = vmax.f32 %v826_v8, 0.0  ;;  %v1404_v4 = vmax.f32 %v1131_v50, 0.0  ;;  %v6905_v31 = vpack.c.bf16 %v1403_v24, %v1399_v25  ;;  %v1134_v3 = vpop.f32.mrb[96].mxu1 }
 0x1e2   :  { %v1442_v10 = vmax.f32 %v828_v57, 0.0  ;;  %v1135_v7 = vadd.f32 %v1134_v3, %v6617_v51 }
 0x1e3   :  { %v1581_v36 = vpack.c.bf16 %v1441_v26, %v1437_v59  ;;  %v1564_v60 = vpack.c.bf16 %v1404_v4, %v1400_v28  ;;  %v1136_v59 = vpop.f32.mrb[97].mxu1 }
 0x1e4   :  { %v1582_v42 = vpack.c.bf16 %v1442_v10, %v1438_v58  ;;  %v831_v17 = vpop.f32.mrb[116].mxu0  ;;  %v1137_v23 = vadd.f32 %v1136_v59, %v6620_v63  ;;  %v1138_v11 = vpop.f32.mrb[98].mxu1 }
 0x1e5   :  { %v832_v55 = vadd.f32 %v831_v17, %v5654_v53  ;;  %v833_v47 = vpop.f32.mrb[117].mxu0  ;;  %4668 = vmatmul.mubr.bf16.gmra.mrb[172].mxu0 %v1564_v60  ;;  %v1139_v10 = vadd.f32 %v1138_v11, %v6617_v51  ;;  %v1140_v28 = vpop.f32.mrb[99].mxu1 }
 0x1e6   :  { %v834_v13 = vadd.f32 %v833_v47, %v5657_v54  ;;  %v835_v8 = vpop.f32.mrb[118].mxu0  ;;  %2116 = vmatprep.subr.bf16.mxu1 %v1582_v42  ;;  %v1407_v47 = vmax.f32 %v1135_v7, 0.0  ;;  %v1408_v42 = vmax.f32 %v1137_v23, 0.0 }
 0x1e7   :  { %v836_v57 = vadd.f32 %v835_v8, %v5654_v53  ;;  %v837_v35 = vpop.f32.mrb[119].mxu0  ;;  %2117 = vmatpush1.bf16.msra.mxu1 %v1581_v36  ;;  %v1445_v25 = vmax.f32 %v832_v55, 0.0  ;;  %v1141_v36 = vadd.f32 %v1140_v28, %v6620_v63  ;;  %v1411_v4 = vmax.f32 %v1139_v10, 0.0 }
 0x1e8   :  { %v838_v26 = vadd.f32 %v837_v35, %v5657_v54  ;;  %v1446_v50 = vmax.f32 %v834_v13, 0.0 }
 0x1e9   :  { %v1449_v58 = vmax.f32 %v836_v57, 0.0  ;;  %v1412_v35 = vmax.f32 %v1141_v36, 0.0  ;;  %v1567_v60 = vpack.c.bf16 %v1411_v4, %v1407_v47  ;;  %v1144_v11 = vpop.f32.mrb[100].mxu1 }
 0x1ea   :  { %v1450_v24 = vmax.f32 %v838_v26, 0.0  ;;  %v1145_v23 = vadd.f32 %v1144_v11, %v6617_v51 }
 0x1eb   :  { %v1585_v17 = vpack.c.bf16 %v1449_v58, %v1445_v25  ;;  %v1568_v7 = vpack.c.bf16 %v1412_v35, %v1408_v42  ;;  %v1146_v25 = vpop.f32.mrb[101].mxu1  ;;  %4541 = vmatprep.subr.bf16.mxu0 %v1567_v60 }
 0x1ec   :  { %v1586_v8 = vpack.c.bf16 %v1450_v24, %v1446_v50  ;;  %v841_v3 = vpop.f32.mrb[120].mxu0  ;;  %v1147_v10 = vadd.f32 %v1146_v25, %v6620_v63  ;;  %v1148_v28 = vpop.f32.mrb[102].mxu1  ;;  %4542 = vmatpush3.bf16.msra.mxu0 %v6834_v21  ;;  %v1415_v50 = vmax.f32 %v1145_v23, 0.0 }
 0x1ed   :  { %v842_v59 = vadd.f32 %v841_v3, %v5654_v53  ;;  %v843_v48 = vpop.f32.mrb[121].mxu0  ;;  %4671 = vmatprep.mubr.bf16.mxu0 %v1568_v7  ;;  %v1149_v24 = vadd.f32 %v1148_v28, %v6617_v51  ;;  %v1150_v42 = vpop.f32.mrb[103].mxu1 }
 0x1ee   :  { %v844_v55 = vadd.f32 %v843_v48, %v5657_v54  ;;  %v845_v57 = vpop.f32.mrb[122].mxu0  ;;  %2118 = vmatprep.subr.bf16.mxu1 %v1586_v8  ;;  %v1416_v4 = vmax.f32 %v1147_v10, 0.0  ;;  %v1151_v8 = vadd.f32 %v1150_v42, %v6620_v63 }
 0x1ef   :  { %v846_v13 = vadd.f32 %v845_v57, %v5654_v53  ;;  %v847_v26 = vpop.f32.mrb[123].mxu0  ;;  %2119 = vmatpush1.bf16.msra.mxu1 %v1585_v17  ;;  %v1453_v48 = vmax.f32 %v842_v59, 0.0  ;;  %v1419_v35 = vmax.f32 %v1149_v24, 0.0 }
 0x1f0   :  { %v848_v58 = vadd.f32 %v847_v26, %v5657_v54  ;;  %v1454_v36 = vmax.f32 %v844_v55, 0.0  ;;  %v1420_v11 = vmax.f32 %v1151_v8, 0.0 }
 0x1f1   :  { %v1457_v47 = vmax.f32 %v846_v13, 0.0  ;;  %v1571_v21 = vpack.c.bf16 %v1419_v35, %v1415_v50  ;;  %v1154_v25 = vpop.f32.mrb[104].mxu1 }
 0x1f2   :  { %v1458_v17 = vmax.f32 %v848_v58, 0.0  ;;  %v1572_v23 = vpack.c.bf16 %v1420_v11, %v1416_v4  ;;  %v1155_v10 = vadd.f32 %v1154_v25, %v6617_v51  ;;  %v1156_v28 = vpop.f32.mrb[105].mxu1 }
 0x1f3   :  { %v1589_v3 = vpack.c.bf16 %v1457_v47, %v1453_v48  ;;  %4543 = vmatprep.subr.bf16.mxu0 %v1571_v21  ;;  %v1157_v47 = vadd.f32 %v1156_v28, %v6620_v63  ;;  %v1158_v50 = vpop.f32.mrb[106].mxu1 }
 0x1f4   :  { %v1590_v60 = vpack.c.bf16 %v1458_v17, %v1454_v36  ;;  %v851_v57 = vpop.f32.mrb[124].mxu0  ;;  %4672 = vmatmul.mubr.bf16.gmra.mrb[176].mxu0 %v1572_v23  ;;  %v1423_v36 = vmax.f32 %v1155_v10, 0.0  ;;  %v1159_v17 = vadd.f32 %v1158_v50, %v6617_v51  ;;  %v1160_v4 = vpop.f32.mrb[107].mxu1 }
 0x1f5   :  { %v852_v7 = vadd.f32 %v851_v57, %v5654_v53  ;;  %v853_v26 = vpop.f32.mrb[125].mxu0  ;;  %4544 = vmatpush3.bf16.msra.mxu0 %v6844_v38  ;;  %v1161_v35 = vadd.f32 %v1160_v4, %v6620_v63 }
 0x1f6   :  { %v854_v59 = vadd.f32 %v853_v26, %v5657_v54  ;;  %v855_v13 = vpop.f32.mrb[126].mxu0  ;;  %2120 = vmatprep.subr.bf16.mxu1 %v1590_v60  ;;  %v1427_v57 = vmax.f32 %v1159_v17, 0.0 }
 0x1f7   :  { %v856_v55 = vadd.f32 %v855_v13, %v5654_v53  ;;  %v857_v58 = vpop.f32.mrb[127].mxu0  ;;  %2121 = vmatpush1.bf16.msra.mxu1 %v1589_v3  ;;  %v1461_v24 = vmax.f32 %v852_v7, 0.0  ;;  %v1424_v3 = vmax.f32 %v1157_v47, 0.0  ;;  %v1428_v11 = vmax.f32 %v1161_v35, 0.0 }
 0x1f8   :  { %v858_v48 = vadd.f32 %v857_v58, %v5657_v54  ;;  %v1462_v53 = vmax.f32 %v854_v59, 0.0  ;;  %v1575_v26 = vpack.c.bf16 %v1427_v57, %v1423_v36  ;;  %v6934_v7 = vcombine.high %v6761_v52, %v6761_v52 }
 0x1f9   :  { %v1465_v42 = vmax.f32 %v856_v55, 0.0  ;;  %v1576_v21 = vpack.c.bf16 %v1428_v11, %v1424_v3  ;;  %v1164_v13 = vpop.f32.mrb[108].mxu1 }
 0x1fa   :  { %v1466_v8 = vmax.f32 %v858_v48, 0.0  ;;  %v1165_v38 = vadd.f32 %v1164_v13, %v6617_v51  ;;  %v1166_v59 = vpop.f32.mrb[109].mxu1  ;;  %4545 = vmatprep.subr.bf16.mxu0 %v1575_v26 }
 0x1fb   :  { %v1593_v60 = vpack.c.bf16 %v1465_v42, %v1461_v24  ;;  %v1167_v23 = vadd.f32 %v1166_v59, %v6620_v63  ;;  %v1168_v25 = vpop.f32.mrb[110].mxu1  ;;  %4675 = vmatprep.mubr.bf16.mxu0 %v1576_v21  ;;  %4546 = vmatpush3.bf16.msra.mxu0 %v6854_v32 }
 0x1fc   :  { %v1594_v54 = vpack.c.bf16 %v1466_v8, %v1462_v53  ;;  %v1431_v55 = vmax.f32 %v1165_v38, 0.0  ;;  %v1169_v58 = vadd.f32 %v1168_v25, %v6617_v51  ;;  %v1170_v10 = vpop.f32.mrb[111].mxu1 }
 0x1fd   :  { %v1432_v28 = vmax.f32 %v1167_v23, 0.0  ;;  %v1171_v48 = vadd.f32 %v1170_v10, %v6620_v63 }
 0x1fe   :  { %2122 = vmatprep.subr.bf16.mxu1 %v1594_v54  ;;  %v1435_v47 = vmax.f32 %v1169_v58, 0.0  ;;  %v4625_v35 = vpop.f32.mrb[128].mxu0 }
 0x1ff   :  { %2123 = vmatpush1.bf16.msra.mxu1 %v1593_v60  ;;  %v1702_v57 = vpop.f32.mrb[129].mxu0 }
 0x200   :  { %4519 = vmatprep.subr.bf16.mxu1 %v6734_v1  ;;  %v1436_v1 = vmax.f32 %v1171_v48, 0.0  ;;  %v1579_v50 = vpack.c.bf16 %v1435_v47, %v1431_v55  ;;  %v4626_v11 = vpop.f32.mrb[130].mxu0 }
 0x201   :  { %v1174_v42 = vpop.f32.mrb[112].mxu1  ;;  %v1705_v38 = vpop.f32.mrb[131].mxu0 }
 0x202   :  { %2125 = vmatmul.mubr.bf16.vlgmr.msra.gmra.mrb[128].mxu1 %v6934_v7  ;;  %v1580_v24 = vpack.c.bf16 %v1436_v1, %v1432_v28  ;;  %v1175_v32 = vadd.f32 %v1174_v42, %v6617_v51  ;;  %v1176_v36 = vpop.f32.mrb[113].mxu1  ;;  %4547 = vmatprep.subr.bf16.mxu0 %v1579_v50 }
 0x203   :  { %4520 = vmatpush3.bf16.msra.mxu1 %v6633_v0  ;;  %2165 = vmatprep.mubr.bf16.mxu1 %v6689_v19  ;;  %v1177_v0 = vadd.f32 %v1176_v36, %v6620_v63  ;;  %v1178_v17 = vpop.f32.mrb[114].mxu1 }
 0x204   :  { %4521 = vmatprep.subr.bf16.mxu1 %v6744_v39  ;;  %4676 = vmatmul.mubr.bf16.gmra.mrb[180].mxu0 %v1580_v24  ;;  %v1439_v4 = vmax.f32 %v1175_v32, 0.0  ;;  %v1179_v53 = vadd.f32 %v1178_v17, %v6617_v51  ;;  %v1180_v39 = vpop.f32.mrb[115].mxu1 }
 0x205   :  { %4548 = vmatpush3.bf16.msra.mxu0 %v6864_v45  ;;  %v1440_v8 = vmax.f32 %v1177_v0, 0.0  ;;  %v1181_v3 = vadd.f32 %v1180_v39, %v6620_v63 }
 0x207   :  { %4522 = vmatpush3.bf16.msra.mxu1 %v6645_v6  ;;  %v6955_v6 = vld [vmem:[%s7581_s4] ss:$0 sm:$0xff]  ;;  %v1444_v54 = vmax.f32 %v1181_v3, 0.0  ;;  %s4901_s4 = smov [#allocation2]  }
 0x208   :  { %4523 = vmatprep.subr.bf16.mxu1 %v6754_v2  ;;  %v1443_v2 = vmax.f32 %v1179_v53, 0.0  ;;  %v1711_v60 = vadd.f32 %v4625_v35, %v6955_v6  ;;  %v1703_v45 = vadd.f32 %v6955_v6, %v1702_v57  ;;  %v1714_v13 = vadd.f32 %v4626_v11, %v6955_v6  ;;  %s4396_s6 = sshll.u32 %s4901_s4, 4  ;;  %s4397_s6 = int_to_ptr.vmem [resolvable:$true] %s4396_s6 }
 0x209   :  { %v1584_v59 = vpack.c.bf16 %v1444_v54, %v1440_v8  ;;  %v1184_v23 = vpop.f32.mrb[116].mxu1  ;;  %s4875_s17 = scalar_lea.vmem %s4397_s6, 64  ;;  %p4880_p1 = scmp.lt.s32.totalorder %s4397_s6, %s4397_s6 }
 0x20a   :  { %v1583_v26 = vpack.c.bf16 %v1443_v2, %v1439_v4  ;;  %v1959_v21 = vmax.f32 %v1711_v60, 0.0  ;;  %v1957_v25 = vmax.f32 %v1703_v45, 0.0  ;;  %v1185_v55 = vadd.f32 %v1184_v23, %v6617_v51  ;;  %v1186_v58 = vpop.f32.mrb[117].mxu1  ;;  %p4876_p0 = scmp.ne.s32.totalorder %s4397_s6, %s4875_s17  ;;  %p4881_p2 = scmp.lt.s32.totalorder %s4875_s17, %s4875_s17 }
 0x20b   :  { %4524 = vmatpush3.bf16.msra.mxu1 %v6657_v14  ;;  %v1706_v14 = vadd.f32 %v6955_v6, %v1705_v38  ;;  %v1187_v10 = vadd.f32 %v1186_v58, %v6620_v63  ;;  %v1188_v28 = vpop.f32.mrb[118].mxu1  ;;  %4679 = vmatprep.mubr.bf16.mxu0 %v1584_v59 }
 0x20c   :  { %4525 = vmatprep.subr.bf16.mxu1 %v6774_v61  ;;  %4549 = vmatprep.subr.bf16.mxu0 %v1583_v26  ;;  %v1960_v61 = vmax.f32 %v1714_v13, 0.0  ;;  %v1447_v47 = vmax.f32 %v1185_v55, 0.0  ;;  %v1189_v1 = vadd.f32 %v1188_v28, %v6617_v51  ;;  %v1190_v50 = vpop.f32.mrb[119].mxu1  ;;  %p4882_p3 = por %p4881_p2, %p4880_p1 }
 0x20d   :  { %v1958_v48 = vmax.f32 %v1706_v14, 0.0  ;;  %4550 = vmatpush3.bf16.msra.mxu0 %v6874_v49  ;;  %v1191_v42 = vadd.f32 %v1190_v50, %v6620_v63 }
 0x20e   :  { %v6970_v24 = vpack.c.bf16 %v1960_v61, %v1959_v21  ;;  %p4883_p4 = pnand %p4882_p3, %p4876_p0 }
 0x20f   :  { %4526 = vmatpush3.bf16.msra.mxu1 %v6674_v20  ;;  %v1448_v20 = vmax.f32 %v1187_v10, 0.0  ;;  %v6973_v32 = vpack.c.bf16 %v1958_v48, %v1957_v25  ;;  %v1452_v36 = vmax.f32 %v1191_v42, 0.0 }
 0x210   :  { %4527 = vmatprep.subr.bf16.mxu1 %v6784_v62  ;;  %v1451_v62 = vmax.f32 %v1189_v1, 0.0 }
 0x211   :  { %v1588_v17 = vpack.c.bf16 %v1452_v36, %v1448_v20  ;;  %v1194_v4 = vpop.f32.mrb[120].mxu1 }
 0x212   :  { %v1587_v0 = vpack.c.bf16 %v1451_v62, %v1447_v47  ;;  %v1195_v49 = vadd.f32 %v1194_v4, %v6617_v51  ;;  %v1196_v53 = vpop.f32.mrb[121].mxu1 }
 0x213   :  { %4528 = vmatpush3.bf16.msra.mxu1 %v6693_v18  ;;  %4680 = vmatmul.mubr.bf16.gmra.mrb[184].mxu0 %v1588_v17  ;;  %v1197_v39 = vadd.f32 %v1196_v53, %v6620_v63  ;;  %v1198_v8 = vpop.f32.mrb[122].mxu1 }
 0x214   :  { %4529 = vmatprep.subr.bf16.mxu1 %v6798_v27  ;;  %4551 = vmatprep.subr.bf16.mxu0 %v1587_v0  ;;  %v1455_v18 = vmax.f32 %v1195_v49, 0.0  ;;  %v1199_v3 = vadd.f32 %v1198_v8, %v6617_v51  ;;  %v1200_v27 = vpop.f32.mrb[123].mxu1 }
 0x215   :  { %4552 = vmatpush3.bf16.msra.mxu0 %v6885_v56  ;;  %v1456_v35 = vmax.f32 %v1197_v39, 0.0  ;;  %v1201_v2 = vadd.f32 %v1200_v27, %v6620_v63 }
 0x216   :  { %v1459_v60 = vmax.f32 %v1199_v3, 0.0 }
 0x217   :  { %4530 = vmatpush3.bf16.msra.mxu1 %v6704_v15  ;;  %v4629_v15 = vpop.f32.mrb[132].mxu0  ;;  %v1460_v54 = vmax.f32 %v1201_v2, 0.0 }
 0x218   :  { %4531 = vmatprep.subr.bf16.mxu1 %v6814_v5  ;;  %v1727_v57 = vadd.f32 %v4629_v15, %v6955_v6  ;;  %v1718_v5 = vpop.f32.mrb[133].mxu0  ;;  %v1591_v26 = vpack.c.bf16 %v1459_v60, %v1455_v18 }
 0x219   :  { %v1719_v45 = vadd.f32 %v6955_v6, %v1718_v5  ;;  %v4630_v11 = vpop.f32.mrb[134].mxu0  ;;  %v1592_v38 = vpack.c.bf16 %v1460_v54, %v1456_v35  ;;  %v1204_v59 = vpop.f32.mrb[124].mxu1 }
 0x21a   :  { %v1963_v21 = vmax.f32 %v1727_v57, 0.0  ;;  %v1730_v56 = vadd.f32 %v4630_v11, %v6955_v6  ;;  %v1721_v13 = vpop.f32.mrb[135].mxu0  ;;  %v1205_v25 = vadd.f32 %v1204_v59, %v6617_v51  ;;  %v1206_v14 = vpop.f32.mrb[125].mxu1  ;;  %4553 = vmatprep.subr.bf16.mxu0 %v1591_v26 }
 0x21b   :  { %4532 = vmatpush3.bf16.msra.mxu1 %v6714_v37  ;;  %v1961_v23 = vmax.f32 %v1719_v45, 0.0  ;;  %v1722_v37 = vadd.f32 %v6955_v6, %v1721_v13  ;;  %v1207_v55 = vadd.f32 %v1206_v14, %v6620_v63  ;;  %v1208_v58 = vpop.f32.mrb[126].mxu1  ;;  %4683 = vmatprep.mubr.bf16.mxu0 %v1592_v38 }
 0x21c   :  { %4533 = vmatprep.subr.bf16.mxu1 %v6824_v30  ;;  %v1964_v30 = vmax.f32 %v1730_v56, 0.0  ;;  %4554 = vmatpush3.bf16.msra.mxu0 %v6895_v12  ;;  %v1463_v10 = vmax.f32 %v1205_v25, 0.0  ;;  %v1209_v28 = vadd.f32 %v1208_v58, %v6617_v51  ;;  %v1210_v48 = vpop.f32.mrb[127].mxu1 }
 0x21d   :  { %v1962_v61 = vmax.f32 %v1722_v37, 0.0  ;;  %v1464_v1 = vmax.f32 %v1207_v55, 0.0 }
 0x21e   :  { %v6995_v47 = vpack.c.bf16 %v1964_v30, %v1963_v21  ;;  %v1467_v20 = vmax.f32 %v1209_v28, 0.0 }
 0x21f   :  { %4534 = vmatpush3.bf16.msra.mxu1 %v6724_v9  ;;  %v1211_v9 = vadd.f32 %v1210_v48, %v6620_v63  ;;  %v6998_v50 = vpack.c.bf16 %v1962_v61, %v1961_v23 }
 0x220   :  { %v1595_v62 = vpack.c.bf16 %v1467_v20, %v1463_v10 }
 0x221   :  { %v1468_v42 = vmax.f32 %v1211_v9, 0.0 }
 0x222   :  { %2166 = vmatmul.mubr.bf16.vlgmr.msra.gmra.mrb[132].mxu1 %v6761_v52  ;;  %4555 = vmatprep.subr.bf16.mxu0 %v1595_v62 }
 0x223   :  { %2277 = vmatprep.mubr.bf16.mxu1 %v6689_v19  ;;  %v1596_v12 = vpack.c.bf16 %v1468_v42, %v1464_v1  ;;  %4556 = vmatpush3.bf16.msra.mxu0 %v6905_v31 }
 0x225   :  { %4684 = vmatmul.mubr.bf16.gmra.mrb[188].mxu0 %v1596_v12  ;;  %v4633_v4 = vpop.f32.mrb[136].mxu0 }
 0x226   :  { %2205 = vmatprep.mubr.bf16.mxu0 %v6770_v40  ;;  %v1743_v19 = vadd.f32 %v4633_v4, %v6955_v6  ;;  %v1734_v49 = vpop.f32.mrb[137].mxu0 }
 0x227   :  { %v1735_v8 = vadd.f32 %v6955_v6, %v1734_v49  ;;  %v4634_v18 = vpop.f32.mrb[138].mxu0 }
 0x228   :  { %v1967_v3 = vmax.f32 %v1743_v19, 0.0  ;;  %v1746_v27 = vadd.f32 %v4634_v18, %v6955_v6  ;;  %v1737_v35 = vpop.f32.mrb[139].mxu0 }
 0x229   :  { %v1965_v31 = vmax.f32 %v1735_v8, 0.0  ;;  %v1738_v2 = vadd.f32 %v6955_v6, %v1737_v35 }
 0x22c   :  { %v3336_v36 = vpop.xlane.xlu0 %3335 }
 0x22d   :  { %v3341_v51 = vrot.slane %v3336_v36, %v5613_v33  ;;  %v3345_v0 = vrot.slane %v3336_v36, %v5616_v34  ;;  %2206 = vmatmul.mubr.bf16.vlgmr.msra.gmra.mrb[192].mxu0 %v6934_v7 }
 0x22e   :  { %2317 = vmatprep.mubr.bf16.mxu0 %v6770_v40 }
 0x22f   :  { %v3348_v63 = vsub.f32 %v6800_v29, %v3341_v51  ;;  %v3349_v17 = vsub.f32 %v6792_v16, %v3345_v0  ;;  %v1968_v29 = vmax.f32 %v1746_v27, 0.0  ;;  %v1966_v16 = vmax.f32 %v1738_v2, 0.0 }
 0x231   :  { %v3350_v53 = vmul.f32 1.442695, %v3348_v63  ;;  %v3352_v39 = vmul.f32 1.442695, %v3349_v17  ;;  %v7013_v15 = vpack.c.bf16 %v1968_v29, %v1967_v3  ;;  %v7016_v60 = vpack.c.bf16 %v1966_v16, %v1965_v31 }
 0x233   :  { %4868 = vpow2.f32 %v3350_v53 }
 0x234   :  { %4870 = vpow2.f32 %v3352_v39 }
 0x235   :  { %v4637_v54 = vpop.f32.mrb[140].mxu0 }
 0x236   :  { %v1759_v45 = vadd.f32 %v4637_v54, %v6955_v6  ;;  %v1750_v11 = vpop.f32.mrb[141].mxu0 }
 0x237   :  { %v1751_v26 = vadd.f32 %v6955_v6, %v1750_v11  ;;  %v4638_v21 = vpop.f32.mrb[142].mxu0 }
 0x238   :  { %v1971_v56 = vmax.f32 %v1759_v45, 0.0  ;;  %v1762_v40 = vadd.f32 %v4638_v21, %v6955_v6  ;;  %v1753_v13 = vpop.f32.mrb[143].mxu0 }
 0x239   :  { %v1969_v38 = vmax.f32 %v1751_v26, 0.0  ;;  %v1754_v59 = vadd.f32 %v6955_v6, %v1753_v13 }
 0x23a   :  { %v1972_v23 = vmax.f32 %v1762_v40, 0.0 }
 0x23b   :  { %v1970_v37 = vmax.f32 %v1754_v59, 0.0 }
 0x23c   :  { %v7028_v25 = vpack.c.bf16 %v1972_v23, %v1971_v56 }
 0x23d   :  { %v7018_v57 = vpop.eup %4868  ;;  %v7030_v14 = vpack.c.bf16 %v1970_v37, %v1969_v38 }
 0x23e   :  { %v7020_v5 = vpop.eup %4870  ;;  %3357 = vperm.xlu1 %4694, %v7018_v57  }
 0x23f   :  { %3360 = vperm.xlu0 %4695, %v7020_v5  }
 0x245   :  { %v4641_v30 = vpop.f32.mrb[144].mxu0 }
 0x246   :  { %v1775_v55 = vadd.f32 %v4641_v30, %v6955_v6  ;;  %v1766_v58 = vpop.f32.mrb[145].mxu0 }
 0x247   :  { %v1767_v61 = vadd.f32 %v6955_v6, %v1766_v58  ;;  %v4642_v10 = vpop.f32.mrb[146].mxu0 }
 0x248   :  { %v1975_v28 = vmax.f32 %v1775_v55, 0.0  ;;  %v1778_v48 = vadd.f32 %v4642_v10, %v6955_v6  ;;  %v1769_v1 = vpop.f32.mrb[147].mxu0 }
 0x249   :  { %v1973_v9 = vmax.f32 %v1767_v61, 0.0  ;;  %v1770_v20 = vadd.f32 %v6955_v6, %v1769_v1 }
 0x24a   :  { %v1976_v42 = vmax.f32 %v1778_v48, 0.0 }
 0x24b   :  { %v1974_v62 = vmax.f32 %v1770_v20, 0.0 }
 0x24c   :  { %v2222_v12 = vpack.c.bf16 %v1976_v42, %v1975_v28 }
 0x24d   :  { %v2221_v36 = vpack.c.bf16 %v1974_v62, %v1973_v9 }
 0x24f   :  { %4563 = vmatprep.subr.bf16.mxu1 %v2221_v36 }
 0x250   :  { %4564 = vmatpush3.bf16.msra.mxu1 %v6973_v32 }
 0x251   :  { %4565 = vmatprep.subr.bf16.mxu1 %v2222_v12 }
 0x254   :  { %4566 = vmatpush3.bf16.msra.mxu1 %v6970_v24 }
 0x255   :  { %v4645_v51 = vpop.f32.mrb[148].mxu0 }
 0x256   :  { %v1791_v0 = vadd.f32 %v4645_v51, %v6955_v6  ;;  %v1782_v63 = vpop.f32.mrb[149].mxu0 }
 0x257   :  { %v1783_v17 = vadd.f32 %v6955_v6, %v1782_v63  ;;  %v4646_v4 = vpop.f32.mrb[150].mxu0 }
 0x258   :  { %v1979_v19 = vmax.f32 %v1791_v0, 0.0  ;;  %v1794_v49 = vadd.f32 %v4646_v4, %v6955_v6  ;;  %v1785_v53 = vpop.f32.mrb[151].mxu0 }
 0x259   :  { %v1977_v39 = vmax.f32 %v1783_v17, 0.0  ;;  %v1786_v8 = vadd.f32 %v6955_v6, %v1785_v53 }
 0x25a   :  { %v1980_v18 = vmax.f32 %v1794_v49, 0.0 }
 0x25b   :  { %v1978_v3 = vmax.f32 %v1786_v8, 0.0 }
 0x25c   :  { %v2224_v32 = vpack.c.bf16 %v1980_v18, %v1979_v19 }
 0x25d   :  { %v2223_v27 = vpack.c.bf16 %v1978_v3, %v1977_v39 }
 0x25f   :  { %4567 = vmatprep.subr.bf16.mxu1 %v2223_v27 }
 0x260   :  { %4568 = vmatpush3.bf16.msra.mxu1 %v6998_v50 }
 0x261   :  { %4569 = vmatprep.subr.bf16.mxu1 %v2224_v32 }
 0x264   :  { %4570 = vmatpush3.bf16.msra.mxu1 %v6995_v47 }
 0x265   :  { %v4649_v24 = vpop.f32.mrb[152].mxu0 }
 0x266   :  { %v1807_v35 = vadd.f32 %v4649_v24, %v6955_v6  ;;  %v1798_v31 = vpop.f32.mrb[153].mxu0 }
 0x267   :  { %v1799_v2 = vadd.f32 %v6955_v6, %v1798_v31  ;;  %v4650_v29 = vpop.f32.mrb[154].mxu0 }
 0x268   :  { %v1983_v16 = vmax.f32 %v1807_v35, 0.0  ;;  %v1810_v54 = vadd.f32 %v4650_v29, %v6955_v6  ;;  %v1801_v45 = vpop.f32.mrb[155].mxu0 }
 0x269   :  { %v1981_v11 = vmax.f32 %v1799_v2, 0.0  ;;  %v1802_v26 = vadd.f32 %v6955_v6, %v1801_v45 }
 0x26a   :  { %v1984_v21 = vmax.f32 %v1810_v54, 0.0 }
 0x26b   :  { %v1982_v56 = vmax.f32 %v1802_v26, 0.0 }
 0x26c   :  { %v2226_v50 = vpack.c.bf16 %v1984_v21, %v1983_v16 }
 0x26d   :  { %v2225_v40 = vpack.c.bf16 %v1982_v56, %v1981_v11 }
 0x26f   :  { %4571 = vmatprep.subr.bf16.mxu1 %v2225_v40 }
 0x270   :  { %4572 = vmatpush3.bf16.msra.mxu1 %v7016_v60 }
 0x271   :  { %4573 = vmatprep.subr.bf16.mxu1 %v2226_v50 }
 0x274   :  { %4574 = vmatpush3.bf16.msra.mxu1 %v7013_v15 }
 0x278   :  { %v4653_v47 = vpop.f32.mrb[156].mxu0 }
 0x279   :  { %v1823_v13 = vadd.f32 %v4653_v47, %v6955_v6  ;;  %v1814_v38 = vpop.f32.mrb[157].mxu0 }
 0x27a   :  { %v1815_v59 = vadd.f32 %v6955_v6, %v1814_v38  ;;  %v4654_v23 = vpop.f32.mrb[158].mxu0 }
 0x27b   :  { %v1987_v37 = vmax.f32 %v1823_v13, 0.0  ;;  %v1826_v30 = vadd.f32 %v4654_v23, %v6955_v6  ;;  %v1817_v55 = vpop.f32.mrb[159].mxu0 }
 0x27c   :  { %v1985_v58 = vmax.f32 %v1815_v59, 0.0  ;;  %v1818_v61 = vadd.f32 %v6955_v6, %v1817_v55 }
 0x27d   :  { %v1988_v10 = vmax.f32 %v1826_v30, 0.0 }
 0x27e   :  { %v1986_v28 = vmax.f32 %v1818_v61, 0.0 }
 0x27f   :  { %v2228_v60 = vpack.c.bf16 %v1988_v10, %v1987_v37 }
 0x280   :  { %v2227_v48 = vpack.c.bf16 %v1986_v28, %v1985_v58 }
 0x282   :  { %4575 = vmatprep.subr.bf16.mxu1 %v2227_v48 }
 0x283   :  { %4576 = vmatpush3.bf16.msra.mxu1 %v7030_v14 }
 0x284   :  { %4577 = vmatprep.subr.bf16.mxu1 %v2228_v60 }
 0x285   :  { %v4657_v15 = vpop.f32.mrb[160].mxu0 }
 0x286   :  { %v1839_v1 = vadd.f32 %v4657_v15, %v6955_v6  ;;  %v1830_v9 = vpop.f32.mrb[161].mxu0 }
 0x287   :  { %4578 = vmatpush3.bf16.msra.mxu1 %v7028_v25  ;;  %v1831_v20 = vadd.f32 %v6955_v6, %v1830_v9  ;;  %v4658_v42 = vpop.f32.mrb[162].mxu0 }
 0x288   :  { %v1991_v62 = vmax.f32 %v1839_v1, 0.0  ;;  %v1842_v12 = vadd.f32 %v4658_v42, %v6955_v6  ;;  %v1833_v36 = vpop.f32.mrb[163].mxu0 }
 0x289   :  { %v1989_v51 = vmax.f32 %v1831_v20, 0.0  ;;  %v1834_v0 = vadd.f32 %v6955_v6, %v1833_v36 }
 0x28a   :  { %2278 = vmatmul.mubr.bf16.vlgmr.msra.gmra.mrb[136].mxu1 %v6761_v52  ;;  %v1992_v14 = vmax.f32 %v1842_v12, 0.0 }
 0x28b   :  { %v1990_v63 = vmax.f32 %v1834_v0, 0.0 }
 0x28c   :  { %v7061_v17 = vpack.c.bf16 %v1992_v14, %v1991_v62 }
 0x28d   :  { %v7063_v25 = vpack.c.bf16 %v1990_v63, %v1989_v51 }
 0x295   :  { %v4661_v4 = vpop.f32.mrb[164].mxu0 }
 0x296   :  { %v1855_v19 = vadd.f32 %v4661_v4, %v6955_v6  ;;  %v1846_v49 = vpop.f32.mrb[165].mxu0 }
 0x297   :  { %v1847_v53 = vadd.f32 %v6955_v6, %v1846_v49  ;;  %v4662_v52 = vpop.f32.mrb[166].mxu0 }
 0x298   :  { %v1995_v39 = vmax.f32 %v1855_v19, 0.0  ;;  %v1858_v8 = vadd.f32 %v4662_v52, %v6955_v6  ;;  %v1849_v18 = vpop.f32.mrb[167].mxu0 }
 0x299   :  { %v1993_v3 = vmax.f32 %v1847_v53, 0.0  ;;  %v1850_v32 = vadd.f32 %v6955_v6, %v1849_v18 }
 0x29a   :  { %v1996_v27 = vmax.f32 %v1858_v8, 0.0 }
 0x29b   :  { %v1994_v24 = vmax.f32 %v1850_v32, 0.0 }
 0x29c   :  { %v7069_v35 = vpack.c.bf16 %v1996_v27, %v1995_v39 }
 0x29d   :  { %v7071_v31 = vpack.c.bf16 %v1994_v24, %v1993_v3 }
 0x2a5   :  { %v4665_v2 = vpop.f32.mrb[168].mxu0 }
 0x2a6   :  { %v1871_v29 = vadd.f32 %v4665_v2, %v6955_v6  ;;  %v1862_v16 = vpop.f32.mrb[169].mxu0 }
 0x2a7   :  { %v1863_v54 = vadd.f32 %v6955_v6, %v1862_v16  ;;  %v4666_v45 = vpop.f32.mrb[170].mxu0 }
 0x2a8   :  { %v1999_v11 = vmax.f32 %v1871_v29, 0.0  ;;  %v1874_v26 = vadd.f32 %v4666_v45, %v6955_v6  ;;  %v1865_v21 = vpop.f32.mrb[171].mxu0 }
 0x2a9   :  { %v1997_v56 = vmax.f32 %v1863_v54, 0.0  ;;  %v1866_v50 = vadd.f32 %v6955_v6, %v1865_v21 }
 0x2aa   :  { %v2000_v40 = vmax.f32 %v1874_v26, 0.0 }
 0x2ab   :  { %v1998_v47 = vmax.f32 %v1866_v50, 0.0 }
 0x2ac   :  { %v7077_v13 = vpack.c.bf16 %v2000_v40, %v1999_v11 }
 0x2ad   :  { %v7079_v38 = vpack.c.bf16 %v1998_v47, %v1997_v56 }
 0x2b8   :  { %v4669_v55 = vpop.f32.mrb[172].mxu0 }
 0x2b9   :  { %v1887_v61 = vadd.f32 %v4669_v55, %v6955_v6  ;;  %v1878_v10 = vpop.f32.mrb[173].mxu0 }
 0x2ba   :  { %v1879_v60 = vadd.f32 %v6955_v6, %v1878_v10  ;;  %v4670_v48 = vpop.f32.mrb[174].mxu0 }
 0x2bb   :  { %v2003_v15 = vmax.f32 %v1887_v61, 0.0  ;;  %v1890_v1 = vadd.f32 %v4670_v48, %v6955_v6  ;;  %v1881_v9 = vpop.f32.mrb[175].mxu0 }
 0x2bc   :  { %v2001_v20 = vmax.f32 %v1879_v60, 0.0  ;;  %v1882_v42 = vadd.f32 %v6955_v6, %v1881_v9 }
 0x2bd   :  { %v3358_v59 = vpop.permute.xlu1 %3357  ;;  %v2004_v62 = vmax.f32 %v1890_v1, 0.0 }
 0x2be   :  { %v3361_v23 = vpop.permute.xlu0 %3360  ;;  %v3365_v37 = vrot.slane %v3358_v59, %v5631_v41  ;;  %v2002_v12 = vmax.f32 %v1882_v42, 0.0 }
 0x2bf   :  { %v3369_v30 = vrot.slane %v3361_v23, %v5631_v41  ;;  %v7089_v36 = vpack.c.bf16 %v2004_v62, %v2003_v15 }
 0x2c0   :  { %v7091_v51 = vpack.c.bf16 %v2002_v12, %v2001_v20 }
 0x2c1   :  { %v3370_v58 = vsel %vm3306_vm11, %v3369_v30, %v3365_v37 }
 0x2c2   :  { %v3372_v28 = vsel %vm3333_vm13, %v3370_v58, 0.0  ;;  %vm4297_vm13 = vcmask 1048512  }
 0x2c3   :  { %3373 = vadd.xlane.f32.xlu1 %v3372_v28 }
 0x2c7   :  { %v4673_v0 = vpop.f32.mrb[176].mxu0 }
 0x2c8   :  { %v1903_v14 = vadd.f32 %v4673_v0, %v6955_v6  ;;  %v1894_v63 = vpop.f32.mrb[177].mxu0 }
 0x2c9   :  { %v1895_v4 = vadd.f32 %v6955_v6, %v1894_v63  ;;  %v4674_v19 = vpop.f32.mrb[178].mxu0 }
 0x2ca   :  { %v2007_v49 = vmax.f32 %v1903_v14, 0.0  ;;  %v1906_v53 = vadd.f32 %v4674_v19, %v6955_v6  ;;  %v1897_v52 = vpop.f32.mrb[179].mxu0 }
 0x2cb   :  { %v2005_v39 = vmax.f32 %v1895_v4, 0.0  ;;  %v1898_v8 = vadd.f32 %v6955_v6, %v1897_v52 }
 0x2cc   :  { %v2008_v18 = vmax.f32 %v1906_v53, 0.0 }
 0x2cd   :  { %v2006_v3 = vmax.f32 %v1898_v8, 0.0 }
 0x2ce   :  { %v2238_v32 = vpack.c.bf16 %v2008_v18, %v2007_v49 }
 0x2cf   :  { %v2237_v27 = vpack.c.bf16 %v2006_v3, %v2005_v39 }
 0x2d1   :  { %4585 = vmatprep.subr.bf16.mxu0 %v2237_v27 }
 0x2d2   :  { %4586 = vmatpush3.bf16.msra.mxu0 %v7063_v25 }
 0x2d3   :  { %4587 = vmatprep.subr.bf16.mxu0 %v2238_v32 }
 0x2d5   :  { %v2126_v24 = vpop.f32.mrb[128].mxu1 }
 0x2d6   :  { %v3847_v2 = vrot.slane %v2126_v24, %v5613_v33  ;;  %v7098_v29 = vpop.f32.mrb[129].mxu1  ;;  %4588 = vmatpush3.bf16.msra.mxu0 %v7061_v17  ;;  %v7113_v12 = vrot.slane %v2126_v24, %v5616_v34 }
 0x2d7   :  { %v2130_v16 = vpop.f32.mrb[130].mxu1  ;;  %v4677_v45 = vpop.f32.mrb[180].mxu0 }
 0x2d8   :  { %3853 = vbcast.lane.b32.xlu1 %v3847_v2, 264  ;;  %3849 = vbcast.lane.b32.xlu0 %v3847_v2, 256  ;;  %v2131_v54 = vpop.f32.mrb[131].mxu1  ;;  %v1919_v11 = vadd.f32 %v4677_v45, %v6955_v6  ;;  %v1910_v26 = vpop.f32.mrb[181].mxu0 }
 0x2d9   :  { %v1911_v21 = vadd.f32 %v6955_v6, %v1910_v26  ;;  %v4678_v56 = vpop.f32.mrb[182].mxu0 }
 0x2da   :  { %v2011_v50 = vmax.f32 %v1919_v11, 0.0  ;;  %v1922_v40 = vadd.f32 %v4678_v56, %v6955_v6  ;;  %v1913_v25 = vpop.f32.mrb[183].mxu0 }
 0x2db   :  { %v2009_v47 = vmax.f32 %v1911_v21, 0.0  ;;  %v1914_v59 = vadd.f32 %v6955_v6, %v1913_v25 }
 0x2dc   :  { %3861 = vbcast.lane.b32.xlu1 %v3847_v2, 280  ;;  %3857 = vbcast.lane.b32.xlu0 %v3847_v2, 272  ;;  %v2012_v23 = vmax.f32 %v1922_v40, 0.0 }
 0x2dd   :  { %v2010_v17 = vmax.f32 %v1914_v59, 0.0 }
 0x2de   :  { %v2240_v37 = vpack.c.bf16 %v2012_v23, %v2011_v50 }
 0x2df   :  { %v2239_v30 = vpack.c.bf16 %v2010_v17, %v2009_v47 }
 0x2e0   :  { %3869 = vbcast.lane.b32.xlu1 %v3847_v2, 296  ;;  %3865 = vbcast.lane.b32.xlu0 %v3847_v2, 288 }
 0x2e1   :  { %4589 = vmatprep.subr.bf16.mxu0 %v2239_v30 }
 0x2e2   :  { %4590 = vmatpush3.bf16.msra.mxu0 %v7071_v31 }
 0x2e3   :  { %4591 = vmatprep.subr.bf16.mxu0 %v2240_v37 }
 0x2e4   :  { %3877 = vbcast.lane.b32.xlu1 %v3847_v2, 312  ;;  %3873 = vbcast.lane.b32.xlu0 %v3847_v2, 304 }
 0x2e6   :  { %4592 = vmatpush3.bf16.msra.mxu0 %v7069_v35  ;;  %v4681_v55 = vpop.f32.mrb[184].mxu0 }
 0x2e7   :  { %v1935_v58 = vadd.f32 %v4681_v55, %v6955_v6  ;;  %v1926_v61 = vpop.f32.mrb[185].mxu0 }
 0x2e8   :  { %3885 = vbcast.lane.b32.xlu1 %v3847_v2, 328  ;;  %3881 = vbcast.lane.b32.xlu0 %v3847_v2, 320  ;;  %v1927_v10 = vadd.f32 %v6955_v6, %v1926_v61  ;;  %v4682_v28 = vpop.f32.mrb[186].mxu0 }
 0x2e9   :  { %v2015_v60 = vmax.f32 %v1935_v58, 0.0  ;;  %v1938_v48 = vadd.f32 %v4682_v28, %v6955_v6  ;;  %v1929_v15 = vpop.f32.mrb[187].mxu0 }
 0x2ea   :  { %v2013_v1 = vmax.f32 %v1927_v10, 0.0  ;;  %v1930_v31 = vadd.f32 %v6955_v6, %v1929_v15 }
 0x2eb   :  { %v2016_v9 = vmax.f32 %v1938_v48, 0.0 }
 0x2ec   :  { %3893 = vbcast.lane.b32.xlu1 %v3847_v2, 344  ;;  %3889 = vbcast.lane.b32.xlu0 %v3847_v2, 336  ;;  %v2014_v35 = vmax.f32 %v1930_v31, 0.0 }
 0x2ed   :  { %v2242_v20 = vpack.c.bf16 %v2016_v9, %v2015_v60 }
 0x2ee   :  { %v2241_v42 = vpack.c.bf16 %v2014_v35, %v2013_v1 }
 0x2f0   :  { %3901 = vbcast.lane.b32.xlu1 %v3847_v2, 360  ;;  %3897 = vbcast.lane.b32.xlu0 %v3847_v2, 352 }
 0x2f1   :  { %4593 = vmatprep.subr.bf16.mxu0 %v2241_v42 }
 0x2f2   :  { %4594 = vmatpush3.bf16.msra.mxu0 %v7079_v38 }
 0x2f3   :  { %4595 = vmatprep.subr.bf16.mxu0 %v2242_v20 }
 0x2f4   :  { %3909 = vbcast.lane.b32.xlu1 %v3847_v2, 376  ;;  %3905 = vbcast.lane.b32.xlu0 %v3847_v2, 368 }
 0x2f5   :  { %v4535_v62 = vpop.f32.mrb[132].mxu1 }
 0x2f6   :  { %v4536_v0 = vpop.f32.mrb[133].mxu1  ;;  %4596 = vmatpush3.bf16.msra.mxu0 %v7077_v13 }
 0x2f7   :  { %v4537_v14 = vadd.f32 %v4536_v0, %v4535_v62  ;;  %v4538_v63 = vpop.f32.mrb[134].mxu1 }
 0x2f8   :  { %3920 = vbcast.lane.b32.xlu1 %v7113_v12, 264  ;;  %3916 = vbcast.lane.b32.xlu0 %v7113_v12, 256  ;;  %v4539_v4 = vpop.f32.mrb[135].mxu1  ;;  %v4685_v19 = vpop.f32.mrb[188].mxu0 }
 0x2f9   :  { %v1951_v49 = vadd.f32 %v4685_v19, %v6955_v6  ;;  %v1942_v53 = vpop.f32.mrb[189].mxu0 }
 0x2fa   :  { %v1943_v38 = vadd.f32 %v6955_v6, %v1942_v53  ;;  %v4686_v52 = vpop.f32.mrb[190].mxu0 }
 0x2fb   :  { %v2019_v39 = vmax.f32 %v1951_v49, 0.0  ;;  %v1954_v8 = vadd.f32 %v4686_v52, %v6955_v6  ;;  %v1945_v18 = vpop.f32.mrb[191].mxu0 }
 0x2fc   :  { %3928 = vbcast.lane.b32.xlu1 %v7113_v12, 280  ;;  %3924 = vbcast.lane.b32.xlu0 %v7113_v12, 272  ;;  %v2017_v3 = vmax.f32 %v1943_v38, 0.0  ;;  %v1946_v32 = vadd.f32 %v6955_v6, %v1945_v18 }
 0x2fd   :  { %v2020_v13 = vmax.f32 %v1954_v8, 0.0 }
 0x2fe   :  { %v2018_v27 = vmax.f32 %v1946_v32, 0.0 }
 0x2ff   :  { %v2244_v24 = vpack.c.bf16 %v2020_v13, %v2019_v39 }
 0x300   :  { %3936 = vbcast.lane.b32.xlu1 %v7113_v12, 296  ;;  %3932 = vbcast.lane.b32.xlu0 %v7113_v12, 288  ;;  %v2243_v2 = vpack.c.bf16 %v2018_v27, %v2017_v3  ;;  %v4557_v16 = vpop.f32.mrb[192].mxu0 }
 0x301   :  { %v4558_v54 = vpop.f32.mrb[193].mxu0 }
 0x302   :  { %4597 = vmatprep.subr.bf16.mxu0 %v2243_v2  ;;  %v4559_v45 = vadd.f32 %v4558_v54, %v4557_v16  ;;  %v4560_v11 = vpop.f32.mrb[194].mxu0 }
 0x303   :  { %4598 = vmatpush3.bf16.msra.mxu0 %v7091_v51  ;;  %v4561_v6 = vpop.f32.mrb[195].mxu0  ;;  %v3401_v51 = vrot.slane %v7098_v29, %v5613_v33 }
 0x304   :  { %3944 = vbcast.lane.b32.xlu1 %v7113_v12, 312  ;;  %3940 = vbcast.lane.b32.xlu0 %v7113_v12, 304  ;;  %v7130_v26 = vadd.f32 %v4559_v45, %v4537_v14 }
 0x305   :  { %4599 = vmatprep.subr.bf16.mxu0 %v2244_v24 }
 0x306   :  { %v3675_v28 = vrot.slane %v7130_v26, %v5616_v34 }
 0x307   :  { %4600 = vmatpush3.bf16.msra.mxu0 %v7089_v36  ;;  %v3608_v36 = vrot.slane %v7130_v26, %v5613_v33 }
 0x308   :  { %3952 = vbcast.lane.b32.xlu1 %v7113_v12, 328  ;;  %3948 = vbcast.lane.b32.xlu0 %v7113_v12, 320 }
 0x30a   :  { %2318 = vmatmul.mubr.bf16.vlgmr.msra.gmra.mrb[196].mxu0 %v6934_v7  ;;  %v3468_v7 = vrot.slane %v7098_v29, %v5616_v34 }
 0x30c   :  { %3960 = vbcast.lane.b32.xlu1 %v7113_v12, 344  ;;  %3956 = vbcast.lane.b32.xlu0 %v7113_v12, 336 }
 0x310   :  { %3968 = vbcast.lane.b32.xlu1 %v7113_v12, 360  ;;  %3964 = vbcast.lane.b32.xlu0 %v7113_v12, 352 }
 0x314   :  { %3411 = vbcast.lane.b32.xlu1 %v3401_v51, 272  ;;  %3403 = vbcast.lane.b32.xlu0 %v3401_v51, 256 }
 0x318   :  { %3431 = vbcast.lane.b32.xlu1 %v3401_v51, 312  ;;  %3407 = vbcast.lane.b32.xlu0 %v3401_v51, 264 }
 0x31c   :  { %3439 = vbcast.lane.b32.xlu1 %v3401_v51, 328  ;;  %3415 = vbcast.lane.b32.xlu0 %v3401_v51, 280 }
 0x320   :  { %3447 = vbcast.lane.b32.xlu1 %v3401_v51, 344  ;;  %3419 = vbcast.lane.b32.xlu0 %v3401_v51, 288 }
 0x324   :  { %3455 = vbcast.lane.b32.xlu1 %v3401_v51, 360  ;;  %3423 = vbcast.lane.b32.xlu0 %v3401_v51, 296 }
 0x328   :  { %3463 = vbcast.lane.b32.xlu1 %v3401_v51, 376  ;;  %3427 = vbcast.lane.b32.xlu0 %v3401_v51, 304 }
 0x32c   :  { %3474 = vbcast.lane.b32.xlu1 %v3468_v7, 264  ;;  %3435 = vbcast.lane.b32.xlu0 %v3401_v51, 320 }
 0x330   :  { %3482 = vbcast.lane.b32.xlu1 %v3468_v7, 280  ;;  %3443 = vbcast.lane.b32.xlu0 %v3401_v51, 336 }
 0x334   :  { %3490 = vbcast.lane.b32.xlu1 %v3468_v7, 296  ;;  %3451 = vbcast.lane.b32.xlu0 %v3401_v51, 352 }
 0x338   :  { %3498 = vbcast.lane.b32.xlu1 %v3468_v7, 312  ;;  %3459 = vbcast.lane.b32.xlu0 %v3401_v51, 368 }
 0x33c   :  { %3506 = vbcast.lane.b32.xlu1 %v3468_v7, 328  ;;  %3470 = vbcast.lane.b32.xlu0 %v3468_v7, 256 }
 0x340   :  { %3514 = vbcast.lane.b32.xlu1 %v3468_v7, 344  ;;  %3478 = vbcast.lane.b32.xlu0 %v3468_v7, 272 }
 0x344   :  { %3522 = vbcast.lane.b32.xlu1 %v3468_v7, 360  ;;  %3486 = vbcast.lane.b32.xlu0 %v3468_v7, 288 }
 0x348   :  { %3530 = vbcast.lane.b32.xlu1 %v3468_v7, 376  ;;  %3494 = vbcast.lane.b32.xlu0 %v3468_v7, 304 }
 0x34a   :  { %v7146_v29 = vpop.permute.xlu0 %3849 }
 0x34c   :  { %3502 = vbcast.lane.b32.xlu0 %v3468_v7, 320  ;;  %3614 = vbcast.lane.b32.xlu1 %v3608_v36, 264 }
 0x34e   :  { %v7148_v56 = vpop.permute.xlu0 %3857 }
 0x350   :  { %v3374_v21 = vpop.xlane.xlu1 %3373  ;;  %3510 = vbcast.lane.b32.xlu0 %v3468_v7, 336  ;;  %3622 = vbcast.lane.b32.xlu1 %v3608_v36, 280 }
 0x351   :  { %4872 = vrcp.f32 %v3374_v21 }
 0x352   :  { %v7152_v40 = vpop.permute.xlu0 %3865 }
 0x354   :  { %v7150_v50 = vpop.permute.xlu1 %3853  ;;  %3518 = vbcast.lane.b32.xlu0 %v3468_v7, 352  ;;  %3630 = vbcast.lane.b32.xlu1 %v3608_v36, 296 }
 0x356   :  { %v7156_v47 = vpop.permute.xlu0 %3873 }
 0x358   :  { %v7154_v25 = vpop.permute.xlu1 %3861  ;;  %3526 = vbcast.lane.b32.xlu0 %v3468_v7, 368  ;;  %3638 = vbcast.lane.b32.xlu1 %v3608_v36, 312 }
 0x35a   :  { %v7160_v23 = vpop.permute.xlu0 %3881 }
 0x35b   :  { %v7213_v39 = vpop.eup %4872 }
 0x35c   :  { %v7158_v59 = vpop.permute.xlu1 %3869  ;;  %3646 = vbcast.lane.b32.xlu1 %v3608_v36, 328  ;;  %3610 = vbcast.lane.b32.xlu0 %v3608_v36, 256  ;;  %v3380_v18 = vrot.slane %v7213_v39, %v5613_v33 }
 0x35e   :  { %v7164_v37 = vpop.permute.xlu0 %3889  ;;  %v3387_v13 = vmul.f32 %v7018_v57, %v3380_v18 }
 0x360   :  { %v7162_v17 = vpop.permute.xlu1 %3877  ;;  %3654 = vbcast.lane.b32.xlu1 %v3608_v36, 344  ;;  %3618 = vbcast.lane.b32.xlu0 %v3608_v36, 272  ;;  %v7227_v2 = vrot.slane %v3387_v13, %v5616_v34 }
 0x362   :  { %v7168_v55 = vpop.permute.xlu0 %3897 }
 0x363   :  { %7657 = vst [vmem:[#allocation14_spill] sm:$0xff] %v7168_v55  ;;  %v7277_v55 = vrot.slane %v3387_v13, %v5613_v33 }
 0x364   :  { %v7166_v30 = vpop.permute.xlu1 %3885  ;;  %3662 = vbcast.lane.b32.xlu1 %v3608_v36, 360  ;;  %3626 = vbcast.lane.b32.xlu0 %v3608_v36, 288 }
 0x366   :  { %v7172_v61 = vpop.permute.xlu0 %3905 }
 0x368   :  { %v7170_v58 = vpop.permute.xlu1 %3893  ;;  %3670 = vbcast.lane.b32.xlu1 %v3608_v36, 376  ;;  %3634 = vbcast.lane.b32.xlu0 %v3608_v36, 304 }
 0x369   :  { %7658 = vst [vmem:[#allocation15_spill] sm:$0xff] %v7170_v58 }
 0x36a   :  { %v7178_v60 = vpop.permute.xlu0 %3916 }
 0x36c   :  { %v7174_v10 = vpop.permute.xlu1 %3901  ;;  %3681 = vbcast.lane.b32.xlu1 %v3675_v28, 264  ;;  %3642 = vbcast.lane.b32.xlu0 %v3608_v36, 320 }
 0x36e   :  { %v7182_v15 = vpop.permute.xlu0 %3924 }
 0x370   :  { %v7180_v48 = vpop.permute.xlu1 %3909  ;;  %3689 = vbcast.lane.b32.xlu1 %v3675_v28, 280  ;;  %3650 = vbcast.lane.b32.xlu0 %v3608_v36, 336 }
 0x372   :  { %v7186_v31 = vpop.permute.xlu0 %3932 }
 0x373   :  { %7659 = vst [vmem:[#allocation16_spill] sm:$0xff] %v7186_v31 }
 0x374   :  { %v7184_v1 = vpop.permute.xlu1 %3920  ;;  %3697 = vbcast.lane.b32.xlu1 %v3675_v28, 296  ;;  %3658 = vbcast.lane.b32.xlu0 %v3608_v36, 352 }
 0x376   :  { %v7190_v35 = vpop.permute.xlu0 %3940 }
 0x377   :  { %7660 = vst [vmem:[#allocation17_spill] sm:$0xff] %v7190_v35 }
 0x378   :  { %v7188_v9 = vpop.permute.xlu1 %3928  ;;  %3705 = vbcast.lane.b32.xlu1 %v3675_v28, 312  ;;  %3666 = vbcast.lane.b32.xlu0 %v3608_v36, 368 }
 0x37a   :  { %v7194_v42 = vpop.permute.xlu0 %3948 }
 0x37b   :  { %7661 = vst [vmem:[#allocation18_spill] sm:$0xff] %v7194_v42  ;;  %v7274_v42 = vrot.slane %v3387_v13, %v6607_v44 }
 0x37c   :  { %v7192_v20 = vpop.permute.xlu1 %3936  ;;  %3713 = vbcast.lane.b32.xlu1 %v3675_v28, 328  ;;  %3677 = vbcast.lane.b32.xlu0 %v3675_v28, 256 }
 0x37e   :  { %v7198_v0 = vpop.permute.xlu0 %3956 }
 0x37f   :  { %7662 = vst [vmem:[#allocation19_spill] sm:$0xff] %v7198_v0 }
 0x380   :  { %v7196_v62 = vpop.permute.xlu1 %3944  ;;  %3721 = vbcast.lane.b32.xlu1 %v3675_v28, 344  ;;  %3685 = vbcast.lane.b32.xlu0 %v3675_v28, 272 }
 0x382   :  { %v7202_v63 = vpop.permute.xlu0 %3964 }
 0x383   :  { %7664 = vst [vmem:[#allocation21_spill] sm:$0xff] %v7202_v63 }
 0x384   :  { %v7200_v14 = vpop.permute.xlu1 %3952  ;;  %3729 = vbcast.lane.b32.xlu1 %v3675_v28, 360  ;;  %3693 = vbcast.lane.b32.xlu0 %v3675_v28, 288 }
 0x385   :  { %7663 = vst [vmem:[#allocation20_spill] sm:$0xff] %v7200_v14 }
 0x386   :  { %v7206_v19 = vpop.permute.xlu0 %3403 }
 0x388   :  { %v7204_v4 = vpop.permute.xlu1 %3960  ;;  %3976 = vbcast.lane.b32.xlu1 %v7113_v12, 376  ;;  %3701 = vbcast.lane.b32.xlu0 %v3675_v28, 304 }
 0x389   :  { %7665 = vst [vmem:[#allocation22_spill] sm:$0xff] %v7204_v4 }
 0x38a   :  { %v3408_v53 = vpop.permute.xlu0 %3407 }
 0x38b   :  { %v3565_v35 = vmul.f32 %v3408_v53, %v7227_v2 }
 0x38c   :  { %v7208_v49 = vpop.permute.xlu1 %3968  ;;  %3737 = vbcast.lane.b32.xlu1 %v3675_v28, 376  ;;  %3709 = vbcast.lane.b32.xlu0 %v3675_v28, 320 }
 0x38d   :  { %7666 = vst [vmem:[#allocation23_spill] sm:$0xff] %v7208_v49 }
 0x38e   :  { %v3416_v52 = vpop.permute.xlu0 %3415 }
 0x38f   :  { %v3567_v4 = vmul.f32 %v3416_v52, %v7227_v2 }
 0x390   :  { %v7211_v38 = vpop.permute.xlu1 %3411  ;;  %3717 = vbcast.lane.b32.xlu0 %v3675_v28, 336 }
 0x392   :  { %v7219_v3 = vpop.permute.xlu0 %3419 }
 0x394   :  { %v7215_v8 = vpop.permute.xlu1 %3431  ;;  %3725 = vbcast.lane.b32.xlu0 %v3675_v28, 352 }
 0x396   :  { %v3424_v27 = vpop.permute.xlu0 %3423 }
 0x398   :  { %v7221_v32 = vpop.permute.xlu1 %3439  ;;  %3733 = vbcast.lane.b32.xlu0 %v3675_v28, 368 }
 0x39a   :  { %v7229_v16 = vpop.permute.xlu0 %3427 }
 0x39c   :  { %v7224_v24 = vpop.permute.xlu1 %3447  ;;  %3972 = vbcast.lane.b32.xlu0 %v7113_v12, 368 }
 0x39e   :  { %v7235_v11 = vpop.permute.xlu0 %3435 }
 0x3a0   :  { %v3456_v54 = vpop.permute.xlu1 %3455 }
 0x3a1   :  { %v7232_v45 = vmul.f32 %v3456_v54, %v7227_v2 }
 0x3a2   :  { %v7240_v26 = vpop.permute.xlu0 %3443 }
 0x3a4   :  { %v3464_v6 = vpop.permute.xlu1 %3463 }
 0x3a5   :  { %v7238_v57 = vmul.f32 %v3464_v6, %v7227_v2 }
 0x3a6   :  { %v7244_v7 = vpop.permute.xlu0 %3451 }
 0x3a7   :  { %7667 = vst [vmem:[#allocation24_spill] sm:$0xff] %v7244_v7 }
 0x3a8   :  { %v7242_v51 = vpop.permute.xlu1 %3474 }
 0x3aa   :  { %v3460_v21 = vpop.permute.xlu0 %3459 }
 0x3ab   :  { %v7251_v18 = vmul.f32 %v3460_v21, %v7227_v2 }
 0x3ac   :  { %v7246_v36 = vpop.permute.xlu1 %3482 }
 0x3ae   :  { %v7253_v12 = vpop.permute.xlu0 %3470 }
 0x3b0   :  { %v7248_v28 = vpop.permute.xlu1 %3490 }
 0x3b2   :  { %v7257_v6 = vpop.permute.xlu0 %3478 }
 0x3b4   :  { %v7255_v54 = vpop.permute.xlu1 %3498 }
 0x3b6   :  { %v7261_v43 = vpop.permute.xlu0 %3486 }
 0x3b8   :  { %v7259_v22 = vpop.permute.xlu1 %3506 }
 0x3ba   :  { %v7265_v41 = vpop.permute.xlu0 %3494 }
 0x3bb   :  { %7669 = vst [vmem:[#allocation26_spill] sm:$0xff] %v7265_v41 }
 0x3bc   :  { %v7263_v46 = vpop.permute.xlu1 %3514 }
 0x3bd   :  { %7668 = vst [vmem:[#allocation25_spill] sm:$0xff] %v7263_v46  ;;  %v3569_v46 = vmul.f32 %v3424_v27, %v7227_v2 }
 0x3be   :  { %v7269_v0 = vpop.permute.xlu0 %3502 }
 0x3bf   :  { %7671 = vst [vmem:[#allocation28_spill] sm:$0xff] %v7269_v0 }
 0x3c0   :  { %v7267_v63 = vpop.permute.xlu1 %3522 }
 0x3c1   :  { %7670 = vst [vmem:[#allocation27_spill] sm:$0xff] %v7267_v63  ;;  %v4011_v63 = vmul.f32 %v7150_v50, %v7277_v55 }
 0x3c2   :  { %v7279_v49 = vpop.permute.xlu0 %3510 }
 0x3c3   :  { %7673 = vst [vmem:[#allocation30_spill] sm:$0xff] %v7279_v49  ;;  %v4013_v49 = vmul.f32 %v7154_v25, %v7277_v55 }
 0x3c4   :  { %v7271_v21 = vpop.permute.xlu1 %3530 }
 0x3c5   :  { %7672 = vst [vmem:[#allocation29_spill] sm:$0xff] %v7271_v21 }
 0x3c6   :  { %v7285_v0 = vpop.permute.xlu0 %3518 }
 0x3c8   :  { %v3615_v7 = vpop.permute.xlu1 %3614 }
 0x3c9   :  { %v3772_v58 = vmul.f32 %v3615_v7, %v7274_v42 }
 0x3ca   :  { %v7291_v53 = vpop.permute.xlu0 %3526 }
 0x3cb   :  { %v3804_v41 = vadd.f32 %v3772_v58, %v3565_v35  ;;  %v4015_v35 = vmul.f32 %v7158_v59, %v7277_v55 }
 0x3cc   :  { %v3623_v21 = vpop.permute.xlu1 %3622 }
 0x3cd   :  { %v4043_v14 = vadd.f32 %v4011_v63, %v3804_v41  ;;  %v3774_v13 = vmul.f32 %v3623_v21, %v7274_v42  ;;  %v3564_v63 = vmul.f32 %v7206_v19, %v7227_v2  ;;  %v3566_v19 = vmul.f32 %v7211_v38, %v7227_v2 }
 0x3ce   :  { %v3611_v41 = vpop.permute.xlu0 %3610 }
 0x3cf   :  { %v3806_v31 = vadd.f32 %v3774_v13, %v3567_v4  ;;  %4110 = vperm.xlu1 %4694, %v4043_v14   ;;  %v3771_v14 = vmul.f32 %v3611_v41, %v7274_v42  ;;  %v3571_v4 = vmul.f32 %v7215_v8, %v7227_v2  ;;  %v4019_v41 = vmul.f32 %v7166_v30, %v7277_v55 }
 0x3d0   :  { %v3631_v7 = vpop.permute.xlu1 %3630  ;;  %v3384_v30 = vrot.slane %v7213_v39, %v5616_v34  ;;  %v4023_v39 = vmul.f32 %v7174_v10, %v7277_v55 }
 0x3d1   :  { %v4045_v50 = vadd.f32 %v4013_v49, %v3806_v31  ;;  %v3776_v58 = vmul.f32 %v3631_v7, %v7274_v42  ;;  %v4010_v49 = vmul.f32 %v7146_v29, %v7277_v55  ;;  %v3803_v27 = vadd.f32 %v3771_v14, %v3564_v63 }
 0x3d2   :  { %v3619_v13 = vpop.permute.xlu0 %3618 }
 0x3d3   :  { %v3808_v52 = vadd.f32 %v3776_v58, %v3569_v46  ;;  %4116 = vperm.xlu1 %4694, %v4045_v50   ;;  %v4017_v46 = vmul.f32 %v7162_v17, %v7277_v55  ;;  %v4042_v50 = vadd.f32 %v4010_v49, %v3803_v27  ;;  %v3773_v8 = vmul.f32 %v3619_v13, %v7274_v42 }
 0x3d4   :  { %v3639_v25 = vpop.permute.xlu1 %3638  ;;  %v3573_v58 = vmul.f32 %v7221_v32, %v7227_v2  ;;  %v3570_v27 = vmul.f32 %v7229_v16, %v7227_v2  ;;  %v3572_v16 = vmul.f32 %v7235_v11, %v7227_v2 }
 0x3d5   :  { %v4047_v21 = vadd.f32 %v4015_v35, %v3808_v52  ;;  %v3778_v31 = vmul.f32 %v3639_v25, %v7274_v42  ;;  %v4012_v52 = vmul.f32 %v7148_v56, %v7277_v55  ;;  %v3805_v17 = vadd.f32 %v3773_v8, %v3566_v19  ;;  %4107 = vperm.xlu0 %4695, %v4042_v50  }
 0x3d6   :  { %v3627_v38 = vpop.permute.xlu0 %3626  ;;  %v3568_v25 = vmul.f32 %v7219_v3, %v7227_v2  ;;  %v4014_v56 = vmul.f32 %v7152_v40, %v7277_v55  ;;  %v4016_v19 = vmul.f32 %v7156_v47, %v7277_v55 }
 0x3d7   :  { %v3810_v59 = vadd.f32 %v3778_v31, %v3571_v4  ;;  %4122 = vperm.xlu1 %4694, %v4047_v21   ;;  %v4044_v32 = vadd.f32 %v4012_v52, %v3805_v17  ;;  %v3775_v4 = vmul.f32 %v3627_v38, %v7274_v42  ;;  %v3574_v38 = vmul.f32 %v7240_v26, %v7227_v2 }
 0x3d8   :  { %v3647_v7 = vpop.permute.xlu1 %3646 }
 0x3d9   :  { %v4049_v35 = vadd.f32 %v4017_v46, %v3810_v59  ;;  %v3780_v29 = vmul.f32 %v3647_v7, %v7274_v42  ;;  %v3807_v31 = vadd.f32 %v3775_v4, %v3568_v25  ;;  %4113 = vperm.xlu0 %4695, %v4044_v32   ;;  %v3388_v7 = vmul.f32 %v7020_v5, %v3384_v30 }
 0x3da   :  { %v3635_v49 = vpop.permute.xlu0 %3634  ;;  %v4018_v5 = vmul.f32 %v7160_v23, %v7277_v55 }
 0x3db   :  { %v3812_v63 = vadd.f32 %v3780_v29, %v3573_v58  ;;  %4128 = vperm.xlu1 %4694, %v4049_v35   ;;  %v4046_v46 = vadd.f32 %v4014_v56, %v3807_v31  ;;  %v3777_v59 = vmul.f32 %v3635_v49, %v7274_v42  ;;  %v7345_v10 = vrot.slane %v3388_v7, %v6607_v44 }
 0x3dc   :  { %v7319_v14 = vpop.permute.xlu1 %3654  ;;  %v7366_v26 = vrot.slane %v3388_v7, %v5613_v33 }
 0x3dd   :  { %v4051_v21 = vadd.f32 %v4019_v41, %v3812_v63  ;;  %v3809_v40 = vadd.f32 %v3777_v59, %v3570_v27  ;;  %4119 = vperm.xlu0 %4695, %v4046_v46   ;;  %v7351_v63 = vrot.slane %v3388_v7, %v5616_v34 }
 0x3de   :  { %v3643_v8 = vpop.permute.xlu0 %3642  ;;  %v4027_v27 = vmul.f32 %v7184_v1, %v7366_v26 }
 0x3df   :  { %4134 = vperm.xlu1 %4694, %v4051_v21   ;;  %v4048_v35 = vadd.f32 %v4016_v19, %v3809_v40  ;;  %v3779_v29 = vmul.f32 %v3643_v8, %v7274_v42  ;;  %v4024_v19 = vmul.f32 %v7172_v61, %v7277_v55  ;;  %v4029_v40 = vmul.f32 %v7188_v9, %v7366_v26 }
 0x3e0   :  { %v3663_v3 = vpop.permute.xlu1 %3662  ;;  %v3585_v1 = vmul.f32 %v7248_v28, %v7351_v63  ;;  %v3580_v7 = vmul.f32 %v7253_v12, %v7351_v63  ;;  %v4026_v9 = vmul.f32 %v7178_v60, %v7366_v26  ;;  %v4031_v28 = vmul.f32 %v7192_v20, %v7366_v26 }
 0x3e1   :  { %v3784_v13 = vmul.f32 %v3663_v3, %v7274_v42  ;;  %v3811_v17 = vadd.f32 %v3779_v29, %v3572_v16  ;;  %4125 = vperm.xlu0 %4695, %v4048_v35   ;;  %v3582_v29 = vmul.f32 %v7257_v6, %v7351_v63  ;;  %v4028_v60 = vmul.f32 %v7182_v15, %v7366_v26 }
 0x3e2   :  { %v3651_v41 = vpop.permute.xlu0 %3650  ;;  %v3584_v6 = vmul.f32 %v7261_v43, %v7351_v63  ;;  %v7675_v43 = vld [vmem:[#allocation16_spill] sm:$0xff] }
 0x3e3   :  { %v3816_v50 = vadd.f32 %v3784_v13, %v7232_v45  ;;  %v4025_v45 = vmul.f32 %v7180_v48, %v7277_v55  ;;  %v4050_v32 = vadd.f32 %v4018_v5, %v3811_v17  ;;  %v3781_v23 = vmul.f32 %v3651_v41, %v7274_v42 }
 0x3e4   :  { %v3671_v58 = vpop.permute.xlu1 %3670  ;;  %v4020_v48 = vmul.f32 %v7164_v37, %v7277_v55  ;;  %v3583_v37 = vmul.f32 %v7246_v36, %v7351_v63 }
 0x3e5   :  { %v7339_v52 = vadd.f32 %v4023_v39, %v3816_v50  ;;  %v3786_v47 = vmul.f32 %v3671_v58, %v7274_v42  ;;  %v3813_v21 = vadd.f32 %v3781_v23, %v3574_v38  ;;  %4131 = vperm.xlu0 %4695, %v4050_v32   ;;  %v3589_v38 = vmul.f32 %v7259_v22, %v7351_v63  ;;  %v7674_v22 = vld [vmem:[#allocation25_spill] sm:$0xff] }
 0x3e6   :  { %v7363_v34 = vpop.permute.xlu0 %3658  ;;  %v3782_v32 = vmul.f32 %v7319_v14, %v7274_v42  ;;  %v7676_v14 = vld [vmem:[#allocation20_spill] sm:$0xff] }
 0x3e7   :  { %v3818_v11 = vadd.f32 %v3786_v47, %v7238_v57  ;;  %v3581_v57 = vmul.f32 %v7242_v51, %v7351_v63  ;;  %v4052_v30 = vadd.f32 %v4020_v48, %v3813_v21 }
 0x3e8   :  { %v3682_v25 = vpop.permute.xlu1 %3681 }
 0x3e9   :  { %v7356_v4 = vadd.f32 %v4025_v45, %v3818_v11  ;;  %v3788_v44 = vmul.f32 %v3682_v25, %v7345_v10  ;;  %4137 = vperm.xlu0 %4695, %v4052_v30   ;;  %v4030_v30 = vmul.f32 %v7675_v43, %v7366_v26  ;;  %v3592_v43 = vmul.f32 %v7285_v0, %v7351_v63 }
 0x3ea   :  { %v3667_v51 = vpop.permute.xlu0 %3666  ;;  %v3594_v0 = vmul.f32 %v7291_v53, %v7351_v63 }
 0x3eb   :  { %v3820_v56 = vadd.f32 %v3788_v44, %v3581_v57  ;;  %v3785_v13 = vmul.f32 %v3667_v51, %v7274_v42 }
 0x3ec   :  { %v3690_v31 = vpop.permute.xlu1 %3689 }
 0x3ed   :  { %v3790_v49 = vmul.f32 %v3690_v31, %v7345_v10  ;;  %v4059_v3 = vadd.f32 %v4027_v27, %v3820_v56  ;;  %v3817_v36 = vadd.f32 %v3785_v13, %v7251_v18  ;;  %v3587_v18 = vmul.f32 %v7255_v54, %v7351_v63 }
 0x3ee   :  { %v3678_v39 = vpop.permute.xlu0 %3677  ;;  %v4033_v54 = vmul.f32 %v7196_v62, %v7366_v26  ;;  %v3575_v62 = vmul.f32 %v7224_v24, %v7227_v2  ;;  %v3591_v56 = vmul.f32 %v7674_v22, %v7351_v63 }
 0x3ef   :  { %v3822_v46 = vadd.f32 %v3790_v49, %v3583_v37  ;;  %4158 = vperm.xlu0 %4695, %v4059_v3   ;;  %v7384_v58 = vadd.f32 %v4024_v19, %v3817_v36  ;;  %v3787_v61 = vmul.f32 %v3678_v39, %v7345_v10  ;;  %v4035_v49 = vmul.f32 %v7676_v14, %v7366_v26  ;;  %v7677_v37 = vld [vmem:[#allocation22_spill] sm:$0xff] }
 0x3f0   :  { %v3698_v59 = vpop.permute.xlu1 %3697  ;;  %v4037_v51 = vmul.f32 %v7677_v37, %v7366_v26  ;;  %v7678_v3 = vld [vmem:[#allocation26_spill] sm:$0xff] }
 0x3f1   :  { %v3792_v33 = vmul.f32 %v3698_v59, %v7345_v10  ;;  %v4061_v50 = vadd.f32 %v4029_v40, %v3822_v46  ;;  %v3819_v12 = vadd.f32 %v3787_v61, %v3580_v7  ;;  %v3586_v24 = vmul.f32 %v7678_v3, %v7351_v63  ;;  %v7679_v7 = vld [vmem:[#allocation15_spill] sm:$0xff] }
 0x3f2   :  { %v3686_v47 = vpop.permute.xlu0 %3685  ;;  %v3814_v46 = vadd.f32 %v3782_v32, %v3575_v62  ;;  %v4021_v39 = vmul.f32 %v7679_v7, %v7277_v55  ;;  %v4601_v7 = vpop.f32.mrb[196].mxu0 }
 0x3f3   :  { %v3824_v8 = vadd.f32 %v3792_v33, %v3585_v1  ;;  %4164 = vperm.xlu0 %4695, %v4061_v50   ;;  %v4058_v11 = vadd.f32 %v4026_v9, %v3819_v12  ;;  %v3789_v41 = vmul.f32 %v3686_v47, %v7345_v10  ;;  %v3783_v33 = vmul.f32 %v7363_v34, %v7274_v42  ;;  %v7680_v50 = vld [vmem:[#allocation27_spill] sm:$0xff] }
 0x3f4   :  { %v3706_v16 = vpop.permute.xlu1 %3705 }
 0x3f5   :  { %v3794_v35 = vmul.f32 %v3706_v16, %v7345_v10  ;;  %v4063_v5 = vadd.f32 %v4031_v28, %v3824_v8  ;;  %v3821_v25 = vadd.f32 %v3789_v41, %v3582_v29  ;;  %4155 = vperm.xlu1 %4694, %v4058_v11   ;;  %v3593_v8 = vmul.f32 %v7680_v50, %v7351_v63  ;;  %v7682_v28 = vld [vmem:[#allocation24_spill] sm:$0xff]  ;;  %v4602_v50 = vpop.f32.mrb[197].mxu0 }
 0x3f6   :  { %v3694_v23 = vpop.permute.xlu0 %3693  ;;  %v3576_v42 = vmul.f32 %v7682_v28, %v7227_v2  ;;  %v7684_v29 = vld [vmem:[#allocation28_spill] sm:$0xff] }
 0x3f7   :  { %v3826_v17 = vadd.f32 %v3794_v35, %v3587_v18  ;;  %4170 = vperm.xlu0 %4695, %v4063_v5   ;;  %v4060_v57 = vadd.f32 %v4028_v60, %v3821_v25  ;;  %v3791_v21 = vmul.f32 %v3694_v23, %v7345_v10  ;;  %v7681_v35 = vld [vmem:[#allocation17_spill] sm:$0xff]  ;;  %v7683_v18 = vld [vmem:[#allocation23_spill] sm:$0xff]  ;;  %v3588_v47 = vmul.f32 %v7684_v29, %v7351_v63  ;;  %v7687_v23 = vld [vmem:[#allocation30_spill] sm:$0xff] }
 0x3f8   :  { %v3714_v45 = vpop.permute.xlu1 %3713  ;;  %v4032_v9 = vmul.f32 %v7681_v35, %v7366_v26  ;;  %v4039_v12 = vmul.f32 %v7683_v18, %v7366_v26  ;;  %v3815_v11 = vadd.f32 %v3783_v33, %v3576_v42 }
 0x3f9   :  { %v3796_v20 = vmul.f32 %v3714_v45, %v7345_v10  ;;  %v4065_v44 = vadd.f32 %v4033_v54, %v3826_v17  ;;  %v3823_v27 = vadd.f32 %v3791_v21, %v3584_v6  ;;  %4161 = vperm.xlu1 %4694, %v4060_v57   ;;  %v4053_v45 = vadd.f32 %v4021_v39, %v3814_v46  ;;  %v7685_v54 = vld [vmem:[#allocation14_spill] sm:$0xff]  ;;  %v7688_v21 = vld [vmem:[#allocation19_spill] sm:$0xff] }
 0x3fa   :  { %v3702_v13 = vpop.permute.xlu0 %3701  ;;  %v4022_v2 = vmul.f32 %v7685_v54, %v7277_v55  ;;  %v4036_v62 = vmul.f32 %v7688_v21, %v7366_v26 }
 0x3fb   :  { %v3828_v15 = vadd.f32 %v3796_v20, %v3589_v38  ;;  %4176 = vperm.xlu0 %4695, %v4065_v44   ;;  %v4062_v1 = vadd.f32 %v4030_v30, %v3823_v27  ;;  %v3793_v36 = vmul.f32 %v3702_v13, %v7345_v10  ;;  %v7686_v38 = vld [vmem:[#allocation18_spill] sm:$0xff]  ;;  %v3590_v44 = vmul.f32 %v7687_v23, %v7351_v63  ;;  %v7689_v27 = vld [vmem:[#allocation21_spill] sm:$0xff]  ;;  %v7691_v23 = vld [vmem:[#allocation7_spill] sm:$0xff] }
 0x3fc   :  { %v3722_v48 = vpop.permute.xlu1 %3721  ;;  %v4034_v25 = vmul.f32 %v7686_v38, %v7366_v26  ;;  %v4038_v37 = vmul.f32 %v7689_v27, %v7366_v26  ;;  %v7690_v13 = vld [vmem:[#allocation29_spill] sm:$0xff] }
 0x3fd   :  { %v3798_v31 = vmul.f32 %v3722_v48, %v7345_v10  ;;  %v4067_v19 = vadd.f32 %v4035_v49, %v3828_v15  ;;  %v3825_v34 = vadd.f32 %v3793_v36, %v3586_v24  ;;  %4167 = vperm.xlu1 %4694, %v4062_v1   ;;  %v4054_v15 = vadd.f32 %v4022_v2, %v3815_v11 }
 0x3fe   :  { %v3710_v17 = vpop.permute.xlu0 %3709  ;;  %v3595_v33 = vmul.f32 %v7690_v13, %v7351_v63 }
 0x3ff   :  { %v3830_v59 = vadd.f32 %v3798_v31, %v3591_v56  ;;  %4182 = vperm.xlu0 %4695, %v4067_v19   ;;  %v4064_v41 = vadd.f32 %v4032_v9, %v3825_v34  ;;  %v3795_v60 = vmul.f32 %v3710_v17, %v7345_v10 }
 0x400   :  { %v3730_v40 = vpop.permute.xlu1 %3729 }
 0x401   :  { %v4069_v16 = vadd.f32 %v4037_v51, %v3830_v59  ;;  %v3800_v61 = vmul.f32 %v3730_v40, %v7345_v10  ;;  %v3827_v6 = vadd.f32 %v3795_v60, %v3588_v47  ;;  %4173 = vperm.xlu1 %4694, %v4064_v41  }
 0x402   :  { %v3718_v32 = vpop.permute.xlu0 %3717 }
 0x403   :  { %v3832_v5 = vadd.f32 %v3800_v61, %v3593_v8  ;;  %4140 = vperm.xlu0 %4695, %v4053_v45   ;;  %v4066_v48 = vadd.f32 %v4034_v25, %v3827_v6  ;;  %v3797_v57 = vmul.f32 %v3718_v32, %v7345_v10 }
 0x404   :  { %v3977_v30 = vpop.permute.xlu1 %3976 }
 0x405   :  { %v4071_v20 = vadd.f32 %v4039_v12, %v3832_v5  ;;  %v3829_v22 = vadd.f32 %v3797_v57, %v3590_v44  ;;  %4179 = vperm.xlu1 %4694, %v4066_v48   ;;  %v4041_v1 = vmul.f32 %v3977_v30, %v7366_v26  ;;  %v7692_v48 = vld [vmem:[#allocation9_spill] sm:$0xff] }
 0x406   :  { %v3726_v55 = vpop.permute.xlu0 %3725 }
 0x407   :  { %4143 = vperm.xlu0 %4695, %v4054_v15   ;;  %v4068_v56 = vadd.f32 %v4036_v62, %v3829_v22  ;;  %v3799_v31 = vmul.f32 %v3726_v55, %v7345_v10  ;;  %v7693_v22 = vld [vmem:[#allocation8_spill] sm:$0xff] }
 0x408   :  { %v3738_v3 = vpop.permute.xlu1 %3737 }
 0x409   :  { %4185 = vperm.xlu1 %4694, %v4068_v56   ;;  %v3831_v49 = vadd.f32 %v3799_v31, %v3592_v43  ;;  %v7694_v31 = vld [vmem:[#allocation5_spill] sm:$0xff] }
 0x40a   :  { %v3734_v14 = vpop.permute.xlu0 %3733  ;;  %v4236_v43 = vadd.s32 4294967240, %v7694_v31  ;;  %v4243_v27 = vadd.s32 4294967232, %v7694_v31 }
 0x40b   :  { %4146 = vperm.xlu0 %4695, %v7339_v52   ;;  %v4070_v51 = vadd.f32 %v4038_v37, %v3831_v49  ;;  %v3801_v46 = vmul.f32 %v3734_v14, %v7345_v10  ;;  %v3802_v52 = vmul.f32 %v3738_v3, %v7345_v10  ;;  %v4603_v10 = vadd.f32 %v4602_v50, %v4601_v7  ;;  %v7698_v3 = vld [vmem:[#allocation11_spill] sm:$0xff] }
 0x40c   :  { %v4250_v14 = vadd.s32 4294967224, %v7694_v31 }
 0x40d   :  { %4188 = vperm.xlu1 %4694, %v4069_v16   ;;  %v3834_v19 = vadd.f32 %v3802_v52, %v3595_v33  ;;  %v4604_v16 = vpop.f32.mrb[198].mxu0  ;;  %v7700_v52 = vld [vmem:[#allocation10_spill] sm:$0xff] }
 0x40e   :  { %v3973_v24 = vpop.permute.xlu0 %3972  ;;  %v4605_v35 = vpop.f32.mrb[199].mxu0  ;;  %v7701_v33 = vld [vmem:[#allocation6_spill] sm:$0xff] }
 0x40f   :  { %4149 = vperm.xlu0 %4695, %v7384_v58   ;;  %v4040_v59 = vmul.f32 %v3973_v24, %v7366_v26  ;;  %v3833_v58 = vadd.f32 %v3801_v46, %v3594_v0  ;;  %v4073_v36 = vadd.f32 %v4041_v1, %v3834_v19  ;;  %v4257_v19 = vadd.s32 4294967216, %v7694_v31 }
 0x410   :  { %v4246_v7 = vsub.s32 %v4243_v27, %v7701_v33 }
 0x411   :  { %4191 = vperm.xlu1 %4694, %v4070_v51   ;;  %v4072_v40 = vadd.f32 %v4040_v59, %v3833_v58  ;;  %v4239_v58 = vsub.s32 %v4236_v43, %v7701_v33 }
 0x413   :  { %4152 = vperm.xlu0 %4695, %v7356_v4   ;;  %v4579_v4 = vpop.f32.mrb[136].mxu1 }
 0x414   :  { %v4580_v39 = vpop.f32.mrb[137].mxu1 }
 0x415   :  { %4194 = vperm.xlu1 %4694, %v4071_v20   ;;  %v4581_v53 = vadd.f32 %v4580_v39, %v4579_v4  ;;  %v4582_v8 = vpop.f32.mrb[138].mxu1 }
 0x416   :  { %v4583_v61 = vpop.f32.mrb[139].mxu1 }
 0x417   :  { %v7464_v63 = vadd.f32 %v4603_v10, %v4581_v53  ;;  %v7704_v53 = vld [vmem:[#allocation13_spill] sm:$0xff]  ;;  %v7705_v61 = vld [vmem:[#allocation12_spill] sm:$0xff] }
 0x419   :  { %4197 = vperm.xlu1 %4694, %v4072_v40  }
 0x41d   :  { %4200 = vperm.xlu1 %4694, %v4073_v36   ;;  %v4253_v36 = vsub.s32 %v4250_v14, %v7701_v33 }
 0x44e   :  { %v4111_v28 = vpop.permute.xlu1 %4110 }
 0x44f   :  { %v4209_v55 = vrot.slane %v4111_v28, %v7693_v22  ;;  %v4264_v28 = vadd.s32 4294967208, %v7694_v31 }
 0x452   :  { %v4117_v26 = vpop.permute.xlu1 %4116 }
 0x453   :  { %v4219_v59 = vrot.slane %v4117_v26, %v7700_v52  ;;  %v4278_v26 = vadd.s32 4294967192, %v7694_v31 }
 0x454   :  { %v4108_v9 = vpop.permute.xlu0 %4107 }
 0x455   :  { %v4205_v44 = vrot.slane %v4108_v9, %v7691_v23 }
 0x456   :  { %v4123_v12 = vpop.permute.xlu1 %4122 }
 0x457   :  { %v4210_v49 = vsel %vm7695_vm15, %v4209_v55, %v4205_v44  ;;  %v4229_v35 = vrot.slane %v4123_v12, %v7705_v61  ;;  %v4292_v12 = vadd.s32 4294967176, %v7694_v31 }
 0x458   :  { %v4114_v42 = vpop.permute.xlu0 %4113 }
 0x459   :  { %v4214_v57 = vrot.slane %v4114_v42, %v7692_v48  ;;  %v4260_v42 = vsub.s32 %v4257_v19, %v7701_v33 }
 0x45a   :  { %v7472_v5 = vpop.permute.xlu1 %4128 }
 0x45b   :  { %v4215_v51 = vsel %vm7697_vm1, %v4214_v57, %v4210_v49  ;;  %v4240_v44 = vrot.slane %v7472_v5, %v4239_v58  ;;  %v4295_v5 = vsub.s32 %v4292_v12, %v7701_v33 }
 0x45c   :  { %v4120_v34 = vpop.permute.xlu0 %4119  ;;  %v4220_v4 = vsel %vm7702_vm3, %v4219_v59, %v4215_v51 }
 0x45d   :  { %v4224_v24 = vrot.slane %v4120_v34, %v7698_v3  ;;  %v4271_v34 = vadd.s32 4294967200, %v7694_v31 }
 0x45e   :  { %v7474_v45 = vpop.permute.xlu1 %4134 }
 0x45f   :  { %v4225_v50 = vsel %vm3120_vm14, %v4224_v24, %v4220_v4  ;;  %v4274_v57 = vsub.s32 %v4271_v34, %v7701_v33  ;;  %v4254_v14 = vrot.slane %v7474_v45, %v4253_v36 }
 0x460   :  { %v7466_v18 = vpop.permute.xlu0 %4125 }
 0x461   :  { %v4234_v10 = vrot.slane %v7466_v18, %v7704_v53  ;;  %v4230_v18 = vsel %vm3127_vm8, %v4229_v35, %v4225_v50 }
 0x464   :  { %v7468_v29 = vpop.permute.xlu0 %4131 }
 0x468   :  { %v7470_v47 = vpop.permute.xlu0 %4137 }
 0x46e   :  { %v4159_v17 = vpop.permute.xlu0 %4158 }
 0x46f   :  { %v4306_v56 = vrot.slane %v4159_v17, %v7693_v22 }
 0x472   :  { %v4165_v11 = vpop.permute.xlu0 %4164 }
 0x473   :  { %v4316_v13 = vrot.slane %v4165_v11, %v7700_v52 }
 0x474   :  { %v4156_v41 = vpop.permute.xlu1 %4155 }
 0x475   :  { %v4302_v15 = vrot.slane %v4156_v41, %v7691_v23  ;;  %v4285_v41 = vadd.s32 4294967184, %v7694_v31 }
 0x476   :  { %v4171_v60 = vpop.permute.xlu0 %4170 }
 0x477   :  { %v4307_v37 = vsel %vm7696_vm2, %v4306_v56, %v4302_v15  ;;  %v4326_v9 = vrot.slane %v4171_v60, %v7705_v61  ;;  %v4235_v60 = vsel %vm3134_vm6, %v4234_v10, %v4230_v18 }
 0x478   :  { %v4162_v20 = vpop.permute.xlu1 %4161 }
 0x479   :  { %v4311_v21 = vrot.slane %v4162_v20, %v7692_v48  ;;  %v4247_v20 = vrot.slane %v7468_v29, %v4246_v7  ;;  %v4267_v48 = vsub.s32 %v4264_v28, %v7701_v33  ;;  %v4242_v29 = vsel %vm4241_vm9, %v4240_v44, %v4235_v60 }
 0x47a   :  { %v7476_v54 = vpop.permute.xlu0 %4176 }
 0x47b   :  { %v4312_v46 = vsel %vm7699_vm0, %v4311_v21, %v4307_v37  ;;  %v4336_v15 = vrot.slane %v7476_v54, %v4239_v58  ;;  %v4281_v21 = vsub.s32 %v4278_v26, %v7701_v33  ;;  %v4249_v56 = vsel %vm4248_vm5, %v4247_v20, %v4242_v29 }
 0x47c   :  { %v4168_v2 = vpop.permute.xlu1 %4167  ;;  %v4317_v39 = vsel %vm7703_vm4, %v4316_v13, %v4312_v46  ;;  %v4261_v54 = vrot.slane %v7470_v47, %v4260_v42 }
 0x47d   :  { %v4321_v0 = vrot.slane %v4168_v2, %v7698_v3 }
 0x47e   :  { %v7478_v38 = vpop.permute.xlu0 %4182 }
 0x47f   :  { %v4322_v8 = vsel %vm3120_vm14, %v4321_v0, %v4317_v39  ;;  %vm4255_vm14 = vcmask 654912   ;;  %v4346_v49 = vrot.slane %v7478_v38, %v4253_v36 }
 0x480   :  { %v4174_v25 = vpop.permute.xlu1 %4173  ;;  %v4327_v11 = vsel %vm3127_vm8, %v4326_v9, %v4322_v8  ;;  %vm4262_vm8 = vcmask 720512   ;;  %v4256_v47 = vsel %vm4255_vm14, %v4254_v14, %v4249_v56 }
 0x481   :  { %v4331_v16 = vrot.slane %v4174_v25, %v7704_v53  ;;  %v4263_v38 = vsel %vm4262_vm8, %v4261_v54, %v4256_v47 }
 0x482   :  { %v7480_v6 = vpop.permute.xlu0 %4140 }
 0x483   :  { %v4332_v2 = vsel %vm3134_vm6, %v4331_v16, %v4327_v11  ;;  %v4268_v27 = vrot.slane %v7480_v6, %v4267_v48  ;;  %vm4276_vm6 = vcmask 851712  }
 0x484   :  { %v7482_v32 = vpop.permute.xlu1 %4179  ;;  %v4337_v55 = vsel %vm4241_vm9, %v4336_v15, %v4332_v2 }
 0x485   :  { %v4341_v25 = vrot.slane %v7482_v32, %v4246_v7  ;;  %v4288_v32 = vsub.s32 %v4285_v41, %v7701_v33  ;;  %v4270_v13 = vsel %vm4269_vm7, %v4268_v27, %v4263_v38 }
 0x486   :  { %v7488_v62 = vpop.permute.xlu0 %4143 }
 0x487   :  { %v4342_v31 = vsel %vm4248_vm5, %v4341_v25, %v4337_v55  ;;  %v4275_v51 = vrot.slane %v7488_v62, %v4274_v57 }
 0x488   :  { %v7493_v30 = vpop.permute.xlu1 %4185  ;;  %v4347_v0 = vsel %vm4255_vm14, %v4346_v49, %v4342_v31 }
 0x489   :  { %v4351_v43 = vrot.slane %v7493_v30, %v4260_v42  ;;  %v4277_v58 = vsel %vm4276_vm6, %v4275_v51, %v4270_v13 }
 0x48a   :  { %v7507_v40 = vpop.permute.xlu0 %4146 }
 0x48b   :  { %v4282_v30 = vrot.slane %v7507_v40, %v4281_v21  ;;  %v4352_v6 = vsel %vm4262_vm8, %v4351_v43, %v4347_v0 }
 0x48c   :  { %v7509_v1 = vpop.permute.xlu1 %4188 }
 0x48d   :  { %v4356_v37 = vrot.slane %v7509_v1, %v4267_v48  ;;  %v4284_v40 = vsel %vm4283_vm10, %v4282_v30, %v4277_v58 }
 0x48e   :  { %v4150_v23 = vpop.permute.xlu0 %4149 }
 0x48f   :  { %v4289_v52 = vrot.slane %v4150_v23, %v4288_v32  ;;  %v4357_v62 = vsel %vm4269_vm7, %v4356_v37, %v4352_v6 }
 0x490   :  { %v4192_v17 = vpop.permute.xlu1 %4191 }
 0x491   :  { %v4361_v3 = vrot.slane %v4192_v17, %v4274_v57  ;;  %v4291_v7 = vsel %vm4290_vm12, %v4289_v52, %v4284_v40 }
 0x492   :  { %v4153_v24 = vpop.permute.xlu0 %4152 }
 0x493   :  { %v4296_v33 = vrot.slane %v4153_v24, %v4295_v5  ;;  %v4362_v19 = vsel %vm4276_vm6, %v4361_v3, %v4357_v62 }
 0x494   :  { %v4195_v22 = vpop.permute.xlu1 %4194 }
 0x495   :  { %v4366_v45 = vrot.slane %v4195_v22, %v4281_v21  ;;  %v4298_v50 = vsel %vm4297_vm13, %v4296_v33, %v4291_v7 }
 0x497   :  { %v4367_v36 = vsel %vm4283_vm10, %v4366_v45, %v4362_v19 }
 0x498   :  { %v4198_v46 = vpop.permute.xlu1 %4197 }
 0x499   :  { %v4371_v59 = vrot.slane %v4198_v46, %v4288_v32 }
 0x49b   :  { %v4372_v39 = vsel %vm4290_vm12, %v4371_v59, %v4367_v36 }
 0x49c   :  { %v4201_v1 = vpop.permute.xlu1 %4200 }
 0x49d   :  { %v4376_v4 = vrot.slane %v4201_v1, %v4295_v5 }
 0x49f   :  { %v4377_v53 = vsel %vm4297_vm13, %v4376_v4, %v4372_v39 }
 0x4a0   :  { %v4378_v10 = vsel %vm3306_vm11, %v4377_v53, %v4298_v50 }
 0x4a1   :  { %v4380_v8 = vcombine.low %v4378_v10, %v7464_v63 }
 0x4a3   :  { %4478 = vst.sshfl [vmem:[#allocation2] sm:$0x33 pattern:$0x76325410] %v4380_v8 }
 0x4a4   :  { %4886 = shalt.err (!%p4883_p4)
}
 0x4a5   :  { %s4887_s7 = scalar_lea.hbm %s7587_s10, 64 }
 0x4a6   :  { %p4888_p5 = scmp.ne.s32.totalorder %s7587_s10, %s4887_s7  ;;  %p4891_p6 = scmp.lt.u32.totalorder %s4887_s7, %s7587_s10 }
 0x4a8   :  { %p4893_p7 = pnand %p4891_p6, %p4888_p5 }
 0x4aa   :  { %4896 = shalt.err (!%p4893_p7)
}
 0x4ab   :  { %4399 = dma.vmem_to_hbm [thread:$0]  %s4397_s6, 64, %s7587_s10, [#allocation3]  }
 0x4ac   :  { %4897 = dma.done.wait [#allocation3], 64  }
 0x4ad   :  { %4898 = vsyncadd [#allocation3], 4294967232 }
 0x4ae   :  { %4403 = vsyncpa [#allocation3], 1 }

</bundles_post_ra>
